<compile_context>
chip_gen: v7x
topology: tpu7x:2x2x1
jax: 0.10.0
libtpu: 0.0.40
codegen_flags: <defaults>
</compile_context>

<pallas_src>
import functools

import numpy as np
import jax
import jax.numpy as jnp
from jax.experimental import pallas as pl
from jax.experimental.pallas import tpu as pltpu


# ----------------------------- in-kernel helpers -----------------------------

def _erf(z):
    # Abramowitz & Stegun 7.1.26, max abs error 1.5e-7 (~ fp32 resolution).
    a1, a2, a3, a4, a5 = (0.254829592, -0.284496736, 1.421413741,
                          -1.453152027, 1.061405429)
    p = 0.3275911
    az = jnp.abs(z)
    t = 1.0 / (1.0 + p * az)
    poly = t * (a1 + t * (a2 + t * (a3 + t * (a4 + t * a5))))
    e = 1.0 - poly * jnp.exp(-az * az)
    return jnp.where(z >= 0, e, -e)


def _gelu(v):
    # exact (erf-based) GELU, matches torch.nn.GELU()
    return 0.5 * v * (1.0 + _erf(v * 0.7071067811865476))


def _layernorm(v, g, b, eps):
    mu = jnp.mean(v, axis=-1, keepdims=True)
    vc = v - mu
    var = jnp.mean(vc * vc, axis=-1, keepdims=True)     # biased var (PyTorch LN)
    return vc * jax.lax.rsqrt(var + eps) * g + b


def _bf16(v):
    return v.astype(jnp.bfloat16)


# ------------------------------- fused kernel --------------------------------

def _block_kernel(x_ref, y_ref, pool_ref, shift_ref,
                  c1s_ref, c2s_ref, hid_ref, mask_ref,
                  qw_ref, kvw_ref, srw_ref, pjw_ref, f1w_ref, f2w_ref,
                  out_ref, *, num_heads, eps, bt, n1, n2, nk, c1, c2):
    rows1 = bt * n1                                    # query rows in this tile

    c1s = c1s_ref[...]       # (6,  C1)  norm1_g, norm1_b, proj_b, norm3_g, norm3_b, fc2_b
    c2s = c2s_ref[...]       # (5,  C2)  norm2_g, norm2_b, sr_b, attn_norm_g, attn_norm_b
    hids = hid_ref[...]      # (11, hid) fc1_b, dw_b, dw_w[0..8]
    masks = mask_ref[...]    # (2H, 2C1) q/k masks (rows 0..H-1), v masks (rows H..2H-1)

    # ---------------- norms (f32, per row -> batch flattening is exact) -------
    x_n = _layernorm(x_ref[...].reshape(rows1, c1), c1s[0:1], c1s[1:2], eps)
    y_n = _layernorm(y_ref[...].reshape(bt * n2, c2), c2s[0:1], c2s[1:2], eps)

    # ---------------- CrossAttention ------------------------------------------
    # AvgPool2d (block-diag averaging matrix) + 1x1 "sr" conv + LN + GELU.
    y_pool = jnp.dot(pool_ref[...], _bf16(y_n),
                     preferred_element_type=jnp.float32)             # (bt*Nk, C2)
    y_sr = jnp.dot(_bf16(y_pool), srw_ref[...],
                   preferred_element_type=jnp.float32) + c2s[2:3]
    y_a = _gelu(_layernorm(y_sr, c2s[3:4], c2s[4:5], eps))           # (bt*Nk, C2)

    # q (scale folded in, zero-padded to 2*C1 lanes) and fused kv, one dot each.
    q2 = jnp.dot(_bf16(x_n), qw_ref[...],
                 preferred_element_type=jnp.float32)                 # (bt*N1, 2C1)
    kv = jnp.dot(_bf16(y_a), kvw_ref[...],
                 preferred_element_type=jnp.float32)                 # (bt*Nk, 2C1)

    # Stacked-head attention: one score matmul, one softmax, one PV matmul per
    # batch element.  Head select / collapse are VPU mask multiplies.
    attn_rows = []
    for b in range(bt):
        qb = q2[b * n1:(b + 1) * n1]                                  # (N1, 2C1)
        kvb = _bf16(kv[b * nk:(b + 1) * nk])                          # (Nk, 2C1)
        q_st = jnp.concatenate(
            [qb * masks[h:h + 1] for h in range(num_heads)], axis=0)  # (H*N1, 2C1)
        s = jax.lax.dot_general(_bf16(q_st), kvb, (((1,), (1,)), ((), ())),
                                preferred_element_type=jnp.float32)   # (H*N1, Nk)
        s = s - jnp.max(s, axis=-1, keepdims=True)
        p = jnp.exp(s)
        p = p * pl.reciprocal(jnp.sum(p, axis=-1, keepdims=True), approx=True)
        o = jnp.dot(_bf16(p), kvb,
                    preferred_element_type=jnp.float32)               # (H*N1, 2C1)
        ab = jnp.zeros((n1, 2 * c1), jnp.float32)
        for h in range(num_heads):
            ab = ab + o[h * n1:(h + 1) * n1] * masks[num_heads + h:num_heads + h + 1]
        attn_rows.append(ab)                                          # (N1, 2C1)
    attn_pad = attn_rows[0] if bt == 1 else jnp.concatenate(attn_rows, axis=0)

    # projection: zero-top-half padded weight absorbs the v-half lane offset.
    attn = jnp.dot(_bf16(attn_pad), pjw_ref[...],
                   preferred_element_type=jnp.float32) + c1s[2:3]     # (bt*N1, C1)

    x1 = x_n + attn                                                   # residual
    x3 = _layernorm(x1, c1s[3:4], c1s[4:5], eps)                      # norm3

    # ---------------- Mlp: fc1 -> dwconv3x3 -> GELU -> fc2 --------------------
    h1 = jnp.dot(_bf16(x3), f1w_ref[...],
                 preferred_element_type=jnp.float32) + hids[0:1]      # (bt*N1, hid)

    # depthwise 3x3 conv (padding=1) as ONE block-diag shift matmul
    # + 9 per-tap VPU scale-adds.
    acc2 = jnp.dot(shift_ref[...], _bf16(h1),
                   preferred_element_type=jnp.float32)                # (9*bt*N1, hid)
    acc = jnp.zeros_like(h1)
    for t in range(9):
        acc = acc + acc2[t * rows1:(t + 1) * rows1] * hids[2 + t:3 + t]
    h2 = _gelu(acc + hids[1:2])

    mlp = jnp.dot(_bf16(h2), f2w_ref[...],
                  preferred_element_type=jnp.float32) + c1s[5:6]

    out_ref[...] = (x3 + mlp).reshape(bt, n1, c1)


# ------------------------- static helper matrices -----------------------------

def _make_pool_blockdiag(H2, W2, pool_ratio, bt):
    # AvgPool2d(pool_ratio, pool_ratio), floor semantics, block-diag over batch.
    Hp, Wp = H2 // pool_ratio, W2 // pool_ratio
    Nk, N2 = Hp * Wp, H2 * W2
    P = np.zeros((Nk, N2), np.float32)
    inv = 1.0 / float(pool_ratio * pool_ratio)
    for hp in range(Hp):
        for wp in range(Wp):
            for i in range(pool_ratio):
                for j in range(pool_ratio):
                    P[hp * Wp + wp,
                      (hp * pool_ratio + i) * W2 + (wp * pool_ratio + j)] = inv
    BD = np.zeros((bt * Nk, bt * N2), np.float32)
    for b in range(bt):
        BD[b * Nk:(b + 1) * Nk, b * N2:(b + 1) * N2] = P
    return jnp.asarray(BD, dtype=jnp.bfloat16)


def _make_shift_blockdiag(H, W, bt):
    # Tap t = (dh+1)*3+(dw+1); rows ordered tap-major, then batch, then pixel.
    N = H * W
    S = np.zeros((9, N, N), np.float32)
    t = 0
    for dh in (-1, 0, 1):
        for dw in (-1, 0, 1):
            for h in range(H):
                for w in range(W):
                    hh, ww = h + dh, w + dw
                    if 0 <= hh < H and 0 <= ww < W:
                        S[t, h * W + w, hh * W + ww] = 1.0
            t += 1
    BD = np.zeros((9, bt * N, bt * N), np.float32)
    for b in range(bt):
        BD[:, b * N:(b + 1) * N, b * N:(b + 1) * N] = S
    return jnp.asarray(BD.reshape(9 * bt * N, bt * N), dtype=jnp.bfloat16)


def _make_head_masks(num_heads, C1):
    d = C1 // num_heads
    m = np.zeros((2 * num_heads, 2 * C1), np.float32)
    for h in range(num_heads):
        m[h, h * d:(h + 1) * d] = 1.0                          # k-half (and q) channels
        m[num_heads + h, C1 + h * d:C1 + (h + 1) * d] = 1.0    # v-half channels
    return jnp.asarray(m)


def _tensorcores_per_chip():
    # v7x has 2 TensorCores per chip -> keep a 2-long "parallel" grid;
    # v5e/v6e have one TC -> fully batch-fused grid=(1,) avoids sequential steps.
    try:
        kind = jax.devices()[0].device_kind.lower()
    except Exception:
        return 1
    return 2 if "7" in kind else 1


# --------------------------------- wrapper ------------------------------------

def block_forward(x, y, params, H2, W2, H1, W1, num_heads, pool_ratio,
                  batch_grid=None):
    B, N1, C1 = x.shape
    _, N2, C2 = y.shape
    head_dim = C1 // num_heads
    scale = head_dim ** -0.5
    hidden = params['fc1_w'].shape[1]
    Hp, Wp = H2 // pool_ratio, W2 // pool_ratio
    Nk = Hp * Wp

    if batch_grid is None:
        tc = _tensorcores_per_chip()
        batch_grid = tc if (B % tc == 0) else 1
    Bt = B // batch_grid

    pool_bd = _make_pool_blockdiag(H2, W2, pool_ratio, Bt)     # (Bt*Nk, Bt*N2)
    shift_bd = _make_shift_blockdiag(H1, W1, Bt)               # (9*Bt*N1, Bt*N1)
    masks = _make_head_masks(num_heads, C1)                    # (2H, 2C1)

    f32, bf16 = jnp.float32, jnp.bfloat16

    # packed small parameters: 26 -> 14 kernel inputs / DMA descriptors.
    c1_stack = jnp.stack([params['norm1_g'], params['norm1_b'],
                          params['proj_b'],
                          params['norm3_g'], params['norm3_b'],
                          params['fc2_b']]).astype(f32)        # (6, C1)
    c2_stack = jnp.stack([params['norm2_g'], params['norm2_b'],
                          params['sr_b'],
                          params['attn_norm_g'],
                          params['attn_norm_b']]).astype(f32)  # (5, C2)
    hid_stack = jnp.concatenate(
        [params['fc1_b'][None], params['dw_b'][None], params['dw_w']],
        axis=0).astype(f32)                                    # (11, hidden)

    # bf16 matmul operands (f32 accumulation in-kernel). Scale folded into q_w;
    # zero padding folds the k/v lane offsets into the MXU.
    zeros_c1 = jnp.zeros((C1, C1), f32)
    q_w_pad = jnp.concatenate([params['q_w'] * scale, zeros_c1],
                              axis=1).astype(bf16)             # (C1, 2C1)
    proj_w_pad = jnp.concatenate([zeros_c1, params['proj_w']],
                                 axis=0).astype(bf16)          # (2C1, C1)
    kv_w = params['kv_w'].astype(bf16)                         # (C2, 2C1)
    sr_w = params['sr_w'].astype(bf16)
    fc1_w = params['fc1_w'].astype(bf16)
    fc2_w = params['fc2_w'].astype(bf16)

    def bcast(shape):
        nd = len(shape)
        return pl.BlockSpec(shape, lambda g, _nd=nd: (0,) * _nd)

    kernel = functools.partial(
        _block_kernel, num_heads=num_heads, eps=1e-5, bt=Bt,
        n1=N1, n2=N2, nk=Nk, c1=C1, c2=C2)

    in_specs = [
        pl.BlockSpec((Bt, N1, C1), lambda g: (g, 0, 0)),   # x
        pl.BlockSpec((Bt, N2, C2), lambda g: (g, 0, 0)),   # y
        bcast((Bt * Nk, Bt * N2)),                         # pool (block-diag)
        bcast((9 * Bt * N1, Bt * N1)),                     # dwconv shift (block-diag)
        bcast((6, C1)),                                    # packed C1 params
        bcast((5, C2)),                                    # packed C2 params
        bcast((11, hidden)),                               # packed hidden params
        bcast((2 * num_heads, 2 * C1)),                    # head masks
        bcast((C1, 2 * C1)),                               # q_w (scaled, padded)
        bcast((C2, 2 * C1)),                               # kv_w (fused)
        bcast((C2, C2)),                                   # sr_w
        bcast((2 * C1, C1)),                               # proj_w (padded)
        bcast((C1, hidden)),                               # fc1_w
        bcast((hidden, C1)),                               # fc2_w
    ]

    return pl.pallas_call(
        kernel,
        out_shape=jax.ShapeDtypeStruct((B, N1, C1), jnp.float32),
        grid=(batch_grid,),
        in_specs=in_specs,
        out_specs=pl.BlockSpec((Bt, N1, C1), lambda g: (g, 0, 0)),
        compiler_params=pltpu.CompilerParams(
            dimension_semantics=("parallel",)),
    )(x, y, pool_bd, shift_bd, c1_stack, c2_stack, hid_stack, masks,
      q_w_pad, kv_w, sr_w, proj_w_pad, fc1_w, fc2_w)


# ------------------------ pure-JAX reference (checking) ------------------------

def block_forward_ref(x, y, params, H2, W2, H1, W1, num_heads, pool_ratio):
    B, N1, C1 = x.shape
    _, N2, C2 = y.shape
    d = C1 // num_heads
    scale = d ** -0.5
    eps = 1e-5

    def ln(v, g, b):
        mu = v.mean(-1, keepdims=True)
        var = ((v - mu) ** 2).mean(-1, keepdims=True)
        return (v - mu) / jnp.sqrt(var + eps) * g + b

    xg = ln(x, params['norm1_g'], params['norm1_b'])
    yg = ln(y, params['norm2_g'], params['norm2_b'])

    q = (xg @ params['q_w']).reshape(B, N1, num_heads, d).transpose(0, 2, 1, 3)

    Hp, Wp = H2 // pool_ratio, W2 // pool_ratio
    y_img = yg.reshape(B, H2, W2, C2)[:, :Hp * pool_ratio, :Wp * pool_ratio, :]
    y_pool = y_img.reshape(B, Hp, pool_ratio, Wp, pool_ratio, C2).mean(axis=(2, 4))
    y_pool = y_pool.reshape(B, Hp * Wp, C2)
    y_sr = y_pool @ params['sr_w'] + params['sr_b']
    y_a = jax.nn.gelu(ln(y_sr, params['attn_norm_g'], params['attn_norm_b']),
                      approximate=False)

    kv = (y_a @ params['kv_w']).reshape(B, -1, 2, num_heads, d).transpose(2, 0, 3, 1, 4)
    k, v = kv[0], kv[1]
    s = jnp.einsum('bhqd,bhkd->bhqk', q, k) * scale
    p = jax.nn.softmax(s, axis=-1)
    o = jnp.einsum('bhqk,bhkd->bhqd', p, v).transpose(0, 2, 1, 3).reshape(B, N1, C1)
    o = o @ params['proj_w'] + params['proj_b']

    x1 = xg + o
    x3 = ln(x1, params['norm3_g'], params['norm3_b'])

    h = x3 @ params['fc1_w'] + params['fc1_b']
    hid = h.shape[-1]
    h_img = h.reshape(B, H1, W1, hid)
    h_pad = jnp.pad(h_img, ((0, 0), (1, 1), (1, 1), (0, 0)))
    acc = jnp.zeros_like(h_img)
    for kh in range(3):
        for kw in range(3):
            acc = acc + h_pad[:, kh:kh + H1, kw:kw + W1, :] * params['dw_w'][kh * 3 + kw]
    hact = jax.nn.gelu((acc + params['dw_b']).reshape(B, N1, hid), approximate=False)
    mlp = hact @ params['fc2_w'] + params['fc2_b']
    return x3 + mlp


# -------------------------------- parameters -----------------------------------

def init_params(key, C1, C2, hidden):
    ks = jax.random.split(key, 7)

    def tn(k, shape, std=0.02):   # trunc_normal_(std=0.02)
        return (std * jax.random.truncated_normal(k, -2.0, 2.0, shape)
                ).astype(jnp.float32)

    p = {}
    for name, c in (('norm1', C1), ('norm2', C2), ('norm3', C1), ('attn_norm', C2)):
        p[f'{name}_g'] = jnp.ones((c,), jnp.float32)
        p[f'{name}_b'] = jnp.zeros((c,), jnp.float32)

    p['q_w'] = tn(ks[0], (C1, C1))                 # qkv_bias=False
    p['kv_w'] = tn(ks[1], (C2, 2 * C1))            # qkv_bias=False
    p['proj_w'] = tn(ks[2], (C1, C1))
    p['proj_b'] = jnp.zeros((C1,), jnp.float32)

    # sr: 1x1 Conv2d(C2, C2): normal(0, sqrt(2/fan_out)), fan_out = 1*1*C2
    p['sr_w'] = (jnp.sqrt(2.0 / C2)
                 * jax.random.normal(ks[3], (C2, C2))).astype(jnp.float32)
    p['sr_b'] = jnp.zeros((C2,), jnp.float32)

    p['fc1_w'] = tn(ks[4], (C1, hidden))
    p['fc1_b'] = jnp.zeros((hidden,), jnp.float32)
    p['fc2_w'] = tn(ks[5], (hidden, C1))
    p['fc2_b'] = jnp.zeros((C1,), jnp.float32)

    # depthwise 3x3: row kh*3+kw  <->  PyTorch weight[c, 0, kh, kw]; fan_out=9
    p['dw_w'] = (jnp.sqrt(2.0 / 9.0)
                 * jax.random.normal(ks[6], (9, hidden))).astype(jnp.float32)
    p['dw_b'] = jnp.zeros((hidden,), jnp.float32)
    return p


# ----------------------------------- main ---------------------------------------

if __name__ == "__main__":
    B = 2
    dim1, dim2 = 32, 16
    num_heads = 8                      # head_dim = 4
    mlp_ratio = 4.0
    hidden = int(dim1 * mlp_ratio)     # 128
    pool_ratio = 2
    H2 = W2 = 8                        # y spatial -> N2 = 64
    H1 = W1 = 4                        # x spatial -> N1 = 16
    N1, N2 = H1 * W1, H2 * W2

    key = jax.random.PRNGKey(0)
    kx, ky, kp = jax.random.split(key, 3)
    x = jax.random.normal(kx, (B, N1, dim1), dtype=jnp.float32)
    y = jax.random.normal(ky, (B, N2, dim2), dtype=jnp.float32)
    params = init_params(kp, dim1, dim2, hidden)

    fwd = jax.jit(functools.partial(block_forward,
                                    H2=H2, W2=W2, H1=H1, W1=W1,
                                    num_heads=num_heads, pool_ratio=pool_ratio))
    out = fwd(x, y, params)
    jax.block_until_ready(out)
    assert out.shape == (B, N1, dim1)

    ref = block_forward_ref(x, y, params, H2, W2, H1, W1, num_heads, pool_ratio)
    max_err = float(jnp.max(jnp.abs(out - ref)))
    assert max_err < 2e-2, f"mismatch vs pure-JAX reference: {max_err}"

    print("KERNEL_OK")
</pallas_src>

<mosaic_0001>
module attributes {stable_mosaic.version = 11 : i64} {
  func.func @_block_kernel(%arg0: i32, %arg1: memref<2x16x32xf32, #tpu.memory_space<vmem>>, %arg2: memref<2x64x16xf32, #tpu.memory_space<vmem>>, %arg3: memref<32x128xbf16, #tpu.memory_space<vmem>>, %arg4: memref<288x32xbf16, #tpu.memory_space<vmem>>, %arg5: memref<6x32xf32, #tpu.memory_space<vmem>>, %arg6: memref<5x16xf32, #tpu.memory_space<vmem>>, %arg7: memref<11x128xf32, #tpu.memory_space<vmem>>, %arg8: memref<16x64xf32, #tpu.memory_space<vmem>>, %arg9: memref<32x64xbf16, #tpu.memory_space<vmem>>, %arg10: memref<16x64xbf16, #tpu.memory_space<vmem>>, %arg11: memref<16x16xbf16, #tpu.memory_space<vmem>>, %arg12: memref<64x32xbf16, #tpu.memory_space<vmem>>, %arg13: memref<32x128xbf16, #tpu.memory_space<vmem>>, %arg14: memref<128x32xbf16, #tpu.memory_space<vmem>>, %arg15: memref<2x16x32xf32, #tpu.memory_space<vmem>>) attributes {dimension_semantics = [#tpu.dimension_semantics<parallel>], iteration_bounds = array<i64: 1>, scalar_prefetch = 0 : i64, scratch_operands = 0 : i64, tpu.core_type = #tpu.core_type<tc>, window_params = [{transform_indices = @transform_0, window_bounds = array<i64: 2, 16, 32>}, {transform_indices = @transform_1, window_bounds = array<i64: 2, 64, 16>}, {pipeline_mode = #tpu.pipeline_mode<synchronous>, transform_indices = @transform_2, window_bounds = array<i64: 32, 128>}, {pipeline_mode = #tpu.pipeline_mode<synchronous>, transform_indices = @transform_3, window_bounds = array<i64: 288, 32>}, {pipeline_mode = #tpu.pipeline_mode<synchronous>, transform_indices = @transform_4, window_bounds = array<i64: 6, 32>}, {pipeline_mode = #tpu.pipeline_mode<synchronous>, transform_indices = @transform_5, window_bounds = array<i64: 5, 16>}, {pipeline_mode = #tpu.pipeline_mode<synchronous>, transform_indices = @transform_6, window_bounds = array<i64: 11, 128>}, {pipeline_mode = #tpu.pipeline_mode<synchronous>, transform_indices = @transform_7, window_bounds = array<i64: 16, 64>}, {pipeline_mode = #tpu.pipeline_mode<synchronous>, transform_indices = @transform_8, window_bounds = array<i64: 32, 64>}, {pipeline_mode = #tpu.pipeline_mode<synchronous>, transform_indices = @transform_9, window_bounds = array<i64: 16, 64>}, {pipeline_mode = #tpu.pipeline_mode<synchronous>, transform_indices = @transform_10, window_bounds = array<i64: 16, 16>}, {pipeline_mode = #tpu.pipeline_mode<synchronous>, transform_indices = @transform_11, window_bounds = array<i64: 64, 32>}, {pipeline_mode = #tpu.pipeline_mode<synchronous>, transform_indices = @transform_12, window_bounds = array<i64: 32, 128>}, {pipeline_mode = #tpu.pipeline_mode<synchronous>, transform_indices = @transform_13, window_bounds = array<i64: 128, 32>}, {transform_indices = @transform_14, window_bounds = array<i64: 2, 16, 32>}]} {
    %c0 = arith.constant 0 : index
    %c0_0 = arith.constant 0 : index
    %0 = vector.load %arg5[%c0, %c0_0] : memref<6x32xf32, #tpu.memory_space<vmem>>, vector<6x32xf32>
    %c0_1 = arith.constant 0 : index
    %c0_2 = arith.constant 0 : index
    %1 = vector.load %arg6[%c0_1, %c0_2] : memref<5x16xf32, #tpu.memory_space<vmem>>, vector<5x16xf32>
    %c0_3 = arith.constant 0 : index
    %c0_4 = arith.constant 0 : index
    %2 = vector.load %arg7[%c0_3, %c0_4] : memref<11x128xf32, #tpu.memory_space<vmem>>, vector<11x128xf32>
    %c0_5 = arith.constant 0 : index
    %c0_6 = arith.constant 0 : index
    %3 = vector.load %arg8[%c0_5, %c0_6] : memref<16x64xf32, #tpu.memory_space<vmem>>, vector<16x64xf32>
    %c0_7 = arith.constant 0 : index
    %c0_8 = arith.constant 0 : index
    %c0_9 = arith.constant 0 : index
    %4 = vector.load %arg1[%c0_7, %c0_8, %c0_9] : memref<2x16x32xf32, #tpu.memory_space<vmem>>, vector<2x16x32xf32>
    %5 = vector.shape_cast %4 : vector<2x16x32xf32> to vector<32x32xf32>
    %6 = vector.extract_strided_slice %0 {offsets = [0, 0], sizes = [1, 32], strides = [1, 1]} : vector<6x32xf32> to vector<1x32xf32>
    %7 = vector.extract_strided_slice %0 {offsets = [1, 0], sizes = [1, 32], strides = [1, 1]} : vector<6x32xf32> to vector<1x32xf32>
    %cst = arith.constant dense<0.000000e+00> : vector<32xf32>
    %8 = vector.multi_reduction <add>, %5, %cst [1] : vector<32x32xf32> to vector<32xf32>
    %9 = vector.shape_cast %8 : vector<32xf32> to vector<32x1xf32>
    %cst_10 = arith.constant 3.200000e+01 : f32
    %10 = vector.broadcast %cst_10 : f32 to vector<32x1xf32>
    %11 = arith.divf %9, %10 : vector<32x1xf32>
    %12 = vector.broadcast %11 : vector<32x1xf32> to vector<32x32xf32>
    %13 = arith.subf %5, %12 : vector<32x32xf32>
    %14 = arith.mulf %13, %13 : vector<32x32xf32>
    %cst_11 = arith.constant dense<0.000000e+00> : vector<32xf32>
    %15 = vector.multi_reduction <add>, %14, %cst_11 [1] : vector<32x32xf32> to vector<32xf32>
    %16 = vector.shape_cast %15 : vector<32xf32> to vector<32x1xf32>
    %cst_12 = arith.constant 3.200000e+01 : f32
    %17 = vector.broadcast %cst_12 : f32 to vector<32x1xf32>
    %18 = arith.divf %16, %17 : vector<32x1xf32>
    %cst_13 = arith.constant 9.99999974E-6 : f32
    %19 = vector.broadcast %cst_13 : f32 to vector<32x1xf32>
    %20 = arith.addf %18, %19 : vector<32x1xf32>
    %21 = math.rsqrt %20 : vector<32x1xf32>
    %22 = vector.broadcast %21 : vector<32x1xf32> to vector<32x32xf32>
    %23 = arith.mulf %13, %22 : vector<32x32xf32>
    %24 = vector.broadcast %6 : vector<1x32xf32> to vector<32x32xf32>
    %25 = arith.mulf %23, %24 : vector<32x32xf32>
    %26 = vector.broadcast %7 : vector<1x32xf32> to vector<32x32xf32>
    %27 = arith.addf %25, %26 : vector<32x32xf32>
    %c0_14 = arith.constant 0 : index
    %c0_15 = arith.constant 0 : index
    %c0_16 = arith.constant 0 : index
    %28 = vector.load %arg2[%c0_14, %c0_15, %c0_16] : memref<2x64x16xf32, #tpu.memory_space<vmem>>, vector<2x64x16xf32>
    %29 = vector.shape_cast %28 : vector<2x64x16xf32> to vector<128x16xf32>
    %30 = vector.extract_strided_slice %1 {offsets = [0, 0], sizes = [1, 16], strides = [1, 1]} : vector<5x16xf32> to vector<1x16xf32>
    %31 = vector.extract_strided_slice %1 {offsets = [1, 0], sizes = [1, 16], strides = [1, 1]} : vector<5x16xf32> to vector<1x16xf32>
    %cst_17 = arith.constant dense<0.000000e+00> : vector<128xf32>
    %32 = vector.multi_reduction <add>, %29, %cst_17 [1] : vector<128x16xf32> to vector<128xf32>
    %33 = vector.shape_cast %32 : vector<128xf32> to vector<128x1xf32>
    %cst_18 = arith.constant 1.600000e+01 : f32
    %34 = vector.broadcast %cst_18 : f32 to vector<128x1xf32>
    %35 = arith.divf %33, %34 : vector<128x1xf32>
    %36 = vector.broadcast %35 : vector<128x1xf32> to vector<128x16xf32>
    %37 = arith.subf %29, %36 : vector<128x16xf32>
    %38 = arith.mulf %37, %37 : vector<128x16xf32>
    %cst_19 = arith.constant dense<0.000000e+00> : vector<128xf32>
    %39 = vector.multi_reduction <add>, %38, %cst_19 [1] : vector<128x16xf32> to vector<128xf32>
    %40 = vector.shape_cast %39 : vector<128xf32> to vector<128x1xf32>
    %cst_20 = arith.constant 1.600000e+01 : f32
    %41 = vector.broadcast %cst_20 : f32 to vector<128x1xf32>
    %42 = arith.divf %40, %41 : vector<128x1xf32>
    %cst_21 = arith.constant 9.99999974E-6 : f32
    %43 = vector.broadcast %cst_21 : f32 to vector<128x1xf32>
    %44 = arith.addf %42, %43 : vector<128x1xf32>
    %45 = math.rsqrt %44 : vector<128x1xf32>
    %46 = vector.broadcast %45 : vector<128x1xf32> to vector<128x16xf32>
    %47 = arith.mulf %37, %46 : vector<128x16xf32>
    %48 = vector.broadcast %30 : vector<1x16xf32> to vector<128x16xf32>
    %49 = arith.mulf %47, %48 : vector<128x16xf32>
    %50 = vector.broadcast %31 : vector<1x16xf32> to vector<128x16xf32>
    %51 = arith.addf %49, %50 : vector<128x16xf32>
    %c0_22 = arith.constant 0 : index
    %c0_23 = arith.constant 0 : index
    %52 = vector.load %arg3[%c0_22, %c0_23] : memref<32x128xbf16, #tpu.memory_space<vmem>>, vector<32x128xbf16>
    %53 = arith.truncf %51 : vector<128x16xf32> to vector<128x16xbf16>
    %cst_24 = arith.constant dense<0.000000e+00> : vector<32x16xf32>
    %54 = tpu.matmul %52, %53, %cst_24 {dimension_numbers = #tpu.dot_dimension_numbers<[1], [0], [0], [1], [0, 0, 1, 1], [], []>} : vector<32x128xbf16>, vector<128x16xbf16>, vector<32x16xf32> -> vector<32x16xf32>
    %55 = arith.truncf %54 : vector<32x16xf32> to vector<32x16xbf16>
    %c0_25 = arith.constant 0 : index
    %c0_26 = arith.constant 0 : index
    %56 = vector.load %arg11[%c0_25, %c0_26] : memref<16x16xbf16, #tpu.memory_space<vmem>>, vector<16x16xbf16>
    %cst_27 = arith.constant dense<0.000000e+00> : vector<32x16xf32>
    %57 = tpu.matmul %55, %56, %cst_27 {dimension_numbers = #tpu.dot_dimension_numbers<[1], [0], [0], [1], [0, 0, 1, 1], [], []>} : vector<32x16xbf16>, vector<16x16xbf16>, vector<32x16xf32> -> vector<32x16xf32>
    %58 = vector.extract_strided_slice %1 {offsets = [2, 0], sizes = [1, 16], strides = [1, 1]} : vector<5x16xf32> to vector<1x16xf32>
    %59 = vector.broadcast %58 : vector<1x16xf32> to vector<32x16xf32>
    %60 = arith.addf %57, %59 : vector<32x16xf32>
    %61 = vector.extract_strided_slice %1 {offsets = [3, 0], sizes = [1, 16], strides = [1, 1]} : vector<5x16xf32> to vector<1x16xf32>
    %62 = vector.extract_strided_slice %1 {offsets = [4, 0], sizes = [1, 16], strides = [1, 1]} : vector<5x16xf32> to vector<1x16xf32>
    %cst_28 = arith.constant dense<0.000000e+00> : vector<32xf32>
    %63 = vector.multi_reduction <add>, %60, %cst_28 [1] : vector<32x16xf32> to vector<32xf32>
    %64 = vector.shape_cast %63 : vector<32xf32> to vector<32x1xf32>
    %cst_29 = arith.constant 1.600000e+01 : f32
    %65 = vector.broadcast %cst_29 : f32 to vector<32x1xf32>
    %66 = arith.divf %64, %65 : vector<32x1xf32>
    %67 = vector.broadcast %66 : vector<32x1xf32> to vector<32x16xf32>
    %68 = arith.subf %60, %67 : vector<32x16xf32>
    %69 = arith.mulf %68, %68 : vector<32x16xf32>
    %cst_30 = arith.constant dense<0.000000e+00> : vector<32xf32>
    %70 = vector.multi_reduction <add>, %69, %cst_30 [1] : vector<32x16xf32> to vector<32xf32>
    %71 = vector.shape_cast %70 : vector<32xf32> to vector<32x1xf32>
    %cst_31 = arith.constant 1.600000e+01 : f32
    %72 = vector.broadcast %cst_31 : f32 to vector<32x1xf32>
    %73 = arith.divf %71, %72 : vector<32x1xf32>
    %cst_32 = arith.constant 9.99999974E-6 : f32
    %74 = vector.broadcast %cst_32 : f32 to vector<32x1xf32>
    %75 = arith.addf %73, %74 : vector<32x1xf32>
    %76 = math.rsqrt %75 : vector<32x1xf32>
    %77 = vector.broadcast %76 : vector<32x1xf32> to vector<32x16xf32>
    %78 = arith.mulf %68, %77 : vector<32x16xf32>
    %79 = vector.broadcast %61 : vector<1x16xf32> to vector<32x16xf32>
    %80 = arith.mulf %78, %79 : vector<32x16xf32>
    %81 = vector.broadcast %62 : vector<1x16xf32> to vector<32x16xf32>
    %82 = arith.addf %80, %81 : vector<32x16xf32>
    %cst_33 = arith.constant 5.000000e-01 : f32
    %83 = vector.broadcast %cst_33 : f32 to vector<32x16xf32>
    %84 = arith.mulf %83, %82 : vector<32x16xf32>
    %cst_34 = arith.constant 0.707106769 : f32
    %85 = vector.broadcast %cst_34 : f32 to vector<32x16xf32>
    %86 = arith.mulf %82, %85 : vector<32x16xf32>
    %87 = math.absf %86 : vector<32x16xf32>
    %cst_35 = arith.constant 0.327591091 : f32
    %88 = vector.broadcast %cst_35 : f32 to vector<32x16xf32>
    %89 = arith.mulf %88, %87 : vector<32x16xf32>
    %cst_36 = arith.constant 1.000000e+00 : f32
    %90 = vector.broadcast %cst_36 : f32 to vector<32x16xf32>
    %91 = arith.addf %90, %89 : vector<32x16xf32>
    %cst_37 = arith.constant 1.000000e+00 : f32
    %92 = vector.broadcast %cst_37 : f32 to vector<32x16xf32>
    %93 = arith.divf %92, %91 : vector<32x16xf32>
    %cst_38 = arith.constant 1.06140542 : f32
    %94 = vector.broadcast %cst_38 : f32 to vector<32x16xf32>
    %95 = arith.mulf %93, %94 : vector<32x16xf32>
    %cst_39 = arith.constant -1.45315206 : f32
    %96 = vector.broadcast %cst_39 : f32 to vector<32x16xf32>
    %97 = arith.addf %96, %95 : vector<32x16xf32>
    %98 = arith.mulf %93, %97 : vector<32x16xf32>
    %cst_40 = arith.constant 1.42141378 : f32
    %99 = vector.broadcast %cst_40 : f32 to vector<32x16xf32>
    %100 = arith.addf %99, %98 : vector<32x16xf32>
    %101 = arith.mulf %93, %100 : vector<32x16xf32>
    %cst_41 = arith.constant -0.284496725 : f32
    %102 = vector.broadcast %cst_41 : f32 to vector<32x16xf32>
    %103 = arith.addf %102, %101 : vector<32x16xf32>
    %104 = arith.mulf %93, %103 : vector<32x16xf32>
    %cst_42 = arith.constant 0.254829586 : f32
    %105 = vector.broadcast %cst_42 : f32 to vector<32x16xf32>
    %106 = arith.addf %105, %104 : vector<32x16xf32>
    %107 = arith.mulf %93, %106 : vector<32x16xf32>
    %cst_43 = arith.constant 0.000000e+00 : f32
    %108 = vector.broadcast %cst_43 : f32 to vector<32x16xf32>
    %109 = arith.subf %108, %87 : vector<32x16xf32>
    %110 = arith.mulf %109, %87 : vector<32x16xf32>
    %111 = math.exp %110 : vector<32x16xf32>
    %112 = arith.mulf %107, %111 : vector<32x16xf32>
    %cst_44 = arith.constant 1.000000e+00 : f32
    %113 = vector.broadcast %cst_44 : f32 to vector<32x16xf32>
    %114 = arith.subf %113, %112 : vector<32x16xf32>
    %cst_45 = arith.constant 0.000000e+00 : f32
    %115 = vector.broadcast %cst_45 : f32 to vector<32x16xf32>
    %116 = arith.cmpf oge, %86, %115 : vector<32x16xf32>
    %cst_46 = arith.constant 0.000000e+00 : f32
    %117 = vector.broadcast %cst_46 : f32 to vector<32x16xf32>
    %118 = arith.subf %117, %114 : vector<32x16xf32>
    %119 = arith.select %116, %114, %118 : vector<32x16xi1>, vector<32x16xf32>
    %cst_47 = arith.constant 1.000000e+00 : f32
    %120 = vector.broadcast %cst_47 : f32 to vector<32x16xf32>
    %121 = arith.addf %120, %119 : vector<32x16xf32>
    %122 = arith.mulf %84, %121 : vector<32x16xf32>
    %123 = arith.truncf %27 : vector<32x32xf32> to vector<32x32xbf16>
    %c0_48 = arith.constant 0 : index
    %c0_49 = arith.constant 0 : index
    %124 = vector.load %arg9[%c0_48, %c0_49] : memref<32x64xbf16, #tpu.memory_space<vmem>>, vector<32x64xbf16>
    %cst_50 = arith.constant dense<0.000000e+00> : vector<32x64xf32>
    %125 = tpu.matmul %123, %124, %cst_50 {dimension_numbers = #tpu.dot_dimension_numbers<[1], [0], [0], [1], [0, 0, 1, 1], [], []>} : vector<32x32xbf16>, vector<32x64xbf16>, vector<32x64xf32> -> vector<32x64xf32>
    %126 = arith.truncf %122 : vector<32x16xf32> to vector<32x16xbf16>
    %c0_51 = arith.constant 0 : index
    %c0_52 = arith.constant 0 : index
    %127 = vector.load %arg10[%c0_51, %c0_52] : memref<16x64xbf16, #tpu.memory_space<vmem>>, vector<16x64xbf16>
    %cst_53 = arith.constant dense<0.000000e+00> : vector<32x64xf32>
    %128 = tpu.matmul %126, %127, %cst_53 {dimension_numbers = #tpu.dot_dimension_numbers<[1], [0], [0], [1], [0, 0, 1, 1], [], []>} : vector<32x16xbf16>, vector<16x64xbf16>, vector<32x64xf32> -> vector<32x64xf32>
    %129 = vector.extract_strided_slice %125 {offsets = [0, 0], sizes = [16, 64], strides = [1, 1]} : vector<32x64xf32> to vector<16x64xf32>
    %130 = vector.extract_strided_slice %128 {offsets = [0, 0], sizes = [16, 64], strides = [1, 1]} : vector<32x64xf32> to vector<16x64xf32>
    %131 = arith.truncf %130 : vector<16x64xf32> to vector<16x64xbf16>
    %132 = vector.extract_strided_slice %3 {offsets = [0, 0], sizes = [1, 64], strides = [1, 1]} : vector<16x64xf32> to vector<1x64xf32>
    %133 = vector.broadcast %132 : vector<1x64xf32> to vector<16x64xf32>
    %134 = arith.mulf %129, %133 : vector<16x64xf32>
    %135 = vector.extract_strided_slice %3 {offsets = [1, 0], sizes = [1, 64], strides = [1, 1]} : vector<16x64xf32> to vector<1x64xf32>
    %136 = vector.broadcast %135 : vector<1x64xf32> to vector<16x64xf32>
    %137 = arith.mulf %129, %136 : vector<16x64xf32>
    %138 = vector.extract_strided_slice %3 {offsets = [2, 0], sizes = [1, 64], strides = [1, 1]} : vector<16x64xf32> to vector<1x64xf32>
    %139 = vector.broadcast %138 : vector<1x64xf32> to vector<16x64xf32>
    %140 = arith.mulf %129, %139 : vector<16x64xf32>
    %141 = vector.extract_strided_slice %3 {offsets = [3, 0], sizes = [1, 64], strides = [1, 1]} : vector<16x64xf32> to vector<1x64xf32>
    %142 = vector.broadcast %141 : vector<1x64xf32> to vector<16x64xf32>
    %143 = arith.mulf %129, %142 : vector<16x64xf32>
    %144 = vector.extract_strided_slice %3 {offsets = [4, 0], sizes = [1, 64], strides = [1, 1]} : vector<16x64xf32> to vector<1x64xf32>
    %145 = vector.broadcast %144 : vector<1x64xf32> to vector<16x64xf32>
    %146 = arith.mulf %129, %145 : vector<16x64xf32>
    %147 = vector.extract_strided_slice %3 {offsets = [5, 0], sizes = [1, 64], strides = [1, 1]} : vector<16x64xf32> to vector<1x64xf32>
    %148 = vector.broadcast %147 : vector<1x64xf32> to vector<16x64xf32>
    %149 = arith.mulf %129, %148 : vector<16x64xf32>
    %150 = vector.extract_strided_slice %3 {offsets = [6, 0], sizes = [1, 64], strides = [1, 1]} : vector<16x64xf32> to vector<1x64xf32>
    %151 = vector.broadcast %150 : vector<1x64xf32> to vector<16x64xf32>
    %152 = arith.mulf %129, %151 : vector<16x64xf32>
    %153 = vector.extract_strided_slice %3 {offsets = [7, 0], sizes = [1, 64], strides = [1, 1]} : vector<16x64xf32> to vector<1x64xf32>
    %154 = vector.broadcast %153 : vector<1x64xf32> to vector<16x64xf32>
    %155 = arith.mulf %129, %154 : vector<16x64xf32>
    %156 = tpu.concatenate %134, %137, %140, %143, %146, %149, %152, %155 in 0 : vector<16x64xf32>, vector<16x64xf32>, vector<16x64xf32>, vector<16x64xf32>, vector<16x64xf32>, vector<16x64xf32>, vector<16x64xf32>, vector<16x64xf32> -> vector<128x64xf32>
    %157 = arith.truncf %156 : vector<128x64xf32> to vector<128x64xbf16>
    %cst_54 = arith.constant dense<0.000000e+00> : vector<128x16xf32>
    %158 = tpu.matmul %157, %131, %cst_54 {dimension_numbers = #tpu.dot_dimension_numbers<[1], [1], [0], [0], [0, 0, 1, 0], [], []>} : vector<128x64xbf16>, vector<16x64xbf16>, vector<128x16xf32> -> vector<128x16xf32>
    %cst_55 = arith.constant dense<0xFF800000> : vector<128xf32>
    %159 = vector.multi_reduction <maximumf>, %158, %cst_55 [1] : vector<128x16xf32> to vector<128xf32>
    %160 = vector.shape_cast %159 : vector<128xf32> to vector<128x1xf32>
    %161 = vector.broadcast %160 : vector<128x1xf32> to vector<128x16xf32>
    %162 = arith.subf %158, %161 : vector<128x16xf32>
    %163 = math.exp %162 : vector<128x16xf32>
    %cst_56 = arith.constant dense<0.000000e+00> : vector<128xf32>
    %164 = vector.multi_reduction <add>, %163, %cst_56 [1] : vector<128x16xf32> to vector<128xf32>
    %165 = vector.shape_cast %164 : vector<128xf32> to vector<128x1xf32>
    %166 = tpu.reciprocal %165 {approx = true} : vector<128x1xf32> -> vector<128x1xf32>
    %167 = vector.broadcast %166 : vector<128x1xf32> to vector<128x16xf32>
    %168 = arith.mulf %163, %167 : vector<128x16xf32>
    %169 = arith.truncf %168 : vector<128x16xf32> to vector<128x16xbf16>
    %cst_57 = arith.constant dense<0.000000e+00> : vector<128x64xf32>
    %170 = tpu.matmul %169, %131, %cst_57 {dimension_numbers = #tpu.dot_dimension_numbers<[1], [0], [0], [1], [0, 0, 1, 1], [], []>} : vector<128x16xbf16>, vector<16x64xbf16>, vector<128x64xf32> -> vector<128x64xf32>
    %cst_58 = arith.constant 0.000000e+00 : f32
    %171 = vector.broadcast %cst_58 : f32 to vector<16x64xf32>
    %172 = vector.extract_strided_slice %170 {offsets = [0, 0], sizes = [16, 64], strides = [1, 1]} : vector<128x64xf32> to vector<16x64xf32>
    %173 = vector.extract_strided_slice %3 {offsets = [8, 0], sizes = [1, 64], strides = [1, 1]} : vector<16x64xf32> to vector<1x64xf32>
    %174 = vector.broadcast %173 : vector<1x64xf32> to vector<16x64xf32>
    %175 = arith.mulf %172, %174 : vector<16x64xf32>
    %176 = arith.addf %171, %175 : vector<16x64xf32>
    %177 = vector.extract_strided_slice %170 {offsets = [16, 0], sizes = [16, 64], strides = [1, 1]} : vector<128x64xf32> to vector<16x64xf32>
    %178 = vector.extract_strided_slice %3 {offsets = [9, 0], sizes = [1, 64], strides = [1, 1]} : vector<16x64xf32> to vector<1x64xf32>
    %179 = vector.broadcast %178 : vector<1x64xf32> to vector<16x64xf32>
    %180 = arith.mulf %177, %179 : vector<16x64xf32>
    %181 = arith.addf %176, %180 : vector<16x64xf32>
    %182 = vector.extract_strided_slice %170 {offsets = [32, 0], sizes = [16, 64], strides = [1, 1]} : vector<128x64xf32> to vector<16x64xf32>
    %183 = vector.extract_strided_slice %3 {offsets = [10, 0], sizes = [1, 64], strides = [1, 1]} : vector<16x64xf32> to vector<1x64xf32>
    %184 = vector.broadcast %183 : vector<1x64xf32> to vector<16x64xf32>
    %185 = arith.mulf %182, %184 : vector<16x64xf32>
    %186 = arith.addf %181, %185 : vector<16x64xf32>
    %187 = vector.extract_strided_slice %170 {offsets = [48, 0], sizes = [16, 64], strides = [1, 1]} : vector<128x64xf32> to vector<16x64xf32>
    %188 = vector.extract_strided_slice %3 {offsets = [11, 0], sizes = [1, 64], strides = [1, 1]} : vector<16x64xf32> to vector<1x64xf32>
    %189 = vector.broadcast %188 : vector<1x64xf32> to vector<16x64xf32>
    %190 = arith.mulf %187, %189 : vector<16x64xf32>
    %191 = arith.addf %186, %190 : vector<16x64xf32>
    %192 = vector.extract_strided_slice %170 {offsets = [64, 0], sizes = [16, 64], strides = [1, 1]} : vector<128x64xf32> to vector<16x64xf32>
    %193 = vector.extract_strided_slice %3 {offsets = [12, 0], sizes = [1, 64], strides = [1, 1]} : vector<16x64xf32> to vector<1x64xf32>
    %194 = vector.broadcast %193 : vector<1x64xf32> to vector<16x64xf32>
    %195 = arith.mulf %192, %194 : vector<16x64xf32>
    %196 = arith.addf %191, %195 : vector<16x64xf32>
    %197 = vector.extract_strided_slice %170 {offsets = [80, 0], sizes = [16, 64], strides = [1, 1]} : vector<128x64xf32> to vector<16x64xf32>
    %198 = vector.extract_strided_slice %3 {offsets = [13, 0], sizes = [1, 64], strides = [1, 1]} : vector<16x64xf32> to vector<1x64xf32>
    %199 = vector.broadcast %198 : vector<1x64xf32> to vector<16x64xf32>
    %200 = arith.mulf %197, %199 : vector<16x64xf32>
    %201 = arith.addf %196, %200 : vector<16x64xf32>
    %202 = vector.extract_strided_slice %170 {offsets = [96, 0], sizes = [16, 64], strides = [1, 1]} : vector<128x64xf32> to vector<16x64xf32>
    %203 = vector.extract_strided_slice %3 {offsets = [14, 0], sizes = [1, 64], strides = [1, 1]} : vector<16x64xf32> to vector<1x64xf32>
    %204 = vector.broadcast %203 : vector<1x64xf32> to vector<16x64xf32>
    %205 = arith.mulf %202, %204 : vector<16x64xf32>
    %206 = arith.addf %201, %205 : vector<16x64xf32>
    %207 = vector.extract_strided_slice %170 {offsets = [112, 0], sizes = [16, 64], strides = [1, 1]} : vector<128x64xf32> to vector<16x64xf32>
    %208 = vector.extract_strided_slice %3 {offsets = [15, 0], sizes = [1, 64], strides = [1, 1]} : vector<16x64xf32> to vector<1x64xf32>
    %209 = vector.broadcast %208 : vector<1x64xf32> to vector<16x64xf32>
    %210 = arith.mulf %207, %209 : vector<16x64xf32>
    %211 = arith.addf %206, %210 : vector<16x64xf32>
    %212 = vector.extract_strided_slice %125 {offsets = [16, 0], sizes = [16, 64], strides = [1, 1]} : vector<32x64xf32> to vector<16x64xf32>
    %213 = vector.extract_strided_slice %128 {offsets = [16, 0], sizes = [16, 64], strides = [1, 1]} : vector<32x64xf32> to vector<16x64xf32>
    %214 = arith.truncf %213 : vector<16x64xf32> to vector<16x64xbf16>
    %215 = vector.extract_strided_slice %3 {offsets = [0, 0], sizes = [1, 64], strides = [1, 1]} : vector<16x64xf32> to vector<1x64xf32>
    %216 = vector.broadcast %215 : vector<1x64xf32> to vector<16x64xf32>
    %217 = arith.mulf %212, %216 : vector<16x64xf32>
    %218 = vector.extract_strided_slice %3 {offsets = [1, 0], sizes = [1, 64], strides = [1, 1]} : vector<16x64xf32> to vector<1x64xf32>
    %219 = vector.broadcast %218 : vector<1x64xf32> to vector<16x64xf32>
    %220 = arith.mulf %212, %219 : vector<16x64xf32>
    %221 = vector.extract_strided_slice %3 {offsets = [2, 0], sizes = [1, 64], strides = [1, 1]} : vector<16x64xf32> to vector<1x64xf32>
    %222 = vector.broadcast %221 : vector<1x64xf32> to vector<16x64xf32>
    %223 = arith.mulf %212, %222 : vector<16x64xf32>
    %224 = vector.extract_strided_slice %3 {offsets = [3, 0], sizes = [1, 64], strides = [1, 1]} : vector<16x64xf32> to vector<1x64xf32>
    %225 = vector.broadcast %224 : vector<1x64xf32> to vector<16x64xf32>
    %226 = arith.mulf %212, %225 : vector<16x64xf32>
    %227 = vector.extract_strided_slice %3 {offsets = [4, 0], sizes = [1, 64], strides = [1, 1]} : vector<16x64xf32> to vector<1x64xf32>
    %228 = vector.broadcast %227 : vector<1x64xf32> to vector<16x64xf32>
    %229 = arith.mulf %212, %228 : vector<16x64xf32>
    %230 = vector.extract_strided_slice %3 {offsets = [5, 0], sizes = [1, 64], strides = [1, 1]} : vector<16x64xf32> to vector<1x64xf32>
    %231 = vector.broadcast %230 : vector<1x64xf32> to vector<16x64xf32>
    %232 = arith.mulf %212, %231 : vector<16x64xf32>
    %233 = vector.extract_strided_slice %3 {offsets = [6, 0], sizes = [1, 64], strides = [1, 1]} : vector<16x64xf32> to vector<1x64xf32>
    %234 = vector.broadcast %233 : vector<1x64xf32> to vector<16x64xf32>
    %235 = arith.mulf %212, %234 : vector<16x64xf32>
    %236 = vector.extract_strided_slice %3 {offsets = [7, 0], sizes = [1, 64], strides = [1, 1]} : vector<16x64xf32> to vector<1x64xf32>
    %237 = vector.broadcast %236 : vector<1x64xf32> to vector<16x64xf32>
    %238 = arith.mulf %212, %237 : vector<16x64xf32>
    %239 = tpu.concatenate %217, %220, %223, %226, %229, %232, %235, %238 in 0 : vector<16x64xf32>, vector<16x64xf32>, vector<16x64xf32>, vector<16x64xf32>, vector<16x64xf32>, vector<16x64xf32>, vector<16x64xf32>, vector<16x64xf32> -> vector<128x64xf32>
    %240 = arith.truncf %239 : vector<128x64xf32> to vector<128x64xbf16>
    %cst_59 = arith.constant dense<0.000000e+00> : vector<128x16xf32>
    %241 = tpu.matmul %240, %214, %cst_59 {dimension_numbers = #tpu.dot_dimension_numbers<[1], [1], [0], [0], [0, 0, 1, 0], [], []>} : vector<128x64xbf16>, vector<16x64xbf16>, vector<128x16xf32> -> vector<128x16xf32>
    %cst_60 = arith.constant dense<0xFF800000> : vector<128xf32>
    %242 = vector.multi_reduction <maximumf>, %241, %cst_60 [1] : vector<128x16xf32> to vector<128xf32>
    %243 = vector.shape_cast %242 : vector<128xf32> to vector<128x1xf32>
    %244 = vector.broadcast %243 : vector<128x1xf32> to vector<128x16xf32>
    %245 = arith.subf %241, %244 : vector<128x16xf32>
    %246 = math.exp %245 : vector<128x16xf32>
    %cst_61 = arith.constant dense<0.000000e+00> : vector<128xf32>
    %247 = vector.multi_reduction <add>, %246, %cst_61 [1] : vector<128x16xf32> to vector<128xf32>
    %248 = vector.shape_cast %247 : vector<128xf32> to vector<128x1xf32>
    %249 = tpu.reciprocal %248 {approx = true} : vector<128x1xf32> -> vector<128x1xf32>
    %250 = vector.broadcast %249 : vector<128x1xf32> to vector<128x16xf32>
    %251 = arith.mulf %246, %250 : vector<128x16xf32>
    %252 = arith.truncf %251 : vector<128x16xf32> to vector<128x16xbf16>
    %cst_62 = arith.constant dense<0.000000e+00> : vector<128x64xf32>
    %253 = tpu.matmul %252, %214, %cst_62 {dimension_numbers = #tpu.dot_dimension_numbers<[1], [0], [0], [1], [0, 0, 1, 1], [], []>} : vector<128x16xbf16>, vector<16x64xbf16>, vector<128x64xf32> -> vector<128x64xf32>
    %cst_63 = arith.constant 0.000000e+00 : f32
    %254 = vector.broadcast %cst_63 : f32 to vector<16x64xf32>
    %255 = vector.extract_strided_slice %253 {offsets = [0, 0], sizes = [16, 64], strides = [1, 1]} : vector<128x64xf32> to vector<16x64xf32>
    %256 = vector.extract_strided_slice %3 {offsets = [8, 0], sizes = [1, 64], strides = [1, 1]} : vector<16x64xf32> to vector<1x64xf32>
    %257 = vector.broadcast %256 : vector<1x64xf32> to vector<16x64xf32>
    %258 = arith.mulf %255, %257 : vector<16x64xf32>
    %259 = arith.addf %254, %258 : vector<16x64xf32>
    %260 = vector.extract_strided_slice %253 {offsets = [16, 0], sizes = [16, 64], strides = [1, 1]} : vector<128x64xf32> to vector<16x64xf32>
    %261 = vector.extract_strided_slice %3 {offsets = [9, 0], sizes = [1, 64], strides = [1, 1]} : vector<16x64xf32> to vector<1x64xf32>
    %262 = vector.broadcast %261 : vector<1x64xf32> to vector<16x64xf32>
    %263 = arith.mulf %260, %262 : vector<16x64xf32>
    %264 = arith.addf %259, %263 : vector<16x64xf32>
    %265 = vector.extract_strided_slice %253 {offsets = [32, 0], sizes = [16, 64], strides = [1, 1]} : vector<128x64xf32> to vector<16x64xf32>
    %266 = vector.extract_strided_slice %3 {offsets = [10, 0], sizes = [1, 64], strides = [1, 1]} : vector<16x64xf32> to vector<1x64xf32>
    %267 = vector.broadcast %266 : vector<1x64xf32> to vector<16x64xf32>
    %268 = arith.mulf %265, %267 : vector<16x64xf32>
    %269 = arith.addf %264, %268 : vector<16x64xf32>
    %270 = vector.extract_strided_slice %253 {offsets = [48, 0], sizes = [16, 64], strides = [1, 1]} : vector<128x64xf32> to vector<16x64xf32>
    %271 = vector.extract_strided_slice %3 {offsets = [11, 0], sizes = [1, 64], strides = [1, 1]} : vector<16x64xf32> to vector<1x64xf32>
    %272 = vector.broadcast %271 : vector<1x64xf32> to vector<16x64xf32>
    %273 = arith.mulf %270, %272 : vector<16x64xf32>
    %274 = arith.addf %269, %273 : vector<16x64xf32>
    %275 = vector.extract_strided_slice %253 {offsets = [64, 0], sizes = [16, 64], strides = [1, 1]} : vector<128x64xf32> to vector<16x64xf32>
    %276 = vector.extract_strided_slice %3 {offsets = [12, 0], sizes = [1, 64], strides = [1, 1]} : vector<16x64xf32> to vector<1x64xf32>
    %277 = vector.broadcast %276 : vector<1x64xf32> to vector<16x64xf32>
    %278 = arith.mulf %275, %277 : vector<16x64xf32>
    %279 = arith.addf %274, %278 : vector<16x64xf32>
    %280 = vector.extract_strided_slice %253 {offsets = [80, 0], sizes = [16, 64], strides = [1, 1]} : vector<128x64xf32> to vector<16x64xf32>
    %281 = vector.extract_strided_slice %3 {offsets = [13, 0], sizes = [1, 64], strides = [1, 1]} : vector<16x64xf32> to vector<1x64xf32>
    %282 = vector.broadcast %281 : vector<1x64xf32> to vector<16x64xf32>
    %283 = arith.mulf %280, %282 : vector<16x64xf32>
    %284 = arith.addf %279, %283 : vector<16x64xf32>
    %285 = vector.extract_strided_slice %253 {offsets = [96, 0], sizes = [16, 64], strides = [1, 1]} : vector<128x64xf32> to vector<16x64xf32>
    %286 = vector.extract_strided_slice %3 {offsets = [14, 0], sizes = [1, 64], strides = [1, 1]} : vector<16x64xf32> to vector<1x64xf32>
    %287 = vector.broadcast %286 : vector<1x64xf32> to vector<16x64xf32>
    %288 = arith.mulf %285, %287 : vector<16x64xf32>
    %289 = arith.addf %284, %288 : vector<16x64xf32>
    %290 = vector.extract_strided_slice %253 {offsets = [112, 0], sizes = [16, 64], strides = [1, 1]} : vector<128x64xf32> to vector<16x64xf32>
    %291 = vector.extract_strided_slice %3 {offsets = [15, 0], sizes = [1, 64], strides = [1, 1]} : vector<16x64xf32> to vector<1x64xf32>
    %292 = vector.broadcast %291 : vector<1x64xf32> to vector<16x64xf32>
    %293 = arith.mulf %290, %292 : vector<16x64xf32>
    %294 = arith.addf %289, %293 : vector<16x64xf32>
    %295 = tpu.concatenate %211, %294 in 0 : vector<16x64xf32>, vector<16x64xf32> -> vector<32x64xf32>
    %296 = arith.truncf %295 : vector<32x64xf32> to vector<32x64xbf16>
    %c0_64 = arith.constant 0 : index
    %c0_65 = arith.constant 0 : index
    %297 = vector.load %arg12[%c0_64, %c0_65] : memref<64x32xbf16, #tpu.memory_space<vmem>>, vector<64x32xbf16>
    %cst_66 = arith.constant dense<0.000000e+00> : vector<32x32xf32>
    %298 = tpu.matmul %296, %297, %cst_66 {dimension_numbers = #tpu.dot_dimension_numbers<[1], [0], [0], [1], [0, 0, 1, 1], [], []>} : vector<32x64xbf16>, vector<64x32xbf16>, vector<32x32xf32> -> vector<32x32xf32>
    %299 = vector.extract_strided_slice %0 {offsets = [2, 0], sizes = [1, 32], strides = [1, 1]} : vector<6x32xf32> to vector<1x32xf32>
    %300 = vector.broadcast %299 : vector<1x32xf32> to vector<32x32xf32>
    %301 = arith.addf %298, %300 : vector<32x32xf32>
    %302 = arith.addf %27, %301 : vector<32x32xf32>
    %303 = vector.extract_strided_slice %0 {offsets = [3, 0], sizes = [1, 32], strides = [1, 1]} : vector<6x32xf32> to vector<1x32xf32>
    %304 = vector.extract_strided_slice %0 {offsets = [4, 0], sizes = [1, 32], strides = [1, 1]} : vector<6x32xf32> to vector<1x32xf32>
    %cst_67 = arith.constant dense<0.000000e+00> : vector<32xf32>
    %305 = vector.multi_reduction <add>, %302, %cst_67 [1] : vector<32x32xf32> to vector<32xf32>
    %306 = vector.shape_cast %305 : vector<32xf32> to vector<32x1xf32>
    %cst_68 = arith.constant 3.200000e+01 : f32
    %307 = vector.broadcast %cst_68 : f32 to vector<32x1xf32>
    %308 = arith.divf %306, %307 : vector<32x1xf32>
    %309 = vector.broadcast %308 : vector<32x1xf32> to vector<32x32xf32>
    %310 = arith.subf %302, %309 : vector<32x32xf32>
    %311 = arith.mulf %310, %310 : vector<32x32xf32>
    %cst_69 = arith.constant dense<0.000000e+00> : vector<32xf32>
    %312 = vector.multi_reduction <add>, %311, %cst_69 [1] : vector<32x32xf32> to vector<32xf32>
    %313 = vector.shape_cast %312 : vector<32xf32> to vector<32x1xf32>
    %cst_70 = arith.constant 3.200000e+01 : f32
    %314 = vector.broadcast %cst_70 : f32 to vector<32x1xf32>
    %315 = arith.divf %313, %314 : vector<32x1xf32>
    %cst_71 = arith.constant 9.99999974E-6 : f32
    %316 = vector.broadcast %cst_71 : f32 to vector<32x1xf32>
    %317 = arith.addf %315, %316 : vector<32x1xf32>
    %318 = math.rsqrt %317 : vector<32x1xf32>
    %319 = vector.broadcast %318 : vector<32x1xf32> to vector<32x32xf32>
    %320 = arith.mulf %310, %319 : vector<32x32xf32>
    %321 = vector.broadcast %303 : vector<1x32xf32> to vector<32x32xf32>
    %322 = arith.mulf %320, %321 : vector<32x32xf32>
    %323 = vector.broadcast %304 : vector<1x32xf32> to vector<32x32xf32>
    %324 = arith.addf %322, %323 : vector<32x32xf32>
    %325 = arith.truncf %324 : vector<32x32xf32> to vector<32x32xbf16>
    %c0_72 = arith.constant 0 : index
    %c0_73 = arith.constant 0 : index
    %326 = vector.load %arg13[%c0_72, %c0_73] : memref<32x128xbf16, #tpu.memory_space<vmem>>, vector<32x128xbf16>
    %cst_74 = arith.constant dense<0.000000e+00> : vector<32x128xf32>
    %327 = tpu.matmul %325, %326, %cst_74 {dimension_numbers = #tpu.dot_dimension_numbers<[1], [0], [0], [1], [0, 0, 1, 1], [], []>} : vector<32x32xbf16>, vector<32x128xbf16>, vector<32x128xf32> -> vector<32x128xf32>
    %328 = vector.extract_strided_slice %2 {offsets = [0, 0], sizes = [1, 128], strides = [1, 1]} : vector<11x128xf32> to vector<1x128xf32>
    %329 = vector.broadcast %328 : vector<1x128xf32> to vector<32x128xf32>
    %330 = arith.addf %327, %329 : vector<32x128xf32>
    %c0_75 = arith.constant 0 : index
    %c0_76 = arith.constant 0 : index
    %331 = vector.load %arg4[%c0_75, %c0_76] : memref<288x32xbf16, #tpu.memory_space<vmem>>, vector<288x32xbf16>
    %332 = arith.truncf %330 : vector<32x128xf32> to vector<32x128xbf16>
    %cst_77 = arith.constant dense<0.000000e+00> : vector<288x128xf32>
    %333 = tpu.matmul %331, %332, %cst_77 {dimension_numbers = #tpu.dot_dimension_numbers<[1], [0], [0], [1], [0, 0, 1, 1], [], []>} : vector<288x32xbf16>, vector<32x128xbf16>, vector<288x128xf32> -> vector<288x128xf32>
    %cst_78 = arith.constant 0.000000e+00 : f32
    %334 = vector.broadcast %cst_78 : f32 to vector<32x128xf32>
    %335 = vector.extract_strided_slice %333 {offsets = [0, 0], sizes = [32, 128], strides = [1, 1]} : vector<288x128xf32> to vector<32x128xf32>
    %336 = vector.extract_strided_slice %2 {offsets = [2, 0], sizes = [1, 128], strides = [1, 1]} : vector<11x128xf32> to vector<1x128xf32>
    %337 = vector.broadcast %336 : vector<1x128xf32> to vector<32x128xf32>
    %338 = arith.mulf %335, %337 : vector<32x128xf32>
    %339 = arith.addf %334, %338 : vector<32x128xf32>
    %340 = vector.extract_strided_slice %333 {offsets = [32, 0], sizes = [32, 128], strides = [1, 1]} : vector<288x128xf32> to vector<32x128xf32>
    %341 = vector.extract_strided_slice %2 {offsets = [3, 0], sizes = [1, 128], strides = [1, 1]} : vector<11x128xf32> to vector<1x128xf32>
    %342 = vector.broadcast %341 : vector<1x128xf32> to vector<32x128xf32>
    %343 = arith.mulf %340, %342 : vector<32x128xf32>
    %344 = arith.addf %339, %343 : vector<32x128xf32>
    %345 = vector.extract_strided_slice %333 {offsets = [64, 0], sizes = [32, 128], strides = [1, 1]} : vector<288x128xf32> to vector<32x128xf32>
    %346 = vector.extract_strided_slice %2 {offsets = [4, 0], sizes = [1, 128], strides = [1, 1]} : vector<11x128xf32> to vector<1x128xf32>
    %347 = vector.broadcast %346 : vector<1x128xf32> to vector<32x128xf32>
    %348 = arith.mulf %345, %347 : vector<32x128xf32>
    %349 = arith.addf %344, %348 : vector<32x128xf32>
    %350 = vector.extract_strided_slice %333 {offsets = [96, 0], sizes = [32, 128], strides = [1, 1]} : vector<288x128xf32> to vector<32x128xf32>
    %351 = vector.extract_strided_slice %2 {offsets = [5, 0], sizes = [1, 128], strides = [1, 1]} : vector<11x128xf32> to vector<1x128xf32>
    %352 = vector.broadcast %351 : vector<1x128xf32> to vector<32x128xf32>
    %353 = arith.mulf %350, %352 : vector<32x128xf32>
    %354 = arith.addf %349, %353 : vector<32x128xf32>
    %355 = vector.extract_strided_slice %333 {offsets = [128, 0], sizes = [32, 128], strides = [1, 1]} : vector<288x128xf32> to vector<32x128xf32>
    %356 = vector.extract_strided_slice %2 {offsets = [6, 0], sizes = [1, 128], strides = [1, 1]} : vector<11x128xf32> to vector<1x128xf32>
    %357 = vector.broadcast %356 : vector<1x128xf32> to vector<32x128xf32>
    %358 = arith.mulf %355, %357 : vector<32x128xf32>
    %359 = arith.addf %354, %358 : vector<32x128xf32>
    %360 = vector.extract_strided_slice %333 {offsets = [160, 0], sizes = [32, 128], strides = [1, 1]} : vector<288x128xf32> to vector<32x128xf32>
    %361 = vector.extract_strided_slice %2 {offsets = [7, 0], sizes = [1, 128], strides = [1, 1]} : vector<11x128xf32> to vector<1x128xf32>
    %362 = vector.broadcast %361 : vector<1x128xf32> to vector<32x128xf32>
    %363 = arith.mulf %360, %362 : vector<32x128xf32>
    %364 = arith.addf %359, %363 : vector<32x128xf32>
    %365 = vector.extract_strided_slice %333 {offsets = [192, 0], sizes = [32, 128], strides = [1, 1]} : vector<288x128xf32> to vector<32x128xf32>
    %366 = vector.extract_strided_slice %2 {offsets = [8, 0], sizes = [1, 128], strides = [1, 1]} : vector<11x128xf32> to vector<1x128xf32>
    %367 = vector.broadcast %366 : vector<1x128xf32> to vector<32x128xf32>
    %368 = arith.mulf %365, %367 : vector<32x128xf32>
    %369 = arith.addf %364, %368 : vector<32x128xf32>
    %370 = vector.extract_strided_slice %333 {offsets = [224, 0], sizes = [32, 128], strides = [1, 1]} : vector<288x128xf32> to vector<32x128xf32>
    %371 = vector.extract_strided_slice %2 {offsets = [9, 0], sizes = [1, 128], strides = [1, 1]} : vector<11x128xf32> to vector<1x128xf32>
    %372 = vector.broadcast %371 : vector<1x128xf32> to vector<32x128xf32>
    %373 = arith.mulf %370, %372 : vector<32x128xf32>
    %374 = arith.addf %369, %373 : vector<32x128xf32>
    %375 = vector.extract_strided_slice %333 {offsets = [256, 0], sizes = [32, 128], strides = [1, 1]} : vector<288x128xf32> to vector<32x128xf32>
    %376 = vector.extract_strided_slice %2 {offsets = [10, 0], sizes = [1, 128], strides = [1, 1]} : vector<11x128xf32> to vector<1x128xf32>
    %377 = vector.broadcast %376 : vector<1x128xf32> to vector<32x128xf32>
    %378 = arith.mulf %375, %377 : vector<32x128xf32>
    %379 = arith.addf %374, %378 : vector<32x128xf32>
    %380 = vector.extract_strided_slice %2 {offsets = [1, 0], sizes = [1, 128], strides = [1, 1]} : vector<11x128xf32> to vector<1x128xf32>
    %381 = vector.broadcast %380 : vector<1x128xf32> to vector<32x128xf32>
    %382 = arith.addf %379, %381 : vector<32x128xf32>
    %cst_79 = arith.constant 5.000000e-01 : f32
    %383 = vector.broadcast %cst_79 : f32 to vector<32x128xf32>
    %384 = arith.mulf %383, %382 : vector<32x128xf32>
    %cst_80 = arith.constant 0.707106769 : f32
    %385 = vector.broadcast %cst_80 : f32 to vector<32x128xf32>
    %386 = arith.mulf %382, %385 : vector<32x128xf32>
    %387 = math.absf %386 : vector<32x128xf32>
    %cst_81 = arith.constant 0.327591091 : f32
    %388 = vector.broadcast %cst_81 : f32 to vector<32x128xf32>
    %389 = arith.mulf %388, %387 : vector<32x128xf32>
    %cst_82 = arith.constant 1.000000e+00 : f32
    %390 = vector.broadcast %cst_82 : f32 to vector<32x128xf32>
    %391 = arith.addf %390, %389 : vector<32x128xf32>
    %cst_83 = arith.constant 1.000000e+00 : f32
    %392 = vector.broadcast %cst_83 : f32 to vector<32x128xf32>
    %393 = arith.divf %392, %391 : vector<32x128xf32>
    %cst_84 = arith.constant 1.06140542 : f32
    %394 = vector.broadcast %cst_84 : f32 to vector<32x128xf32>
    %395 = arith.mulf %393, %394 : vector<32x128xf32>
    %cst_85 = arith.constant -1.45315206 : f32
    %396 = vector.broadcast %cst_85 : f32 to vector<32x128xf32>
    %397 = arith.addf %396, %395 : vector<32x128xf32>
    %398 = arith.mulf %393, %397 : vector<32x128xf32>
    %cst_86 = arith.constant 1.42141378 : f32
    %399 = vector.broadcast %cst_86 : f32 to vector<32x128xf32>
    %400 = arith.addf %399, %398 : vector<32x128xf32>
    %401 = arith.mulf %393, %400 : vector<32x128xf32>
    %cst_87 = arith.constant -0.284496725 : f32
    %402 = vector.broadcast %cst_87 : f32 to vector<32x128xf32>
    %403 = arith.addf %402, %401 : vector<32x128xf32>
    %404 = arith.mulf %393, %403 : vector<32x128xf32>
    %cst_88 = arith.constant 0.254829586 : f32
    %405 = vector.broadcast %cst_88 : f32 to vector<32x128xf32>
    %406 = arith.addf %405, %404 : vector<32x128xf32>
    %407 = arith.mulf %393, %406 : vector<32x128xf32>
    %cst_89 = arith.constant 0.000000e+00 : f32
    %408 = vector.broadcast %cst_89 : f32 to vector<32x128xf32>
    %409 = arith.subf %408, %387 : vector<32x128xf32>
    %410 = arith.mulf %409, %387 : vector<32x128xf32>
    %411 = math.exp %410 : vector<32x128xf32>
    %412 = arith.mulf %407, %411 : vector<32x128xf32>
    %cst_90 = arith.constant 1.000000e+00 : f32
    %413 = vector.broadcast %cst_90 : f32 to vector<32x128xf32>
    %414 = arith.subf %413, %412 : vector<32x128xf32>
    %cst_91 = arith.constant 0.000000e+00 : f32
    %415 = vector.broadcast %cst_91 : f32 to vector<32x128xf32>
    %416 = arith.cmpf oge, %386, %415 : vector<32x128xf32>
    %cst_92 = arith.constant 0.000000e+00 : f32
    %417 = vector.broadcast %cst_92 : f32 to vector<32x128xf32>
    %418 = arith.subf %417, %414 : vector<32x128xf32>
    %419 = arith.select %416, %414, %418 : vector<32x128xi1>, vector<32x128xf32>
    %cst_93 = arith.constant 1.000000e+00 : f32
    %420 = vector.broadcast %cst_93 : f32 to vector<32x128xf32>
    %421 = arith.addf %420, %419 : vector<32x128xf32>
    %422 = arith.mulf %384, %421 : vector<32x128xf32>
    %423 = arith.truncf %422 : vector<32x128xf32> to vector<32x128xbf16>
    %c0_94 = arith.constant 0 : index
    %c0_95 = arith.constant 0 : index
    %424 = vector.load %arg14[%c0_94, %c0_95] : memref<128x32xbf16, #tpu.memory_space<vmem>>, vector<128x32xbf16>
    %cst_96 = arith.constant dense<0.000000e+00> : vector<32x32xf32>
    %425 = tpu.matmul %423, %424, %cst_96 {dimension_numbers = #tpu.dot_dimension_numbers<[1], [0], [0], [1], [0, 0, 1, 1], [], []>} : vector<32x128xbf16>, vector<128x32xbf16>, vector<32x32xf32> -> vector<32x32xf32>
    %426 = vector.extract_strided_slice %0 {offsets = [5, 0], sizes = [1, 32], strides = [1, 1]} : vector<6x32xf32> to vector<1x32xf32>
    %427 = vector.broadcast %426 : vector<1x32xf32> to vector<32x32xf32>
    %428 = arith.addf %425, %427 : vector<32x32xf32>
    %429 = arith.addf %324, %428 : vector<32x32xf32>
    %430 = vector.shape_cast %429 : vector<32x32xf32> to vector<2x16x32xf32>
    %c0_97 = arith.constant 0 : index
    %c0_98 = arith.constant 0 : index
    %c0_99 = arith.constant 0 : index
    %431 = vector.load %arg15[%c0_97, %c0_98, %c0_99] : memref<2x16x32xf32, #tpu.memory_space<vmem>>, vector<2x16x32xf32>
    tpu.vector_store %arg15[%c0_97, %c0_98, %c0_99], %430 {strides = array<i32>} : memref<2x16x32xf32, #tpu.memory_space<vmem>>, vector<2x16x32xf32>,
    return
  }
  func.func @transform_0(%arg0: i32) -> (i32, i32, i32) {
    %c0_i32 = arith.constant 0 : i32
    %c0_i32_0 = arith.constant 0 : i32
    %c0_i32_1 = arith.constant 0 : i32
    return %arg0, %c0_i32, %c0_i32_0 : i32, i32, i32
  }
  func.func @transform_1(%arg0: i32) -> (i32, i32, i32) {
    %c0_i32 = arith.constant 0 : i32
    %c0_i32_0 = arith.constant 0 : i32
    %c0_i32_1 = arith.constant 0 : i32
    return %arg0, %c0_i32, %c0_i32_0 : i32, i32, i32
  }
  func.func @transform_2(%arg0: i32) -> (i32, i32) {
    %c0_i32 = arith.constant 0 : i32
    %c0_i32_0 = arith.constant 0 : i32
    %c0_i32_1 = arith.constant 0 : i32
    return %c0_i32, %c0_i32_0 : i32, i32
  }
  func.func @transform_3(%arg0: i32) -> (i32, i32) {
    %c0_i32 = arith.constant 0 : i32
    %c0_i32_0 = arith.constant 0 : i32
    %c0_i32_1 = arith.constant 0 : i32
    return %c0_i32, %c0_i32_0 : i32, i32
  }
  func.func @transform_4(%arg0: i32) -> (i32, i32) {
    %c0_i32 = arith.constant 0 : i32
    %c0_i32_0 = arith.constant 0 : i32
    %c0_i32_1 = arith.constant 0 : i32
    return %c0_i32, %c0_i32_0 : i32, i32
  }
  func.func @transform_5(%arg0: i32) -> (i32, i32) {
    %c0_i32 = arith.constant 0 : i32
    %c0_i32_0 = arith.constant 0 : i32
    %c0_i32_1 = arith.constant 0 : i32
    return %c0_i32, %c0_i32_0 : i32, i32
  }
  func.func @transform_6(%arg0: i32) -> (i32, i32) {
    %c0_i32 = arith.constant 0 : i32
    %c0_i32_0 = arith.constant 0 : i32
    %c0_i32_1 = arith.constant 0 : i32
    return %c0_i32, %c0_i32_0 : i32, i32
  }
  func.func @transform_7(%arg0: i32) -> (i32, i32) {
    %c0_i32 = arith.constant 0 : i32
    %c0_i32_0 = arith.constant 0 : i32
    %c0_i32_1 = arith.constant 0 : i32
    return %c0_i32, %c0_i32_0 : i32, i32
  }
  func.func @transform_8(%arg0: i32) -> (i32, i32) {
    %c0_i32 = arith.constant 0 : i32
    %c0_i32_0 = arith.constant 0 : i32
    %c0_i32_1 = arith.constant 0 : i32
    return %c0_i32, %c0_i32_0 : i32, i32
  }
  func.func @transform_9(%arg0: i32) -> (i32, i32) {
    %c0_i32 = arith.constant 0 : i32
    %c0_i32_0 = arith.constant 0 : i32
    %c0_i32_1 = arith.constant 0 : i32
    return %c0_i32, %c0_i32_0 : i32, i32
  }
  func.func @transform_10(%arg0: i32) -> (i32, i32) {
    %c0_i32 = arith.constant 0 : i32
    %c0_i32_0 = arith.constant 0 : i32
    %c0_i32_1 = arith.constant 0 : i32
    return %c0_i32, %c0_i32_0 : i32, i32
  }
  func.func @transform_11(%arg0: i32) -> (i32, i32) {
    %c0_i32 = arith.constant 0 : i32
    %c0_i32_0 = arith.constant 0 : i32
    %c0_i32_1 = arith.constant 0 : i32
    return %c0_i32, %c0_i32_0 : i32, i32
  }
  func.func @transform_12(%arg0: i32) -> (i32, i32) {
    %c0_i32 = arith.constant 0 : i32
    %c0_i32_0 = arith.constant 0 : i32
    %c0_i32_1 = arith.constant 0 : i32
    return %c0_i32, %c0_i32_0 : i32, i32
  }
  func.func @transform_13(%arg0: i32) -> (i32, i32) {
    %c0_i32 = arith.constant 0 : i32
    %c0_i32_0 = arith.constant 0 : i32
    %c0_i32_1 = arith.constant 0 : i32
    return %c0_i32, %c0_i32_0 : i32, i32
  }
  func.func @transform_14(%arg0: i32) -> (i32, i32, i32) {
    %c0_i32 = arith.constant 0 : i32
    %c0_i32_0 = arith.constant 0 : i32
    %c0_i32_1 = arith.constant 0 : i32
    return %arg0, %c0_i32, %c0_i32_0 : i32, i32, i32
  }
}

</mosaic_0001>

<bundles_post_ra>
// kernel: block_forward.1
= control target key start
LH: loop header
LB: loop body
LE: loop exit
PB: predicated region body
PF: predicated region fallthrough
CT: control target
= control target key end

     0   :  { %vm145_vm0 = vcmask 130048   ;;  %s4738_s0 = inlined_call_operand.vmem [shape: f32[2,16,32], index: 0, kind: input, shape index: {}]   ;;  %s4739_s1 = inlined_call_operand.vmem [shape: f32[2,64,16], index: 1, kind: input, shape index: {}]   ;;  %s4740_s2 = inlined_call_operand.vmem [shape: bf16[32,128], index: 2, kind: input, shape index: {}]   ;;  %s4741_s3 = inlined_call_operand.vmem [shape: bf16[288,32], index: 3, kind: input, shape index: {}]   ;;  %s4742_s4 = inlined_call_operand.vmem [shape: f32[6,32], index: 4, kind: input, shape index: {}]   ;;  %s4743_s5 = inlined_call_operand.vmem [shape: f32[5,16], index: 5, kind: input, shape index: {}]   ;;  %s4744_s6 = inlined_call_operand.vmem [shape: f32[11,128], index: 6, kind: input, shape index: {}]   ;;  %s4745_s7 = inlined_call_operand.vmem [shape: f32[16,64], index: 7, kind: input, shape index: {}]   ;;  %s4746_s8 = inlined_call_operand.vmem [shape: bf16[32,64], index: 8, kind: input, shape index: {}]   ;;  %s4747_s9 = inlined_call_operand.vmem [shape: bf16[16,64], index: 9, kind: input, shape index: {}]   ;;  %s4748_s10 = inlined_call_operand.vmem [shape: bf16[16,16], index: 10, kind: input, shape index: {}]   ;;  %s4749_s11 = inlined_call_operand.vmem [shape: bf16[64,32], index: 11, kind: input, shape index: {}]   ;;  %s4750_s12 = inlined_call_operand.vmem [shape: bf16[32,128], index: 12, kind: input, shape index: {}]   ;;  %s4751_s13 = inlined_call_operand.vmem [shape: bf16[128,32], index: 13, kind: input, shape index: {}]   ;;  %s4752_s14 = inlined_call_operand.hbm [shape: f32[2,16,32], index: 14, kind: output, shape index: {}]  }
   0x1   :  { %v129_v0 = vld [vmem:[%s4739_s1] sm:$0xff]  ;;  %v131_v1 = vld [vmem:[%s4739_s1 + $0x10] sm:$0xff]  ;;  %v130_v2 = vld [vmem:[%s4739_s1 + $0x8] sm:$0xff] }
   0x2   :  { %v146_v3 = vsel %vm145_vm0, %v129_v0, 0.0  ;;  %v152_v4 = vsel %vm145_vm0, %v131_v1, 0.0  ;;  %v132_v5 = vld [vmem:[%s4739_s1 + $0x18] sm:$0xff]  ;;  %v3623_v6 = vld [vmem:[%s4739_s1 + $0x20] sm:$0xff]  ;;  %v3628_v7 = vld [vmem:[%s4739_s1 + $0x28] sm:$0xff]  ;;  %v149_v8 = vsel %vm145_vm0, %v130_v2, 0.0 }
   0x3   :  { %147 = vadd.xlane.f32.xlu0 %v146_v3  ;;  %153 = vadd.xlane.f32.xlu1 %v152_v4  ;;  %v155_v9 = vsel %vm145_vm0, %v132_v5, 0.0  ;;  %v158_v10 = vsel %vm145_vm0, %v3623_v6, 0.0  ;;  %v3637_v11 = vld [vmem:[%s4739_s1 + $0x30] sm:$0xff]  ;;  %v3642_v12 = vld [vmem:[%s4739_s1 + $0x38] sm:$0xff]  ;;  %v3647_v13 = vld [vmem:[%s4739_s1 + $0x40] sm:$0xff]  ;;  %v161_v14 = vsel %vm145_vm0, %v3628_v7, 0.0 }
   0x4   :  { %v164_v15 = vsel %vm145_vm0, %v3637_v11, 0.0  ;;  %v167_v16 = vsel %vm145_vm0, %v3642_v12, 0.0  ;;  %v3658_v17 = vld [vmem:[%s4739_s1 + $0x48] sm:$0xff]  ;;  %v3663_v18 = vld [vmem:[%s4739_s1 + $0x50] sm:$0xff]  ;;  %v3668_v19 = vld [vmem:[%s4739_s1 + $0x58] sm:$0xff]  ;;  %v170_v20 = vsel %vm145_vm0, %v3647_v13, 0.0 }
   0x5   :  { %v173_v21 = vsel %vm145_vm0, %v3658_v17, 0.0  ;;  %v176_v22 = vsel %vm145_vm0, %v3663_v18, 0.0  ;;  %v3679_v23 = vld [vmem:[%s4739_s1 + $0x60] sm:$0xff]  ;;  %v3684_v24 = vld [vmem:[%s4739_s1 + $0x68] sm:$0xff]  ;;  %v3689_v25 = vld [vmem:[%s4739_s1 + $0x70] sm:$0xff]  ;;  %v179_v26 = vsel %vm145_vm0, %v3668_v19, 0.0 }
   0x6   :  { %v182_v27 = vsel %vm145_vm0, %v3679_v23, 0.0  ;;  %v185_v28 = vsel %vm145_vm0, %v3684_v24, 0.0  ;;  %v3700_v29 = vld [vmem:[%s4739_s1 + $0x78] sm:$0xff]  ;;  %v188_v30 = vsel %vm145_vm0, %v3689_v25, 0.0 }
   0x7   :  { %150 = vadd.xlane.f32.xlu0 %v149_v8  ;;  %156 = vadd.xlane.f32.xlu1 %v155_v9  ;;  %v191_v31 = vsel %vm145_vm0, %v3700_v29, 0.0 }
   0xb   :  { %159 = vadd.xlane.f32.xlu0 %v158_v10  ;;  %162 = vadd.xlane.f32.xlu1 %v161_v14 }
   0xf   :  { %165 = vadd.xlane.f32.xlu0 %v164_v15  ;;  %168 = vadd.xlane.f32.xlu1 %v167_v16 }
  0x13   :  { %171 = vadd.xlane.f32.xlu0 %v170_v20  ;;  %174 = vadd.xlane.f32.xlu1 %v173_v21 }
  0x17   :  { %177 = vadd.xlane.f32.xlu0 %v176_v22  ;;  %180 = vadd.xlane.f32.xlu1 %v179_v26 }
  0x1b   :  { %183 = vadd.xlane.f32.xlu0 %v182_v27  ;;  %186 = vadd.xlane.f32.xlu1 %v185_v28 }
  0x1f   :  { %189 = vadd.xlane.f32.xlu0 %v188_v30  ;;  %192 = vadd.xlane.f32.xlu1 %v191_v31 }
  0x20   :  { %19 = vsyncpa [#allocation3], 0  ;;  %vm59_vm1 = vcmask 261120   ;;  %vm908_vm6 = vcmask 523264  }
  0x90   :  { %v148_v32 = vpop.xlane.xlu0 %147  ;;  %v154_v33 = vpop.xlane.xlu1 %153 }
  0x91   :  { %v195_v34 = vmul.f32 0.0625, %v148_v32  ;;  %v197_v35 = vmul.f32 0.0625, %v154_v33 }
  0x93   :  { %v3706_v36 = vsub.f32 %v129_v0, %v195_v34  ;;  %v3708_v37 = vsub.f32 %v131_v1, %v197_v35 }
  0x94   :  { %v151_v38 = vpop.xlane.xlu0 %150  ;;  %v157_v39 = vpop.xlane.xlu1 %156 }
  0x95   :  { %v196_v40 = vmul.f32 0.0625, %v151_v38  ;;  %v198_v41 = vmul.f32 0.0625, %v157_v39  ;;  %v227_v42 = vmul.f32 %v3706_v36, %v3706_v36  ;;  %v229_v43 = vmul.f32 %v3708_v37, %v3708_v37 }
  0x97   :  { %v3714_v44 = vsub.f32 %v130_v2, %v196_v40  ;;  %v3716_v45 = vsub.f32 %v132_v5, %v198_v41  ;;  %v243_v46 = vsel %vm145_vm0, %v227_v42, 0.0  ;;  %v249_v49 = vsel %vm145_vm0, %v229_v43, 0.0 }
  0x98   :  { %244 = vadd.xlane.f32.xlu0 %v243_v46  ;;  %v160_v47 = vpop.xlane.xlu0 %159  ;;  %v163_v48 = vpop.xlane.xlu1 %162 }
  0x99   :  { %v199_v50 = vmul.f32 0.0625, %v160_v47  ;;  %v200_v51 = vmul.f32 0.0625, %v163_v48  ;;  %v228_v52 = vmul.f32 %v3714_v44, %v3714_v44  ;;  %v230_v53 = vmul.f32 %v3716_v45, %v3716_v45 }
  0x9b   :  { %v3725_v54 = vsub.f32 %v3623_v6, %v199_v50  ;;  %v3728_v55 = vsub.f32 %v3628_v7, %v200_v51  ;;  %v246_v56 = vsel %vm145_vm0, %v228_v52, 0.0  ;;  %v252_v59 = vsel %vm145_vm0, %v230_v53, 0.0 }
  0x9c   :  { %250 = vadd.xlane.f32.xlu0 %v249_v49  ;;  %247 = vadd.xlane.f32.xlu1 %v246_v56  ;;  %v166_v57 = vpop.xlane.xlu0 %165  ;;  %v169_v58 = vpop.xlane.xlu1 %168 }
  0x9d   :  { %v201_v60 = vmul.f32 0.0625, %v166_v57  ;;  %v202_v61 = vmul.f32 0.0625, %v169_v58  ;;  %v231_v62 = vmul.f32 %v3725_v54, %v3725_v54  ;;  %v232_v63 = vmul.f32 %v3728_v55, %v3728_v55 }
  0x9f   :  { %v3737_v0 = vsub.f32 %v3637_v11, %v201_v60  ;;  %v3740_v1 = vsub.f32 %v3642_v12, %v202_v61  ;;  %v255_v2 = vsel %vm145_vm0, %v231_v62, 0.0  ;;  %v258_v5 = vsel %vm145_vm0, %v232_v63, 0.0 }
  0xa0   :  { %253 = vadd.xlane.f32.xlu1 %v252_v59  ;;  %256 = vadd.xlane.f32.xlu0 %v255_v2  ;;  %v172_v3 = vpop.xlane.xlu0 %171  ;;  %v175_v4 = vpop.xlane.xlu1 %174  ;;  %v113_v60 = vlaneseq }
  0xa1   :  { %v203_v6 = vmul.f32 0.0625, %v172_v3  ;;  %v204_v7 = vmul.f32 0.0625, %v175_v4  ;;  %v233_v8 = vmul.f32 %v3737_v0, %v3737_v0  ;;  %v234_v9 = vmul.f32 %v3740_v1, %v3740_v1 }
  0xa3   :  { %v3749_v10 = vsub.f32 %v3647_v13, %v203_v6  ;;  %v3752_v11 = vsub.f32 %v3658_v17, %v204_v7  ;;  %v261_v12 = vsel %vm145_vm0, %v233_v8, 0.0  ;;  %v264_v16 = vsel %vm145_vm0, %v234_v9, 0.0 }
  0xa4   :  { %259 = vadd.xlane.f32.xlu1 %v258_v5  ;;  %262 = vadd.xlane.f32.xlu0 %v261_v12  ;;  %v178_v14 = vpop.xlane.xlu0 %177  ;;  %v181_v15 = vpop.xlane.xlu1 %180  ;;  %v3801_v5 = vshrl.u32 %v113_v60, 7 }
  0xa5   :  { %v205_v20 = vmul.f32 0.0625, %v178_v14  ;;  %v206_v21 = vmul.f32 0.0625, %v181_v15  ;;  %v235_v22 = vmul.f32 %v3749_v10, %v3749_v10  ;;  %v236_v13 = vmul.f32 %v3752_v11, %v3752_v11 }
  0xa6   :  { %v3804_v15 = vsub.s32 0, %v3801_v5 }
  0xa7   :  { %v3761_v26 = vsub.f32 %v3663_v18, %v205_v20  ;;  %v3764_v17 = vsub.f32 %v3668_v19, %v206_v21  ;;  %v267_v27 = vsel %vm145_vm0, %v235_v22, 0.0  ;;  %v270_v31 = vsel %vm145_vm0, %v236_v13, 0.0  ;;  %v3809_v21 = vld [vmem:[%s4743_s5] sm:$0x1f] }
  0xa8   :  { %265 = vadd.xlane.f32.xlu1 %v264_v16  ;;  %268 = vadd.xlane.f32.xlu0 %v267_v27  ;;  %v184_v28 = vpop.xlane.xlu0 %183  ;;  %v187_v30 = vpop.xlane.xlu1 %186 }
  0xa9   :  { %v207_v32 = vmul.f32 0.0625, %v184_v28  ;;  %v208_v33 = vmul.f32 0.0625, %v187_v30  ;;  %v237_v34 = vmul.f32 %v3761_v26, %v3761_v26  ;;  %v238_v18 = vmul.f32 %v3764_v17, %v3764_v17 }
  0xab   :  { %v3773_v35 = vsub.f32 %v3679_v23, %v207_v32  ;;  %v3776_v19 = vsub.f32 %v3684_v24, %v208_v33  ;;  %v273_v38 = vsel %vm145_vm0, %v237_v34, 0.0  ;;  %v276_v41 = vsel %vm145_vm0, %v238_v18, 0.0 }
  0xac   :  { %271 = vadd.xlane.f32.xlu1 %v270_v31  ;;  %274 = vadd.xlane.f32.xlu0 %v273_v38  ;;  %v190_v39 = vpop.xlane.xlu0 %189  ;;  %v193_v40 = vpop.xlane.xlu1 %192  ;;  %v3812_v31 = vsub.s32 1, %v3801_v5  ;;  %v3817_v33 = vrot.slane %v3809_v21, %v3804_v15 }
  0xad   :  { %v209_v42 = vmul.f32 0.0625, %v190_v39  ;;  %v210_v43 = vmul.f32 0.0625, %v193_v40  ;;  %v239_v46 = vmul.f32 %v3773_v35, %v3773_v35  ;;  %v240_v23 = vmul.f32 %v3776_v19, %v3776_v19 }
  0xaf   :  { %v3785_v47 = vsub.f32 %v3689_v25, %v209_v42  ;;  %v3788_v24 = vsub.f32 %v3700_v29, %v210_v43  ;;  %v279_v48 = vsel %vm145_vm0, %v239_v46, 0.0  ;;  %v282_v49 = vsel %vm145_vm0, %v240_v23, 0.0  ;;  %v3249_v29 = vld [vmem:[%s4740_s2] sm:$0xff]  }
  0xb0   :  { %277 = vadd.xlane.f32.xlu1 %v276_v41  ;;  %280 = vadd.xlane.f32.xlu0 %v279_v48 }
  0xb1   :  { %v241_v50 = vmul.f32 %v3785_v47, %v3785_v47  ;;  %v242_v51 = vmul.f32 %v3788_v24, %v3788_v24  ;;  %3066 = vmatprep.mubr.bf16.mxu0 %v3249_v29 }
  0xb3   :  { %v285_v52 = vsel %vm145_vm0, %v241_v50, 0.0  ;;  %v288_v25 = vsel %vm145_vm0, %v242_v51, 0.0 }
  0xb4   :  { %283 = vadd.xlane.f32.xlu1 %v282_v49  ;;  %286 = vadd.xlane.f32.xlu0 %v285_v52 }
  0xb8   :  { %289 = vadd.xlane.f32.xlu1 %v288_v25 }
 0x125   :  { %v245_v53 = vpop.xlane.xlu0 %244 }
 0x126   :  { %v291_v56 = vmul.f32 0.0625, %v245_v53 }
 0x128   :  { %v307_v57 = vadd.f32 1e-05, %v291_v56 }
 0x129   :  { %v248_v58 = vpop.xlane.xlu1 %247  ;;  %v251_v59 = vpop.xlane.xlu0 %250 }
 0x12a   :  { %3287 = vrsqrt.f32 %v307_v57  ;;  %v292_v61 = vmul.f32 0.0625, %v248_v58  ;;  %v293_v62 = vmul.f32 0.0625, %v251_v59 }
 0x12c   :  { %v308_v63 = vadd.f32 1e-05, %v292_v61  ;;  %v309_v2 = vadd.f32 1e-05, %v293_v62 }
 0x12d   :  { %v254_v3 = vpop.xlane.xlu1 %253  ;;  %v257_v4 = vpop.xlane.xlu0 %256 }
 0x12e   :  { %3289 = vrsqrt.f32 %v308_v63  ;;  %v294_v6 = vmul.f32 0.0625, %v254_v3  ;;  %v295_v7 = vmul.f32 0.0625, %v257_v4 }
 0x12f   :  { %3291 = vrsqrt.f32 %v309_v2 }
 0x130   :  { %v310_v8 = vadd.f32 1e-05, %v294_v6  ;;  %v311_v9 = vadd.f32 1e-05, %v295_v7 }
 0x131   :  { %v260_v12 = vpop.xlane.xlu1 %259  ;;  %v263_v14 = vpop.xlane.xlu0 %262 }
 0x132   :  { %3293 = vrsqrt.f32 %v310_v8  ;;  %v296_v16 = vmul.f32 0.0625, %v260_v12  ;;  %v297_v20 = vmul.f32 0.0625, %v263_v14 }
 0x133   :  { %3295 = vrsqrt.f32 %v311_v9 }
 0x134   :  { %v3288_v22 = vpop.eup %3287  ;;  %v312_v13 = vadd.f32 1e-05, %v296_v16  ;;  %v313_v27 = vadd.f32 1e-05, %v297_v20 }
 0x135   :  { %v266_v28 = vpop.xlane.xlu1 %265  ;;  %v269_v30 = vpop.xlane.xlu0 %268  ;;  %v339_v32 = vmul.f32 %v3288_v22, %v3706_v36  ;;  %v3823_v36 = vrot.slane %v3809_v21, %v3812_v31 }
 0x136   :  { %3297 = vrsqrt.f32 %v312_v13  ;;  %v298_v34 = vmul.f32 0.0625, %v266_v28  ;;  %v299_v18 = vmul.f32 0.0625, %v269_v30 }
 0x137   :  { %3299 = vrsqrt.f32 %v313_v27  ;;  %v359_v23 = vmul.f32 %v3817_v33, %v339_v32 }
 0x138   :  { %v3290_v38 = vpop.eup %3289  ;;  %v314_v39 = vadd.f32 1e-05, %v298_v34  ;;  %v315_v40 = vadd.f32 1e-05, %v299_v18 }
 0x139   :  { %v3292_v41 = vpop.eup %3291  ;;  %v272_v42 = vpop.xlane.xlu1 %271  ;;  %v340_v46 = vmul.f32 %v3290_v38, %v3714_v44  ;;  %v379_v57 = vadd.f32 %v3823_v36, %v359_v23 }
 0x13a   :  { %v275_v43 = vpop.xlane.xlu0 %274  ;;  %3301 = vrsqrt.f32 %v314_v39  ;;  %v300_v48 = vmul.f32 0.0625, %v272_v42  ;;  %v341_v50 = vmul.f32 %v3292_v41, %v3708_v37 }
 0x13b   :  { %v301_v49 = vmul.f32 0.0625, %v275_v43  ;;  %3303 = vrsqrt.f32 %v315_v40  ;;  %v360_v51 = vmul.f32 %v3817_v33, %v340_v46 }
 0x13c   :  { %v3294_v52 = vpop.eup %3293  ;;  %v316_v25 = vadd.f32 1e-05, %v300_v48  ;;  %v361_v60 = vmul.f32 %v3817_v33, %v341_v50 }
 0x13d   :  { %v317_v29 = vadd.f32 1e-05, %v301_v49  ;;  %v3296_v53 = vpop.eup %3295  ;;  %v278_v56 = vpop.xlane.xlu1 %277  ;;  %v380_v58 = vadd.f32 %v3823_v36, %v360_v51  ;;  %v342_v59 = vmul.f32 %v3294_v52, %v3716_v45 }
 0x13e   :  { %v281_v44 = vpop.xlane.xlu0 %280  ;;  %3305 = vrsqrt.f32 %v316_v25  ;;  %v302_v61 = vmul.f32 0.0625, %v278_v56  ;;  %v343_v2 = vmul.f32 %v3296_v53, %v3725_v54  ;;  %v381_v45 = vadd.f32 %v3823_v36, %v361_v60 }
 0x13f   :  { %v303_v37 = vmul.f32 0.0625, %v281_v44  ;;  %3307 = vrsqrt.f32 %v317_v29  ;;  %v399_v62 = vpack.c.bf16 %v380_v58, %v379_v57  ;;  %v362_v63 = vmul.f32 %v3817_v33, %v342_v59 }
 0x140   :  { %v3298_v3 = vpop.eup %3297  ;;  %v318_v4 = vadd.f32 1e-05, %v302_v61  ;;  %v363_v16 = vmul.f32 %v3817_v33, %v343_v2 }
 0x141   :  { %v319_v6 = vadd.f32 1e-05, %v303_v37  ;;  %v3300_v7 = vpop.eup %3299  ;;  %v284_v8 = vpop.xlane.xlu1 %283  ;;  %3050 = vmatprep.subr.bf16.mxu0 %v399_v62  ;;  %v382_v12 = vadd.f32 %v3823_v36, %v362_v63  ;;  %v344_v14 = vmul.f32 %v3298_v3, %v3728_v55 }
 0x142   :  { %v287_v9 = vpop.xlane.xlu0 %286  ;;  %3309 = vrsqrt.f32 %v318_v4  ;;  %v304_v20 = vmul.f32 0.0625, %v284_v8  ;;  %3051 = vmatpush3.bf16.msra.mxu0 %v399_v62  ;;  %v345_v54 = vmul.f32 %v3300_v7, %v3737_v0  ;;  %v383_v55 = vadd.f32 %v3823_v36, %v363_v16  ;;  %v3250_v16 = vld [vmem:[%s4740_s2 + $0x8] sm:$0xff]  }
 0x143   :  { %v305_v22 = vmul.f32 0.0625, %v287_v9  ;;  %3311 = vrsqrt.f32 %v319_v6  ;;  %v400_v13 = vpack.c.bf16 %v382_v12, %v381_v45  ;;  %v364_v27 = vmul.f32 %v3817_v33, %v344_v14 }
 0x144   :  { %v3302_v28 = vpop.eup %3301  ;;  %v320_v30 = vadd.f32 1e-05, %v304_v20  ;;  %v365_v40 = vmul.f32 %v3817_v33, %v345_v54 }
 0x145   :  { %v321_v32 = vadd.f32 1e-05, %v305_v22  ;;  %v3304_v34 = vpop.eup %3303  ;;  %v290_v18 = vpop.xlane.xlu1 %289  ;;  %3052 = vmatprep.subr.bf16.mxu0 %v400_v13  ;;  %v384_v38 = vadd.f32 %v3823_v36, %v364_v27  ;;  %v346_v39 = vmul.f32 %v3302_v28, %v3740_v1  ;;  %v3879_v27 = vsub.s32 2, %v3801_v5 }
 0x146   :  { %3313 = vrsqrt.f32 %v320_v30  ;;  %v306_v0 = vmul.f32 0.0625, %v290_v18  ;;  %3053 = vmatpush3.bf16.msra.mxu0 %v400_v13  ;;  %v347_v41 = vmul.f32 %v3304_v34, %v3749_v10  ;;  %v385_v49 = vadd.f32 %v3823_v36, %v365_v40 }
 0x147   :  { %3315 = vrsqrt.f32 %v321_v32  ;;  %v401_v42 = vpack.c.bf16 %v384_v38, %v383_v55  ;;  %v366_v43 = vmul.f32 %v3817_v33, %v346_v39  ;;  %v475_v28 = vrot.slane %v3809_v21, %v3879_v27 }
 0x148   :  { %v3306_v46 = vpop.eup %3305  ;;  %v322_v23 = vadd.f32 1e-05, %v306_v0  ;;  %v367_v51 = vmul.f32 %v3817_v33, %v347_v41 }
 0x149   :  { %v3308_v48 = vpop.eup %3307  ;;  %3054 = vmatprep.subr.bf16.mxu0 %v401_v42  ;;  %v386_v50 = vadd.f32 %v3823_v36, %v366_v43  ;;  %v348_v1 = vmul.f32 %v3306_v46, %v3752_v11  ;;  %v56_v46 = vld [vmem:[%s4738_s0 + $0x8] sm:$0xff] }
 0x14a   :  { %3317 = vrsqrt.f32 %v322_v23  ;;  %3055 = vmatpush3.bf16.msra.mxu0 %v401_v42  ;;  %v349_v10 = vmul.f32 %v3308_v48, %v3761_v26  ;;  %v387_v56 = vadd.f32 %v3823_v36, %v367_v51  ;;  %v55_v42 = vld [vmem:[%s4738_s0] sm:$0xff] }
 0x14b   :  { %v402_v52 = vpack.c.bf16 %v386_v50, %v385_v49  ;;  %v368_v25 = vmul.f32 %v3817_v33, %v348_v1  ;;  %v60_v48 = vsel %vm59_vm1, %v55_v42, 0.0  ;;  %v57_v49 = vld [vmem:[%s4738_s0 + $0x10] sm:$0xff]  ;;  %v63_v50 = vsel %vm59_vm1, %v56_v46, 0.0  ;;  %v58_v1 = vld [vmem:[%s4738_s0 + $0x18] sm:$0xff] }
 0x14c   :  { %v3310_v29 = vpop.eup %3309  ;;  %v369_v11 = vmul.f32 %v3817_v33, %v349_v10  ;;  %v66_v51 = vsel %vm59_vm1, %v57_v49, 0.0  ;;  %v69_v10 = vsel %vm59_vm1, %v58_v1, 0.0 }
 0x14d   :  { %v3312_v53 = vpop.eup %3311  ;;  %3056 = vmatprep.subr.bf16.mxu0 %v402_v52  ;;  %v388_v44 = vadd.f32 %v3823_v36, %v368_v25  ;;  %v350_v57 = vmul.f32 %v3310_v29, %v3764_v17 }
 0x14e   :  { %3057 = vmatpush3.bf16.msra.mxu0 %v402_v52  ;;  %v351_v58 = vmul.f32 %v3312_v53, %v3773_v35  ;;  %v389_v37 = vadd.f32 %v3823_v36, %v369_v11 }
 0x14f   :  { %v403_v59 = vpack.c.bf16 %v388_v44, %v387_v56  ;;  %v370_v26 = vmul.f32 %v3817_v33, %v350_v57 }
 0x150   :  { %v3314_v60 = vpop.eup %3313  ;;  %v371_v2 = vmul.f32 %v3817_v33, %v351_v58 }
 0x151   :  { %v3316_v61 = vpop.eup %3315  ;;  %3058 = vmatprep.subr.bf16.mxu0 %v403_v59  ;;  %v390_v62 = vadd.f32 %v3823_v36, %v370_v26  ;;  %v352_v63 = vmul.f32 %v3314_v60, %v3776_v19 }
 0x152   :  { %3059 = vmatpush3.bf16.msra.mxu0 %v403_v59  ;;  %v353_v17 = vmul.f32 %v3316_v61, %v3785_v47  ;;  %v391_v6 = vadd.f32 %v3823_v36, %v371_v2 }
 0x153   :  { %v404_v3 = vpack.c.bf16 %v390_v62, %v389_v37  ;;  %v372_v35 = vmul.f32 %v3817_v33, %v352_v63 }
 0x154   :  { %v3318_v4 = vpop.eup %3317  ;;  %v373_v9 = vmul.f32 %v3817_v33, %v353_v17 }
 0x155   :  { %3060 = vmatprep.subr.bf16.mxu0 %v404_v3  ;;  %v392_v7 = vadd.f32 %v3823_v36, %v372_v35  ;;  %v354_v8 = vmul.f32 %v3318_v4, %v3788_v24  ;;  %v3251_v24 = vld [vmem:[%s4748_s10] sm:$0xff]  }
 0x156   :  { %3061 = vmatpush3.bf16.msra.mxu0 %v404_v3  ;;  %v393_v47 = vadd.f32 %v3823_v36, %v373_v9  ;;  %3070 = vmatprep.subr.bf16.mxu1 %v3251_v24 }
 0x157   :  { %v405_v19 = vpack.c.bf16 %v392_v7, %v391_v6  ;;  %v374_v45 = vmul.f32 %v3817_v33, %v354_v8  ;;  %3071 = vmatpush3.bf16.msra.mxu1 %v3251_v24 }
 0x159   :  { %3062 = vmatprep.subr.bf16.mxu0 %v405_v19  ;;  %v394_v12 = vadd.f32 %v3823_v36, %v374_v45 }
 0x15a   :  { %3063 = vmatpush3.bf16.msra.mxu0 %v405_v19 }
 0x15b   :  { %v406_v14 = vpack.c.bf16 %v394_v12, %v393_v47 }
 0x15d   :  { %3064 = vmatprep.subr.bf16.mxu0 %v406_v14 }
 0x15e   :  { %3065 = vmatpush3.bf16.msra.mxu0 %v406_v14 }
 0x161   :  { %3067 = vmatmul.mubr.bf16.vlgmr.msra.gmra.mrb[0].mxu0 %v3250_v16 }
 0x234   :  { %v3068_v33 = vpop.f32.mrb[0].mxu0 }
 0x235   :  { %v453_v20 = vpop.f32.mrb[1].mxu0 }
 0x236   :  { %v3069_v22 = vpop.f32.mrb[2].mxu0 }
 0x237   :  { %v469_v54 = vpack.c.bf16 %v3069_v22, %v3068_v33  ;;  %v456_v36 = vpop.f32.mrb[3].mxu0 }
 0x238   :  { %v468_v13 = vpack.c.bf16 %v456_v36, %v453_v20 }
 0x23a   :  { %3072 = vmatprep.mubr.msk.bf16.mxu1 %vm145_vm0, %v468_v13 }
 0x23b   :  { %3073 = vmatmul.mubr.msk.bf16.vlgmr.msra.gmra.mrb[0].mxu1 %vm145_vm0, %v469_v54 }
 0x30e   :  { %v3074_v30 = vpop.f32.mrb[0].mxu1 }
 0x30f   :  { %v522_v32 = vpop.f32.mrb[1].mxu1  ;;  %v531_v38 = vadd.f32 %v3074_v30, %v475_v28 }
 0x310   :  { %v523_v34 = vadd.f32 %v522_v32, %v475_v28  ;;  %v3075_v18 = vpop.f32.mrb[2].mxu1  ;;  %v3252_v32 = vld [vmem:[%s4746_s8] sm:$0xff]  }
 0x311   :  { %v525_v55 = vpop.f32.mrb[3].mxu1  ;;  %v534_v0 = vadd.f32 %v3075_v18, %v475_v28  ;;  %v543_v43 = vsel %vm145_vm0, %v531_v38, 0.0  ;;  %3076 = vmatprep.subr.bf16.mxu1 %v3252_v32  ;;  %v3952_v18 = vld [vmem:[%s4747_s9] sm:$0xff]  }
 0x312   :  { %v526_v39 = vadd.f32 %v525_v55, %v475_v28  ;;  %v537_v40 = vsel %vm145_vm0, %v523_v34, 0.0  ;;  %3077 = vmatpush3.bf16.msra.mxu1 %v3252_v32 }
 0x313   :  { %538 = vadd.xlane.f32.xlu0 %v537_v40  ;;  %v546_v23 = vsel %vm145_vm0, %v534_v0, 0.0 }
 0x314   :  { %v540_v41 = vsel %vm145_vm0, %v526_v39, 0.0 }
 0x315   :  { %541 = vadd.xlane.f32.xlu1 %v540_v41 }
 0x317   :  { %544 = vadd.xlane.f32.xlu0 %v543_v43 }
 0x319   :  { %547 = vadd.xlane.f32.xlu1 %v546_v23 }
 0x31b   :  { %61 = vadd.xlane.f32.xlu0 %v60_v48 }
 0x31d   :  { %64 = vadd.xlane.f32.xlu1 %v63_v50 }
 0x31f   :  { %67 = vadd.xlane.f32.xlu0 %v66_v51  ;;  %v3956_v51 = vsub.s32 3, %v3801_v5 }
 0x321   :  { %70 = vadd.xlane.f32.xlu1 %v69_v10 }
 0x3a0   :  { %v539_v52 = vpop.xlane.xlu0 %538 }
 0x3a1   :  { %v549_v25 = vmul.f32 0.0625, %v539_v52 }
 0x3a2   :  { %v542_v29 = vpop.xlane.xlu1 %541 }
 0x3a3   :  { %v3903_v53 = vsub.f32 %v523_v34, %v549_v25  ;;  %v550_v56 = vmul.f32 0.0625, %v542_v29  ;;  %v3253_v34 = vld [vmem:[%s4746_s8 + $0x8] sm:$0xff]   ;;  %v3959_v29 = vsub.s32 4, %v3801_v5 }
 0x3a4   :  { %v545_v44 = vpop.xlane.xlu0 %544  ;;  %3078 = vmatprep.subr.bf16.mxu1 %v3253_v34 }
 0x3a5   :  { %v3905_v57 = vsub.f32 %v526_v39, %v550_v56  ;;  %v551_v11 = vmul.f32 0.0625, %v545_v44  ;;  %v557_v58 = vmul.f32 %v3903_v53, %v3903_v53  ;;  %3079 = vmatpush3.bf16.msra.mxu1 %v3253_v34 }
 0x3a6   :  { %v548_v59 = vpop.xlane.xlu1 %547  ;;  %3084 = vmatprep.subr.bf16.mxu1 %v3952_v18 }
 0x3a7   :  { %v3909_v26 = vsub.f32 %v531_v38, %v551_v11  ;;  %v552_v60 = vmul.f32 0.0625, %v548_v59  ;;  %v561_v61 = vsel %vm145_vm0, %v557_v58, 0.0  ;;  %v558_v37 = vmul.f32 %v3905_v57, %v3905_v57 }
 0x3a8   :  { %562 = vadd.xlane.f32.xlu0 %v561_v61  ;;  %v62_v62 = vpop.xlane.xlu0 %61  ;;  %v592_v58 = vrot.slane %v3809_v21, %v3956_v51 }
 0x3a9   :  { %v3914_v63 = vsub.f32 %v534_v0, %v552_v60  ;;  %v73_v2 = vmul.f32 0.03125, %v62_v62  ;;  %v564_v17 = vsel %vm145_vm0, %v558_v37, 0.0  ;;  %v559_v3 = vmul.f32 %v3909_v26, %v3909_v26 }
 0x3aa   :  { %565 = vadd.xlane.f32.xlu1 %v564_v17  ;;  %v65_v35 = vpop.xlane.xlu1 %64 }
 0x3ab   :  { %v3919_v4 = vsub.f32 %v55_v42, %v73_v2  ;;  %v74_v6 = vmul.f32 0.03125, %v65_v35  ;;  %v567_v7 = vsel %vm145_vm0, %v559_v3, 0.0  ;;  %v560_v8 = vmul.f32 %v3914_v63, %v3914_v63 }
 0x3ac   :  { %568 = vadd.xlane.f32.xlu0 %v567_v7  ;;  %v68_v9 = vpop.xlane.xlu0 %67  ;;  %v600_v2 = vrot.slane %v3809_v21, %v3959_v29 }
 0x3ad   :  { %v3924_v19 = vsub.f32 %v56_v46, %v74_v6  ;;  %v75_v45 = vmul.f32 0.03125, %v68_v9  ;;  %v570_v47 = vsel %vm145_vm0, %v560_v8, 0.0  ;;  %v81_v12 = vmul.f32 %v3919_v4, %v3919_v4  ;;  %v49_v8 = vld [vmem:[%s4742_s4] sm:$0x3f] }
 0x3ae   :  { %571 = vadd.xlane.f32.xlu1 %v570_v47  ;;  %v71_v14 = vpop.xlane.xlu1 %70 }
 0x3af   :  { %v3929_v16 = vsub.f32 %v57_v49, %v75_v45  ;;  %v76_v24 = vmul.f32 0.03125, %v71_v14  ;;  %v85_v33 = vsel %vm59_vm1, %v81_v12, 0.0  ;;  %v82_v20 = vmul.f32 %v3924_v19, %v3924_v19 }
 0x3b0   :  { %86 = vadd.xlane.f32.xlu0 %v85_v33  ;;  %v116_v14 = vrot.slane %v49_v8, %v3804_v15 }
 0x3b1   :  { %v3934_v22 = vsub.f32 %v58_v1, %v76_v24  ;;  %v88_v54 = vsel %vm59_vm1, %v82_v20, 0.0  ;;  %v83_v36 = vmul.f32 %v3929_v16, %v3929_v16 }
 0x3b2   :  { %89 = vadd.xlane.f32.xlu1 %v88_v54 }
 0x3b3   :  { %v91_v13 = vsel %vm59_vm1, %v83_v36, 0.0  ;;  %v84_v28 = vmul.f32 %v3934_v22, %v3934_v22 }
 0x3b4   :  { %92 = vadd.xlane.f32.xlu0 %v91_v13  ;;  %v124_v13 = vrot.slane %v49_v8, %v3812_v31 }
 0x3b5   :  { %v94_v30 = vsel %vm59_vm1, %v84_v28, 0.0 }
 0x3b6   :  { %95 = vadd.xlane.f32.xlu1 %v94_v30 }
 0x435   :  { %v563_v55 = vpop.xlane.xlu0 %562 }
 0x436   :  { %v573_v38 = vmul.f32 0.0625, %v563_v55 }
 0x437   :  { %v566_v39 = vpop.xlane.xlu1 %565 }
 0x438   :  { %v577_v40 = vadd.f32 1e-05, %v573_v38  ;;  %v574_v0 = vmul.f32 0.0625, %v566_v39 }
 0x439   :  { %v569_v41 = vpop.xlane.xlu0 %568 }
 0x43a   :  { %3319 = vrsqrt.f32 %v577_v40  ;;  %v578_v42 = vadd.f32 1e-05, %v574_v0  ;;  %v575_v43 = vmul.f32 0.0625, %v569_v41 }
 0x43b   :  { %v572_v46 = vpop.xlane.xlu1 %571 }
 0x43c   :  { %3321 = vrsqrt.f32 %v578_v42  ;;  %v579_v23 = vadd.f32 1e-05, %v575_v43  ;;  %v576_v48 = vmul.f32 0.0625, %v572_v46 }
 0x43d   :  { %v87_v49 = vpop.xlane.xlu0 %86 }
 0x43e   :  { %3323 = vrsqrt.f32 %v579_v23  ;;  %v580_v50 = vadd.f32 1e-05, %v576_v48  ;;  %v97_v1 = vmul.f32 0.03125, %v87_v49 }
 0x43f   :  { %v90_v10 = vpop.xlane.xlu1 %89 }
 0x440   :  { %3325 = vrsqrt.f32 %v580_v50  ;;  %v101_v52 = vadd.f32 1e-05, %v97_v1  ;;  %v98_v25 = vmul.f32 0.03125, %v90_v10 }
 0x441   :  { %v93_v56 = vpop.xlane.xlu0 %92 }
 0x442   :  { %3327 = vrsqrt.f32 %v101_v52  ;;  %v102_v44 = vadd.f32 1e-05, %v98_v25  ;;  %v99_v11 = vmul.f32 0.03125, %v93_v56 }
 0x443   :  { %v96_v59 = vpop.xlane.xlu1 %95 }
 0x444   :  { %v3320_v60 = vpop.eup %3319  ;;  %3329 = vrsqrt.f32 %v102_v44  ;;  %v103_v61 = vadd.f32 1e-05, %v99_v11  ;;  %v100_v37 = vmul.f32 0.03125, %v96_v59 }
 0x445   :  { %v585_v62 = vmul.f32 %v3320_v60, %v3903_v53 }
 0x446   :  { %v3322_v17 = vpop.eup %3321  ;;  %3331 = vrsqrt.f32 %v103_v61  ;;  %v104_v3 = vadd.f32 1e-05, %v100_v37 }
 0x447   :  { %v593_v35 = vmul.f32 %v592_v58, %v585_v62  ;;  %v586_v6 = vmul.f32 %v3322_v17, %v3905_v57 }
 0x448   :  { %v3324_v7 = vpop.eup %3323  ;;  %3333 = vrsqrt.f32 %v104_v3 }
 0x449   :  { %v594_v9 = vmul.f32 %v592_v58, %v586_v6  ;;  %v587_v45 = vmul.f32 %v3324_v7, %v3909_v26  ;;  %v3971_v47 = vadd.f32 %v600_v2, %v593_v35 }
 0x44a   :  { %v3326_v53 = vpop.eup %3325 }
 0x44b   :  { %v595_v12 = vmul.f32 %v592_v58, %v587_v45  ;;  %v588_v21 = vmul.f32 %v3326_v53, %v3914_v63  ;;  %v3975_v24 = vadd.f32 %v600_v2, %v594_v9  ;;  %v3978_v33 = vmul.f32 0.70710677, %v3971_v47 }
 0x44c   :  { %v3328_v57 = vpop.eup %3327 }
 0x44d   :  { %v3980_v20 = vadd.f32 %v600_v2, %v595_v12  ;;  %v596_v54 = vmul.f32 %v592_v58, %v588_v21  ;;  %v109_v36 = vmul.f32 %v3328_v57, %v3919_v4  ;;  %v3985_v28 = vmul.f32 0.70710677, %v3975_v24 }
 0x44e   :  { %v3330_v26 = vpop.eup %3329  ;;  %v613_v63 = vand.u32 2147483647, %v3978_v33  ;;  %vm693_vm2 = vcmp.ge.f32.partialorder %v3978_v33, 0.0 }
 0x44f   :  { %v3989_v30 = vmul.f32 0.70710677, %v3980_v20  ;;  %v3991_v32 = vadd.f32 %v600_v2, %v596_v54  ;;  %v110_v34 = vmul.f32 %v3330_v26, %v3924_v19  ;;  %v117_v55 = vmul.f32 %v116_v14, %v109_v36 }
 0x450   :  { %v3332_v38 = vpop.eup %3331  ;;  %v614_v39 = vand.u32 2147483647, %v3985_v28  ;;  %v617_v4 = vmul.f32 0.3275911, %v613_v63  ;;  %v669_v60 = vsub.f32 0.0, %v613_v63  ;;  %vm694_vm3 = vcmp.ge.f32.partialorder %v3985_v28, 0.0 }
 0x451   :  { %v615_v40 = vand.u32 2147483647, %v3989_v30  ;;  %v3997_v0 = vmul.f32 0.70710677, %v3991_v32  ;;  %v111_v41 = vmul.f32 %v3332_v38, %v3929_v16  ;;  %v118_v42 = vmul.f32 %v116_v14, %v110_v34 }
 0x452   :  { %v3334_v43 = vpop.eup %3333  ;;  %v618_v46 = vmul.f32 0.3275911, %v614_v39  ;;  %v621_v23 = vadd.f32 1.0, %v617_v4  ;;  %v4001_v50 = vadd.f32 %v124_v13, %v117_v55  ;;  %v670_v61 = vsub.f32 0.0, %v614_v39 }
 0x453   :  { %v619_v48 = vmul.f32 0.3275911, %v615_v40  ;;  %v616_v49 = vand.u32 2147483647, %v3997_v0  ;;  %v119_v19 = vmul.f32 %v116_v14, %v111_v41  ;;  %v112_v1 = vmul.f32 %v3334_v43, %v3934_v22 }
 0x454   :  { %v4004_v10 = vadd.f32 %v124_v13, %v118_v42  ;;  %v622_v52 = vadd.f32 1.0, %v618_v46  ;;  %3335 = vrcp.f32 %v621_v23  ;;  %v671_v37 = vsub.f32 0.0, %v615_v40 }
 0x455   :  { %v623_v25 = vadd.f32 1.0, %v619_v48  ;;  %v620_v56 = vmul.f32 0.3275911, %v616_v49  ;;  %v120_v44 = vmul.f32 %v116_v14, %v112_v1  ;;  %v4009_v58 = vadd.f32 %v124_v13, %v119_v19 }
 0x456   :  { %v713_v16 = vpack.c.bf16 %v4004_v10, %v4001_v50  ;;  %3337 = vrcp.f32 %v622_v52  ;;  %v673_v2 = vmul.f32 %v669_v60, %v613_v63  ;;  %v672_v35 = vsub.f32 0.0, %v616_v49 }
 0x457   :  { %3339 = vrcp.f32 %v623_v25  ;;  %v624_v11 = vadd.f32 1.0, %v620_v56  ;;  %v4011_v59 = vadd.f32 %v124_v13, %v120_v44  ;;  %v674_v6 = vmul.f32 %v670_v61, %v614_v39 }
 0x458   :  { %3080 = vmatprep.mubr.msk.bf16.mxu1 %vm59_vm1, %v713_v16  ;;  %v675_v8 = vmul.f32 %v671_v37, %v615_v40  ;;  %v677_v53 = vmul.f32 1.442695, %v673_v2  ;;  %v676_v54 = vmul.f32 %v672_v35, %v616_v49  ;;  %vm695_vm4 = vcmp.ge.f32.partialorder %v3989_v30, 0.0 }
 0x459   :  { %3341 = vrcp.f32 %v624_v11  ;;  %v714_v22 = vpack.c.bf16 %v4011_v59, %v4009_v58  ;;  %v679_v36 = vmul.f32 1.442695, %v674_v6  ;;  %vm696_vm5 = vcmp.ge.f32.partialorder %v3997_v0, 0.0 }
 0x45a   :  { %v681_v13 = vmul.f32 1.442695, %v675_v8  ;;  %3343 = vpow2.f32 %v677_v53  ;;  %v683_v40 = vmul.f32 1.442695, %v676_v54  ;;  %v4031_v0 = vsub.s32 5, %v3801_v5 }
 0x45b   :  { %3081 = vmatmul.mubr.msk.bf16.vlgmr.msra.gmra.mrb[4].mxu1 %vm59_vm1, %v714_v22  ;;  %3345 = vpow2.f32 %v679_v36 }
 0x45c   :  { %3085 = vmatpush3.bf16.msra.mxu1 %v3952_v18  ;;  %3347 = vpow2.f32 %v681_v13 }
 0x45d   :  { %3349 = vpow2.f32 %v683_v40 }
 0x45e   :  { %v3336_v62 = vpop.eup %3335 }
 0x45f   :  { %v633_v17 = vmul.f32 1.0614054, %v3336_v62 }
 0x460   :  { %v3338_v3 = vpop.eup %3337 }
 0x461   :  { %v3340_v7 = vpop.eup %3339  ;;  %v634_v9 = vmul.f32 1.0614054, %v3338_v3  ;;  %v637_v45 = vadd.f32 -1.4531521, %v633_v17 }
 0x462   :  { %v635_v12 = vmul.f32 1.0614054, %v3340_v7 }
 0x463   :  { %v638_v21 = vadd.f32 -1.4531521, %v634_v9  ;;  %v641_v14 = vmul.f32 %v3336_v62, %v637_v45  ;;  %v3342_v57 = vpop.eup %3341 }
 0x464   :  { %v639_v26 = vadd.f32 -1.4531521, %v635_v12  ;;  %v636_v63 = vmul.f32 1.0614054, %v3342_v57  ;;  %v3344_v60 = vpop.eup %3343 }
 0x465   :  { %v642_v18 = vmul.f32 %v3338_v3, %v638_v21  ;;  %v645_v34 = vadd.f32 1.4214138, %v641_v14  ;;  %v3346_v35 = vpop.eup %3345 }
 0x466   :  { %v643_v55 = vmul.f32 %v3340_v7, %v639_v26  ;;  %v640_v4 = vadd.f32 -1.4531521, %v636_v63  ;;  %v3348_v8 = vpop.eup %3347 }
 0x467   :  { %v646_v38 = vadd.f32 1.4214138, %v642_v18  ;;  %v649_v39 = vmul.f32 %v3336_v62, %v645_v34  ;;  %v3350_v36 = vpop.eup %3349 }
 0x468   :  { %v647_v41 = vadd.f32 1.4214138, %v643_v55  ;;  %v644_v46 = vmul.f32 %v3342_v57, %v640_v4  ;;  %v605_v55 = vmul.f32 0.5, %v3971_v47 }
 0x469   :  { %v650_v42 = vmul.f32 %v3338_v3, %v646_v38  ;;  %v653_v43 = vadd.f32 -0.28449672, %v649_v39  ;;  %v606_v38 = vmul.f32 0.5, %v3975_v24 }
 0x46a   :  { %v651_v23 = vmul.f32 %v3340_v7, %v647_v41  ;;  %v648_v19 = vadd.f32 1.4214138, %v644_v46  ;;  %v608_v46 = vmul.f32 0.5, %v3991_v32 }
 0x46b   :  { %v654_v48 = vadd.f32 -0.28449672, %v650_v42  ;;  %v657_v49 = vmul.f32 %v3336_v62, %v653_v43  ;;  %v607_v43 = vmul.f32 0.5, %v3980_v20  ;;  %v4037_v20 = vsub.s32 7, %v3801_v5 }
 0x46c   :  { %v655_v1 = vadd.f32 -0.28449672, %v651_v23  ;;  %v652_v56 = vmul.f32 %v3342_v57, %v648_v19 }
 0x46d   :  { %v658_v52 = vmul.f32 %v3338_v3, %v654_v48  ;;  %v661_v25 = vadd.f32 0.2548296, %v657_v49  ;;  %v53_v48 = vld [vmem:[%s4745_s7] sm:$0xff]  ;;  %v4034_v49 = vsub.s32 6, %v3801_v5 }
 0x46e   :  { %v659_v44 = vmul.f32 %v3340_v7, %v655_v1  ;;  %v656_v22 = vadd.f32 -0.28449672, %v652_v56  ;;  %v855_v32 = vrot.slane %v53_v48, %v3804_v15  ;;  %v861_v19 = vrot.slane %v53_v48, %v3812_v31 }
 0x46f   :  { %v662_v16 = vadd.f32 0.2548296, %v658_v52  ;;  %v665_v11 = vmul.f32 %v3336_v62, %v661_v25  ;;  %v867_v1 = vrot.slane %v53_v48, %v3879_v27  ;;  %v873_v52 = vrot.slane %v53_v48, %v3956_v51 }
 0x470   :  { %v663_v61 = vadd.f32 0.2548296, %v659_v44  ;;  %v660_v17 = vmul.f32 %v3342_v57, %v656_v22  ;;  %v879_v25 = vrot.slane %v53_v48, %v3959_v29  ;;  %v885_v56 = vrot.slane %v53_v48, %v4031_v0 }
 0x471   :  { %v666_v37 = vmul.f32 %v3338_v3, %v662_v16  ;;  %v685_v2 = vmul.f32 %v3344_v60, %v665_v11  ;;  %v891_v44 = vrot.slane %v53_v48, %v4034_v49  ;;  %v897_v16 = vrot.slane %v53_v48, %v4037_v20 }
 0x472   :  { %v667_v6 = vmul.f32 %v3340_v7, %v663_v61  ;;  %v664_v53 = vadd.f32 0.2548296, %v660_v17 }
 0x473   :  { %v686_v9 = vmul.f32 %v3346_v35, %v666_v37  ;;  %v689_v45 = vsub.f32 1.0, %v685_v2 }
 0x474   :  { %v687_v12 = vmul.f32 %v3348_v8, %v667_v6  ;;  %v668_v54 = vmul.f32 %v3342_v57, %v664_v53 }
 0x475   :  { %v690_v21 = vsub.f32 1.0, %v686_v9  ;;  %v697_v14 = vsub.f32 0.0, %v689_v45 }
 0x476   :  { %v691_v62 = vsub.f32 1.0, %v687_v12  ;;  %v688_v18 = vmul.f32 %v3350_v36, %v668_v54 }
 0x477   :  { %v698_v26 = vsub.f32 0.0, %v690_v21  ;;  %v701_v13 = vsel %vm693_vm2, %v689_v45, %v697_v14 }
 0x478   :  { %v705_v3 = vadd.f32 1.0, %v701_v13  ;;  %v699_v34 = vsub.f32 0.0, %v691_v62  ;;  %v692_v63 = vsub.f32 1.0, %v688_v18 }
 0x479   :  { %v702_v7 = vsel %vm694_vm3, %v690_v21, %v698_v26 }
 0x47a   :  { %v706_v57 = vadd.f32 1.0, %v702_v7  ;;  %v703_v39 = vsel %vm695_vm4, %v691_v62, %v699_v34  ;;  %v700_v4 = vsub.f32 0.0, %v692_v63  ;;  %v709_v33 = vmul.f32 %v705_v3, %v605_v55 }
 0x47b   :  { %v707_v41 = vadd.f32 1.0, %v703_v39 }
 0x47c   :  { %v710_v40 = vmul.f32 %v706_v57, %v606_v38  ;;  %v704_v42 = vsel %vm696_vm5, %v692_v63, %v700_v4 }
 0x47d   :  { %v708_v23 = vadd.f32 1.0, %v704_v42  ;;  %v711_v47 = vmul.f32 %v707_v41, %v607_v43 }
 0x47e   :  { %v786_v28 = vpack.c.bf16 %v710_v40, %v709_v33 }
 0x47f   :  { %v712_v30 = vmul.f32 %v708_v23, %v608_v46 }
 0x480   :  { %3086 = vmatprep.mubr.msk.bf16.mxu1 %vm145_vm0, %v786_v28 }
 0x481   :  { %v787_v24 = vpack.c.bf16 %v712_v30, %v711_v47 }
 0x483   :  { %3087 = vmatmul.mubr.msk.bf16.vlgmr.msra.gmra.mrb[8].mxu1 %vm145_vm0, %v787_v24 }
 0x52e   :  { %v3082_v11 = vpop.f32.mrb[4].mxu1 }
 0x52f   :  { %v771_v5 = vpop.f32.mrb[5].mxu1  ;;  %v4047_v22 = vmul.f32 %v3082_v11, %v855_v32  ;;  %v4049_v60 = vmul.f32 %v3082_v11, %v861_v19  ;;  %v4051_v61 = vmul.f32 %v3082_v11, %v867_v1  ;;  %v4053_v37 = vmul.f32 %v3082_v11, %v873_v52 }
 0x530   :  { %v3083_v2 = vpop.f32.mrb[6].mxu1  ;;  %v856_v17 = vmul.f32 %v855_v32, %v771_v5  ;;  %v862_v35 = vmul.f32 %v861_v19, %v771_v5  ;;  %v868_v6 = vmul.f32 %v867_v1, %v771_v5  ;;  %v874_v8 = vmul.f32 %v873_v52, %v771_v5 }
 0x531   :  { %v774_v9 = vpop.f32.mrb[7].mxu1  ;;  %v880_v45 = vmul.f32 %v879_v25, %v771_v5  ;;  %v886_v53 = vmul.f32 %v885_v56, %v771_v5  ;;  %v892_v12 = vmul.f32 %v891_v44, %v771_v5  ;;  %v898_v21 = vmul.f32 %v897_v16, %v771_v5 }
 0x532   :  { %v857_v14 = vmul.f32 %v855_v32, %v774_v9  ;;  %v863_v54 = vmul.f32 %v861_v19, %v774_v9  ;;  %v869_v36 = vmul.f32 %v867_v1, %v774_v9  ;;  %v875_v62 = vmul.f32 %v873_v52, %v774_v9 }
 0x533   :  { %v881_v26 = vmul.f32 %v879_v25, %v774_v9  ;;  %v887_v13 = vmul.f32 %v885_v56, %v774_v9  ;;  %v893_v18 = vmul.f32 %v891_v44, %v774_v9  ;;  %v899_v3 = vmul.f32 %v897_v16, %v774_v9 }
 0x534   :  { %v900_v34 = vpack.c.bf16 %v857_v14, %v856_v17  ;;  %v901_v7 = vpack.c.bf16 %v863_v54, %v862_v35  ;;  %v902_v63 = vpack.c.bf16 %v869_v36, %v868_v6  ;;  %v903_v55 = vpack.c.bf16 %v875_v62, %v874_v8 }
 0x535   :  { %v904_v38 = vpack.c.bf16 %v881_v26, %v880_v45  ;;  %v905_v57 = vpack.c.bf16 %v887_v13, %v886_v53  ;;  %v906_v39 = vpack.c.bf16 %v893_v18, %v892_v12  ;;  %v907_v4 = vpack.c.bf16 %v899_v3, %v898_v21 }
 0x536   :  { %3092 = vmatprep.mubr.msk.bf16.mxu1 %vm908_vm6, %v900_v34  ;;  %v4056_v33 = vmul.f32 %v3083_v2, %v855_v32  ;;  %v4058_v40 = vmul.f32 %v3083_v2, %v861_v19  ;;  %v4060_v41 = vmul.f32 %v3083_v2, %v867_v1  ;;  %v4062_v42 = vmul.f32 %v3083_v2, %v873_v52 }
 0x537   :  { %v4064_v28 = vmul.f32 %v3082_v11, %v879_v25  ;;  %v4066_v43 = vmul.f32 %v3083_v2, %v879_v25  ;;  %v4068_v46 = vmul.f32 %v3082_v11, %v885_v56  ;;  %v4070_v23 = vmul.f32 %v3083_v2, %v885_v56 }
 0x538   :  { %v1419_v47 = vpack.c.bf16 %v4056_v33, %v4047_v22  ;;  %v1420_v30 = vpack.c.bf16 %v4058_v40, %v4049_v60  ;;  %v4084_v1 = vmul.f32 %v3082_v11, %v891_v44  ;;  %v4086_v52 = vmul.f32 %v3083_v2, %v891_v44 }
 0x539   :  { %v4088_v25 = vmul.f32 %v3082_v11, %v897_v16  ;;  %v4090_v56 = vmul.f32 %v3083_v2, %v897_v16  ;;  %v4755_v22 = vpack.c.bf16 %v4066_v43, %v4064_v28  ;;  %v4756_v60 = vpack.c.bf16 %v4070_v23, %v4068_v46 }
 0x556   :  { %v3088_v35 = vpop.f32.mrb[8].mxu1 }
 0x557   :  { %v836_v6 = vpop.f32.mrb[9].mxu1 }
 0x558   :  { %v3089_v8 = vpop.f32.mrb[10].mxu1 }
 0x559   :  { %v4096_v9 = vpack.c.bf16 %v3089_v8, %v3088_v35  ;;  %v839_v45 = vpop.f32.mrb[11].mxu1 }
 0x55a   :  { %v851_v53 = vpack.c.bf16 %v839_v45, %v836_v6 }
 0x55c   :  { %3244 = vmatprep.subr.msk.bf16.mxu1 %vm908_vm6, %v851_v53  ;;  %3108 = vmatprep.subr.bf16.mxu0 %v851_v53  ;;  %v934_v44 = vsel %vm908_vm6, %v851_v53, 0 }
 0x55d   :  { %3091 = vmatpush3.bf16.xpose.msra.mxu1 %v934_v44  ;;  %3109 = vmatpush3.bf16.msra.mxu0 %v851_v53 }
 0x55e   :  { %3242 = vmatprep.subr.bf16.mxu1 %v851_v53  ;;  %3144 = vmatprep.subr.bf16.mxu0 %v4096_v9 }
 0x564   :  { %3093 = vmatmul.mubr.msk.bf16.vlgmr.msra.gmra.mrb[12].mxu1 %vm908_vm6, %v901_v7 }
 0x565   :  { %3096 = vmatprep.mubr.msk.bf16.mxu1 %vm908_vm6, %v902_v63  ;;  %3243 = vmatpush3.bf16.msra.mxu1 %v851_v53 }
 0x566   :  { %3245 = vmatprep.subr.msk.bf16.mxu1 %vm908_vm6, %v4096_v9 }
 0x56c   :  { %3097 = vmatmul.mubr.msk.bf16.gmra.mrb[16].mxu1 %vm908_vm6, %v903_v55 }
 0x56d   :  { %3100 = vmatprep.mubr.msk.bf16.mxu1 %vm908_vm6, %v904_v38 }
 0x574   :  { %3101 = vmatmul.mubr.msk.bf16.gmra.mrb[20].mxu1 %vm908_vm6, %v905_v57 }
 0x575   :  { %3104 = vmatprep.mubr.msk.bf16.mxu1 %vm908_vm6, %v906_v39 }
 0x57c   :  { %3105 = vmatmul.mubr.msk.bf16.gmra.mrb[24].mxu1 %vm908_vm6, %v907_v4 }
 0x637   :  { %v4110_v16 = vpop.f32.mrb[12].mxu1 }
 0x638   :  { %v4112_v11 = vpop.f32.mrb[13].mxu1 }
 0x639   :  { %v4114_v2 = vpop.f32.mrb[14].mxu1 }
 0x63a   :  { %v4116_v12 = vpop.f32.mrb[15].mxu1 }
 0x63f   :  { %v4118_v21 = vpop.f32.mrb[16].mxu1 }
 0x640   :  { %v4120_v14 = vpop.f32.mrb[17].mxu1 }
 0x641   :  { %v4122_v54 = vpop.f32.mrb[18].mxu1 }
 0x642   :  { %v4124_v36 = vpop.f32.mrb[19].mxu1 }
 0x647   :  { %v3102_v62 = vpop.f32.mrb[20].mxu1 }
 0x648   :  { %v1002_v26 = vpop.f32.mrb[21].mxu1  ;;  %v1063_v7 = vsel %vm145_vm0, %v3102_v62, -inf }
 0x649   :  { %v3103_v13 = vpop.f32.mrb[22].mxu1  ;;  %v1057_v18 = vsel %vm145_vm0, %v1002_v26, -inf }
 0x64a   :  { %1058 = vmax.xlane.f32.xlu0 %v1057_v18  ;;  %v1005_v3 = vpop.f32.mrb[23].mxu1  ;;  %v1066_v55 = vsel %vm145_vm0, %v3103_v13, -inf }
 0x64b   :  { %v1060_v34 = vsel %vm145_vm0, %v1005_v3, -inf }
 0x64c   :  { %1061 = vmax.xlane.f32.xlu1 %v1060_v34 }
 0x64e   :  { %1064 = vmax.xlane.f32.xlu0 %v1063_v7 }
 0x64f   :  { %v3106_v63 = vpop.f32.mrb[24].mxu1 }
 0x650   :  { %1067 = vmax.xlane.f32.xlu1 %v1066_v55  ;;  %v1018_v38 = vpop.f32.mrb[25].mxu1  ;;  %v1075_v6 = vsel %vm145_vm0, %v3106_v63, -inf }
 0x651   :  { %v3107_v57 = vpop.f32.mrb[26].mxu1  ;;  %v1069_v39 = vsel %vm145_vm0, %v1018_v38, -inf }
 0x652   :  { %1070 = vmax.xlane.f32.xlu0 %v1069_v39  ;;  %v1021_v4 = vpop.f32.mrb[27].mxu1  ;;  %v1078_v8 = vsel %vm145_vm0, %v3107_v57, -inf }
 0x653   :  { %v1072_v35 = vsel %vm145_vm0, %v1021_v4, -inf }
 0x654   :  { %1073 = vmax.xlane.f32.xlu1 %v1072_v35 }
 0x656   :  { %1076 = vmax.xlane.f32.xlu0 %v1075_v6 }
 0x658   :  { %1079 = vmax.xlane.f32.xlu1 %v1078_v8 }
 0x6d7   :  { %v1059_v45 = vpop.xlane.xlu0 %1058 }
 0x6d8   :  { %v1089_v53 = vsub.f32 %v1002_v26, %v1059_v45 }
 0x6d9   :  { %v1062_v44 = vpop.xlane.xlu1 %1061 }
 0x6da   :  { %v1113_v18 = vmul.f32 1.442695, %v1089_v53  ;;  %v1090_v34 = vsub.f32 %v1005_v3, %v1062_v44 }
 0x6db   :  { %v1065_v7 = vpop.xlane.xlu0 %1064 }
 0x6dc   :  { %3351 = vpow2.f32 %v1113_v18  ;;  %v1115_v55 = vmul.f32 1.442695, %v1090_v34  ;;  %v1091_v17 = vsub.f32 %v3102_v62, %v1065_v7 }
 0x6dd   :  { %v1068_v39 = vpop.xlane.xlu1 %1067 }
 0x6de   :  { %3353 = vpow2.f32 %v1115_v55  ;;  %v1117_v5 = vmul.f32 1.442695, %v1091_v17  ;;  %v1092_v19 = vsub.f32 %v3103_v13, %v1068_v39 }
 0x6df   :  { %v1071_v35 = vpop.xlane.xlu0 %1070 }
 0x6e0   :  { %3355 = vpow2.f32 %v1117_v5  ;;  %v1119_v32 = vmul.f32 1.442695, %v1092_v19  ;;  %v1093_v6 = vsub.f32 %v1018_v38, %v1071_v35 }
 0x6e1   :  { %v1074_v48 = vpop.xlane.xlu1 %1073 }
 0x6e2   :  { %3357 = vpow2.f32 %v1119_v32  ;;  %v1121_v8 = vmul.f32 1.442695, %v1093_v6  ;;  %v1094_v24 = vsub.f32 %v1021_v4, %v1074_v48  ;;  %v1033_v6 = vsel %vm145_vm0, %v4112_v11, -inf }
 0x6e3   :  { %v1077_v26 = vpop.xlane.xlu0 %1076 }
 0x6e4   :  { %3359 = vpow2.f32 %v1121_v8  ;;  %v1123_v45 = vmul.f32 1.442695, %v1094_v24  ;;  %v1095_v3 = vsub.f32 %v3106_v63, %v1077_v26  ;;  %v1036_v8 = vsel %vm145_vm0, %v4116_v12, -inf }
 0x6e5   :  { %v1080_v53 = vpop.xlane.xlu1 %1079  ;;  %v1039_v26 = vsel %vm145_vm0, %v4110_v16, -inf }
 0x6e6   :  { %v4134_v44 = vpop.eup %3351  ;;  %3361 = vpow2.f32 %v1123_v45  ;;  %v1125_v62 = vmul.f32 1.442695, %v1095_v3  ;;  %v1096_v18 = vsub.f32 %v3107_v57, %v1080_v53  ;;  %v1042_v45 = vsel %vm145_vm0, %v4114_v2, -inf }
 0x6e7   :  { %v1153_v17 = vsel %vm145_vm0, %v4134_v44, 0.0  ;;  %v1045_v3 = vsel %vm145_vm0, %v4120_v14, -inf  ;;  %v1048_v53 = vsel %vm145_vm0, %v4124_v36, -inf }
 0x6e8   :  { %v3354_v5 = vpop.eup %3353  ;;  %3363 = vpow2.f32 %v1125_v62  ;;  %v1127_v19 = vmul.f32 1.442695, %v1096_v18  ;;  %1154 = vadd.xlane.f32.xlu0 %v1153_v17  ;;  %v1051_v62 = vsel %vm145_vm0, %v4118_v21, -inf  ;;  %v1054_v18 = vsel %vm145_vm0, %v4122_v54, -inf }
 0x6e9   :  { %v1156_v32 = vsel %vm145_vm0, %v3354_v5, 0.0 }
 0x6ea   :  { %v3356_v48 = vpop.eup %3355  ;;  %3365 = vpow2.f32 %v1127_v19  ;;  %1157 = vadd.xlane.f32.xlu1 %v1156_v32 }
 0x6eb   :  { %v1159_v24 = vsel %vm145_vm0, %v3356_v48, 0.0 }
 0x6ec   :  { %v3358_v13 = vpop.eup %3357  ;;  %1160 = vadd.xlane.f32.xlu0 %v1159_v24 }
 0x6ed   :  { %v1162_v63 = vsel %vm145_vm0, %v3358_v13, 0.0 }
 0x6ee   :  { %v3360_v38 = vpop.eup %3359  ;;  %1163 = vadd.xlane.f32.xlu1 %v1162_v63 }
 0x6ef   :  { %v1165_v57 = vsel %vm145_vm0, %v3360_v38, 0.0 }
 0x6f0   :  { %v3362_v4 = vpop.eup %3361  ;;  %1166 = vadd.xlane.f32.xlu0 %v1165_v57 }
 0x6f1   :  { %v1168_v34 = vsel %vm145_vm0, %v3362_v4, 0.0 }
 0x6f2   :  { %v3364_v7 = vpop.eup %3363  ;;  %1169 = vadd.xlane.f32.xlu1 %v1168_v34 }
 0x6f3   :  { %v1171_v55 = vsel %vm145_vm0, %v3364_v7, 0.0 }
 0x6f4   :  { %v3366_v39 = vpop.eup %3365  ;;  %1172 = vadd.xlane.f32.xlu0 %v1171_v55 }
 0x6f5   :  { %v1174_v35 = vsel %vm145_vm0, %v3366_v39, 0.0 }
 0x6f6   :  { %1175 = vadd.xlane.f32.xlu1 %v1174_v35 }
 0x6f8   :  { %1034 = vmax.xlane.f32.xlu0 %v1033_v6 }
 0x6fa   :  { %1037 = vmax.xlane.f32.xlu1 %v1036_v8 }
 0x6fc   :  { %1040 = vmax.xlane.f32.xlu0 %v1039_v26 }
 0x6fe   :  { %1043 = vmax.xlane.f32.xlu1 %v1042_v45 }
 0x700   :  { %1046 = vmax.xlane.f32.xlu0 %v1045_v3 }
 0x702   :  { %1049 = vmax.xlane.f32.xlu1 %v1048_v53 }
 0x704   :  { %1052 = vmax.xlane.f32.xlu0 %v1051_v62 }
 0x706   :  { %1055 = vmax.xlane.f32.xlu1 %v1054_v18 }
 0x775   :  { %v1155_v17 = vpop.xlane.xlu0 %1154 }
 0x776   :  { %3367 = vrcp.f32 %v1155_v17 }
 0x777   :  { %v1158_v19 = vpop.xlane.xlu1 %1157 }
 0x778   :  { %3369 = vrcp.f32 %v1158_v19 }
 0x779   :  { %v1161_v32 = vpop.xlane.xlu0 %1160 }
 0x77a   :  { %3371 = vrcp.f32 %v1161_v32 }
 0x77b   :  { %v1164_v24 = vpop.xlane.xlu1 %1163 }
 0x77c   :  { %3373 = vrcp.f32 %v1164_v24  ;;  %v1452_v24 = vsel %vm908_vm6, %v4096_v9, 0 }
 0x77d   :  { %v1167_v63 = vpop.xlane.xlu0 %1166 }
 0x77e   :  { %3375 = vrcp.f32 %v1167_v63 }
 0x77f   :  { %v1170_v57 = vpop.xlane.xlu1 %1169 }
 0x780   :  { %v3368_v34 = vpop.eup %3367  ;;  %3377 = vrcp.f32 %v1170_v57 }
 0x781   :  { %v1173_v55 = vpop.xlane.xlu0 %1172  ;;  %v1201_v8 = vmul.f32 %v3368_v34, %v4134_v44 }
 0x782   :  { %v3370_v35 = vpop.eup %3369  ;;  %3379 = vrcp.f32 %v1173_v55 }
 0x783   :  { %v1176_v6 = vpop.xlane.xlu1 %1175  ;;  %v1202_v26 = vmul.f32 %v3370_v35, %v3354_v5 }
 0x784   :  { %v3372_v45 = vpop.eup %3371  ;;  %3381 = vrcp.f32 %v1176_v6 }
 0x785   :  { %v1213_v3 = vpack.c.bf16 %v1202_v26, %v1201_v8  ;;  %v1203_v62 = vmul.f32 %v3372_v45, %v3356_v48 }
 0x786   :  { %v3374_v53 = vpop.eup %3373 }
 0x787   :  { %v1204_v18 = vmul.f32 %v3374_v53, %v3358_v13  ;;  %3118 = vmatprep.mubr.msk.bf16.mxu1 %vm145_vm0, %v1213_v3 }
 0x788   :  { %v3376_v17 = vpop.eup %3375 }
 0x789   :  { %v1214_v19 = vpack.c.bf16 %v1204_v18, %v1203_v62  ;;  %v1205_v63 = vmul.f32 %v3376_v17, %v3360_v38  ;;  %v4753_v38 = vpack.c.bf16 %v4060_v41, %v4051_v61  ;;  %v4757_v61 = vpack.c.bf16 %v4086_v52, %v4084_v1 }
 0x78a   :  { %v3378_v32 = vpop.eup %3377 }
 0x78b   :  { %3119 = vmatmul.mubr.msk.bf16.vlgmr.msra.gmra.mrb[28].mxu1 %vm145_vm0, %v1214_v19  ;;  %v1206_v57 = vmul.f32 %v3378_v32, %v3362_v4  ;;  %v4754_v4 = vpack.c.bf16 %v4062_v42, %v4053_v37  ;;  %v4758_v37 = vpack.c.bf16 %v4090_v56, %v4088_v25  ;;  %v1035_v56 = vpop.xlane.xlu0 %1034 }
 0x78c   :  { %v3380_v44 = vpop.eup %3379  ;;  %3127 = vmatpush3.bf16.xpose.msra.mxu1 %v1452_v24  ;;  %v1081_v19 = vsub.f32 %v4112_v11, %v1035_v56 }
 0x78d   :  { %v1215_v5 = vpack.c.bf16 %v1206_v57, %v1205_v63  ;;  %v1207_v48 = vmul.f32 %v3380_v44, %v3364_v7 }
 0x78e   :  { %v3382_v34 = vpop.eup %3381 }
 0x78f   :  { %3122 = vmatprep.mubr.msk.bf16.mxu1 %vm145_vm0, %v1215_v5  ;;  %v1208_v13 = vmul.f32 %v3382_v34, %v3366_v39  ;;  %v1038_v39 = vpop.xlane.xlu1 %1037  ;;  %v1041_v45 = vpop.xlane.xlu0 %1040  ;;  %v1097_v5 = vmul.f32 1.442695, %v1081_v19 }
 0x790   :  { %v1082_v24 = vsub.f32 %v4116_v12, %v1038_v39  ;;  %v1083_v34 = vsub.f32 %v4110_v16, %v1041_v45 }
 0x791   :  { %v1216_v55 = vpack.c.bf16 %v1208_v13, %v1207_v48  ;;  %3383 = vpow2.f32 %v1097_v5 }
 0x792   :  { %v1099_v12 = vmul.f32 1.442695, %v1082_v24  ;;  %v1101_v16 = vmul.f32 1.442695, %v1083_v34 }
 0x793   :  { %3123 = vmatmul.mubr.msk.bf16.gmra.mrb[32].mxu1 %vm145_vm0, %v1216_v55  ;;  %v1044_v18 = vpop.xlane.xlu1 %1043  ;;  %v1047_v63 = vpop.xlane.xlu0 %1046 }
 0x794   :  { %3128 = vmatprep.mubr.msk.bf16.mxu1 %vm908_vm6, %v1419_v47  ;;  %3385 = vpow2.f32 %v1099_v12 }
 0x795   :  { %3387 = vpow2.f32 %v1101_v16 }
 0x797   :  { %v1050_v11 = vpop.xlane.xlu1 %1049 }
 0x798   :  { %v1086_v56 = vsub.f32 %v4124_v36, %v1050_v11 }
 0x79a   :  { %v1107_v36 = vmul.f32 1.442695, %v1086_v56 }
 0x79b   :  { %3129 = vmatmul.mubr.msk.bf16.vlgmr.msra.gmra.mrb[36].mxu1 %vm908_vm6, %v1420_v30  ;;  %v4286_v24 = vpop.eup %3383 }
 0x79c   :  { %3132 = vmatprep.mubr.msk.bf16.mxu1 %vm908_vm6, %v4753_v38  ;;  %v1084_v38 = vsub.f32 %v4114_v2, %v1044_v18  ;;  %v1056_v2 = vpop.xlane.xlu1 %1055  ;;  %v1129_v5 = vsel %vm145_vm0, %v4286_v24, 0.0 }
 0x79d   :  { %v1088_v18 = vsub.f32 %v4122_v54, %v1056_v2 }
 0x7a3   :  { %3133 = vmatmul.mubr.msk.bf16.gmra.mrb[40].mxu1 %vm908_vm6, %v4754_v4 }
 0x7a4   :  { %3136 = vmatprep.mubr.msk.bf16.mxu1 %vm908_vm6, %v4755_v22 }
 0x7ab   :  { %3137 = vmatmul.mubr.msk.bf16.gmra.mrb[44].mxu1 %vm908_vm6, %v4756_v60  ;;  %v1085_v60 = vsub.f32 %v4120_v14, %v1047_v63  ;;  %v1111_v63 = vmul.f32 1.442695, %v1088_v18 }
 0x7ac   :  { %3140 = vmatprep.mubr.msk.bf16.mxu1 %vm908_vm6, %v4757_v61  ;;  %v1053_v61 = vpop.xlane.xlu0 %1052 }
 0x7ad   :  { %v1087_v14 = vsub.f32 %v4118_v21, %v1053_v61 }
 0x7af   :  { %v1109_v21 = vmul.f32 1.442695, %v1087_v14 }
 0x7b3   :  { %3141 = vmatmul.mubr.msk.bf16.gmra.mrb[48].mxu1 %vm908_vm6, %v4758_v37 }
 0x85e   :  { %v4200_v33 = vpop.f32.mrb[28].mxu1 }
 0x85f   :  { %v4202_v40 = vpop.f32.mrb[29].mxu1 }
 0x860   :  { %v4204_v41 = vpop.f32.mrb[30].mxu1 }
 0x861   :  { %v4206_v42 = vpop.f32.mrb[31].mxu1 }
 0x866   :  { %v4208_v28 = vpop.f32.mrb[32].mxu1 }
 0x867   :  { %v4210_v43 = vpop.f32.mrb[33].mxu1 }
 0x868   :  { %v4212_v46 = vpop.f32.mrb[34].mxu1 }
 0x869   :  { %v4214_v23 = vpop.f32.mrb[35].mxu1 }
 0x86e   :  { %v4216_v47 = vpop.f32.mrb[36].mxu1 }
 0x86f   :  { %v4218_v30 = vpop.f32.mrb[37].mxu1  ;;  %v1557_v35 = vsel %vm145_vm0, %v4216_v47, -inf }
 0x870   :  { %v4220_v1 = vpop.f32.mrb[38].mxu1  ;;  %v1551_v52 = vsel %vm145_vm0, %v4218_v30, -inf }
 0x871   :  { %1552 = vmax.xlane.f32.xlu0 %v1551_v52  ;;  %v4224_v25 = vpop.f32.mrb[39].mxu1  ;;  %v1560_v8 = vsel %vm145_vm0, %v4220_v1, -inf  ;;  %v1103_v52 = vmul.f32 1.442695, %v1084_v38 }
 0x872   :  { %v1554_v7 = vsel %vm145_vm0, %v4224_v25, -inf }
 0x873   :  { %1555 = vmax.xlane.f32.xlu1 %v1554_v7  ;;  %3389 = vpow2.f32 %v1103_v52 }
 0x875   :  { %1558 = vmax.xlane.f32.xlu0 %v1557_v35  ;;  %v1105_v35 = vmul.f32 1.442695, %v1085_v60 }
 0x876   :  { %v4230_v6 = vpop.f32.mrb[40].mxu1 }
 0x877   :  { %1561 = vmax.xlane.f32.xlu1 %v1560_v8  ;;  %v4234_v26 = vpop.f32.mrb[41].mxu1  ;;  %v1569_v32 = vsel %vm145_vm0, %v4230_v6, -inf  ;;  %3391 = vpow2.f32 %v1105_v35 }
 0x878   :  { %v4236_v3 = vpop.f32.mrb[42].mxu1  ;;  %v1563_v53 = vsel %vm145_vm0, %v4234_v26, -inf  ;;  %3393 = vpow2.f32 %v1107_v36 }
 0x879   :  { %1564 = vmax.xlane.f32.xlu0 %v1563_v53  ;;  %v4240_v62 = vpop.f32.mrb[43].mxu1  ;;  %v1572_v44 = vsel %vm145_vm0, %v4236_v3, -inf  ;;  %3395 = vpow2.f32 %v1109_v21 }
 0x87a   :  { %v1566_v17 = vsel %vm145_vm0, %v4240_v62, -inf  ;;  %3397 = vpow2.f32 %v1111_v63 }
 0x87b   :  { %1567 = vmax.xlane.f32.xlu1 %v1566_v17 }
 0x87d   :  { %1570 = vmax.xlane.f32.xlu0 %v1569_v32 }
 0x87e   :  { %v4248_v57 = vpop.f32.mrb[44].mxu1 }
 0x87f   :  { %1573 = vmax.xlane.f32.xlu1 %v1572_v44  ;;  %v4253_v48 = vpop.f32.mrb[45].mxu1  ;;  %v1581_v37 = vsel %vm145_vm0, %v4248_v57, -inf  ;;  %v4290_v44 = vpop.eup %3385 }
 0x880   :  { %v4255_v13 = vpop.f32.mrb[46].mxu1  ;;  %v1575_v55 = vsel %vm145_vm0, %v4253_v48, -inf  ;;  %v4294_v34 = vpop.eup %3387  ;;  %v1132_v11 = vsel %vm145_vm0, %v4290_v44, 0.0 }
 0x881   :  { %1576 = vmax.xlane.f32.xlu0 %v1575_v55  ;;  %v4260_v4 = vpop.f32.mrb[47].mxu1  ;;  %v1584_v39 = vsel %vm145_vm0, %v4255_v13, -inf  ;;  %v4298_v55 = vpop.eup %3389  ;;  %v1135_v12 = vsel %vm145_vm0, %v4294_v34, 0.0 }
 0x882   :  { %v1578_v22 = vsel %vm145_vm0, %v4260_v4, -inf  ;;  %v4302_v38 = vpop.eup %3391 }
 0x883   :  { %1579 = vmax.xlane.f32.xlu1 %v1578_v22  ;;  %v1138_v22 = vsel %vm145_vm0, %v4298_v55, 0.0  ;;  %v4306_v16 = vpop.eup %3393  ;;  %v1141_v60 = vsel %vm145_vm0, %v4302_v38, 0.0 }
 0x884   :  { %v4310_v61 = vpop.eup %3395 }
 0x885   :  { %1582 = vmax.xlane.f32.xlu0 %v1581_v37  ;;  %v1144_v37 = vsel %vm145_vm0, %v4306_v16, 0.0  ;;  %v4314_v52 = vpop.eup %3397  ;;  %v1147_v56 = vsel %vm145_vm0, %v4310_v61, 0.0 }
 0x886   :  { %v4268_v7 = vpop.f32.mrb[48].mxu1  ;;  %v1150_v2 = vsel %vm145_vm0, %v4314_v52, 0.0 }
 0x887   :  { %1585 = vmax.xlane.f32.xlu1 %v1584_v39  ;;  %v4273_v8 = vpop.f32.mrb[49].mxu1  ;;  %v1593_v32 = vsel %vm145_vm0, %v4268_v7, -inf }
 0x888   :  { %v4275_v45 = vpop.f32.mrb[50].mxu1  ;;  %v1587_v53 = vsel %vm145_vm0, %v4273_v8, -inf }
 0x889   :  { %1588 = vmax.xlane.f32.xlu0 %v1587_v53  ;;  %v4280_v17 = vpop.f32.mrb[51].mxu1  ;;  %v1596_v54 = vsel %vm145_vm0, %v4275_v45, -inf }
 0x88a   :  { %v1590_v19 = vsel %vm145_vm0, %v4280_v17, -inf }
 0x88b   :  { %1591 = vmax.xlane.f32.xlu1 %v1590_v19 }
 0x88d   :  { %1594 = vmax.xlane.f32.xlu0 %v1593_v32 }
 0x88f   :  { %1597 = vmax.xlane.f32.xlu1 %v1596_v54 }
 0x891   :  { %1130 = vadd.xlane.f32.xlu0 %v1129_v5 }
 0x893   :  { %1133 = vadd.xlane.f32.xlu1 %v1132_v11 }
 0x895   :  { %1136 = vadd.xlane.f32.xlu0 %v1135_v12 }
 0x897   :  { %1139 = vadd.xlane.f32.xlu1 %v1138_v22 }
 0x899   :  { %1142 = vadd.xlane.f32.xlu0 %v1141_v60 }
 0x89b   :  { %1145 = vadd.xlane.f32.xlu1 %v1144_v37 }
 0x89d   :  { %1148 = vadd.xlane.f32.xlu0 %v1147_v56 }
 0x89f   :  { %1151 = vadd.xlane.f32.xlu1 %v1150_v2 }
 0x8fe   :  { %v1553_v39 = vpop.xlane.xlu0 %1552 }
 0x8ff   :  { %v1599_v35 = vsub.f32 %v4218_v30, %v1553_v39 }
 0x900   :  { %v1556_v14 = vpop.xlane.xlu1 %1555 }
 0x901   :  { %v1615_v53 = vmul.f32 1.442695, %v1599_v35  ;;  %v1600_v36 = vsub.f32 %v4224_v25, %v1556_v14 }
 0x902   :  { %v1559_v18 = vpop.xlane.xlu0 %1558 }
 0x903   :  { %3399 = vpow2.f32 %v1615_v53  ;;  %v1617_v19 = vmul.f32 1.442695, %v1600_v36  ;;  %v1601_v21 = vsub.f32 %v4216_v47, %v1559_v18 }
 0x904   :  { %v1562_v32 = vpop.xlane.xlu1 %1561 }
 0x905   :  { %3401 = vpow2.f32 %v1617_v19  ;;  %v1619_v63 = vmul.f32 1.442695, %v1601_v21  ;;  %v1602_v54 = vsub.f32 %v4220_v1, %v1562_v32 }
 0x906   :  { %v1565_v5 = vpop.xlane.xlu0 %1564 }
 0x907   :  { %3403 = vpow2.f32 %v1619_v63  ;;  %v1621_v11 = vmul.f32 1.442695, %v1602_v54  ;;  %v1603_v12 = vsub.f32 %v4234_v26, %v1565_v5 }
 0x908   :  { %v1568_v30 = vpop.xlane.xlu1 %1567 }
 0x909   :  { %3405 = vpow2.f32 %v1621_v11  ;;  %v1623_v22 = vmul.f32 1.442695, %v1603_v12  ;;  %v1604_v25 = vsub.f32 %v4240_v62, %v1568_v30 }
 0x90a   :  { %v1571_v60 = vpop.xlane.xlu0 %1570 }
 0x90b   :  { %3407 = vpow2.f32 %v1623_v22  ;;  %v1625_v37 = vmul.f32 1.442695, %v1604_v25  ;;  %v1605_v47 = vsub.f32 %v4230_v6, %v1571_v60 }
 0x90c   :  { %v1574_v56 = vpop.xlane.xlu1 %1573 }
 0x90d   :  { %v4327_v2 = vpop.eup %3399  ;;  %3409 = vpow2.f32 %v1625_v37  ;;  %v1627_v1 = vmul.f32 1.442695, %v1605_v47  ;;  %v1606_v39 = vsub.f32 %v4236_v3, %v1574_v56 }
 0x90e   :  { %v1577_v35 = vpop.xlane.xlu0 %1576  ;;  %v1647_v26 = vsel %vm145_vm0, %v4327_v2, 0.0 }
 0x90f   :  { %v4332_v14 = vpop.eup %3401  ;;  %3411 = vpow2.f32 %v1627_v1  ;;  %v1629_v62 = vmul.f32 1.442695, %v1606_v39  ;;  %v1607_v53 = vsub.f32 %v4253_v48, %v1577_v35  ;;  %1648 = vadd.xlane.f32.xlu0 %v1647_v26 }
 0x910   :  { %v1580_v36 = vpop.xlane.xlu1 %1579  ;;  %v1650_v6 = vsel %vm145_vm0, %v4332_v14, 0.0 }
 0x911   :  { %v4337_v18 = vpop.eup %3403  ;;  %3413 = vpow2.f32 %v1629_v62  ;;  %v1631_v19 = vmul.f32 1.442695, %v1607_v53  ;;  %v1608_v3 = vsub.f32 %v4260_v4, %v1580_v36  ;;  %1651 = vadd.xlane.f32.xlu1 %v1650_v6 }
 0x912   :  { %v1583_v21 = vpop.xlane.xlu0 %1582  ;;  %v1653_v32 = vsel %vm145_vm0, %v4337_v18, 0.0 }
 0x913   :  { %v4342_v63 = vpop.eup %3405  ;;  %3415 = vpow2.f32 %v1631_v19  ;;  %v1633_v48 = vmul.f32 1.442695, %v1608_v3  ;;  %v1609_v54 = vsub.f32 %v4248_v57, %v1583_v21  ;;  %1654 = vadd.xlane.f32.xlu0 %v1653_v32 }
 0x914   :  { %v1586_v5 = vpop.xlane.xlu1 %1585  ;;  %v1656_v11 = vsel %vm145_vm0, %v4342_v63, 0.0 }
 0x915   :  { %v4347_v12 = vpop.eup %3407  ;;  %3417 = vpow2.f32 %v1633_v48  ;;  %v1635_v4 = vmul.f32 1.442695, %v1609_v54  ;;  %v1610_v30 = vsub.f32 %v4255_v13, %v1586_v5  ;;  %1657 = vadd.xlane.f32.xlu1 %v1656_v11 }
 0x916   :  { %v1589_v22 = vpop.xlane.xlu0 %1588  ;;  %v1659_v25 = vsel %vm145_vm0, %v4347_v12, 0.0 }
 0x917   :  { %v4352_v60 = vpop.eup %3409  ;;  %3419 = vpow2.f32 %v1635_v4  ;;  %v1637_v57 = vmul.f32 1.442695, %v1610_v30  ;;  %v1611_v37 = vsub.f32 %v4273_v8, %v1589_v22  ;;  %1660 = vadd.xlane.f32.xlu0 %v1659_v25 }
 0x918   :  { %v1592_v47 = vpop.xlane.xlu1 %1591  ;;  %v1662_v56 = vsel %vm145_vm0, %v4352_v60, 0.0 }
 0x919   :  { %v4357_v1 = vpop.eup %3411  ;;  %3421 = vpow2.f32 %v1637_v57  ;;  %v1639_v13 = vmul.f32 1.442695, %v1611_v37  ;;  %v1612_v39 = vsub.f32 %v4280_v17, %v1592_v47  ;;  %1663 = vadd.xlane.f32.xlu1 %v1662_v56 }
 0x91a   :  { %v1595_v35 = vpop.xlane.xlu0 %1594  ;;  %v1665_v26 = vsel %vm145_vm0, %v4357_v1, 0.0 }
 0x91b   :  { %v4362_v62 = vpop.eup %3413  ;;  %3423 = vpow2.f32 %v1639_v13  ;;  %v1641_v8 = vmul.f32 1.442695, %v1612_v39  ;;  %v1613_v53 = vsub.f32 %v4268_v7, %v1595_v35  ;;  %1666 = vadd.xlane.f32.xlu0 %v1665_v26 }
 0x91c   :  { %v1598_v36 = vpop.xlane.xlu1 %1597  ;;  %v1668_v6 = vsel %vm145_vm0, %v4362_v62, 0.0 }
 0x91d   :  { %v4367_v19 = vpop.eup %3415  ;;  %3425 = vpow2.f32 %v1641_v8  ;;  %v1643_v17 = vmul.f32 1.442695, %v1613_v53  ;;  %v1614_v3 = vsub.f32 %v4275_v45, %v1598_v36  ;;  %1669 = vadd.xlane.f32.xlu1 %v1668_v6 }
 0x91e   :  { %v1131_v21 = vpop.xlane.xlu0 %1130  ;;  %v1671_v32 = vsel %vm145_vm0, %v4367_v19, 0.0 }
 0x91f   :  { %v4372_v48 = vpop.eup %3417  ;;  %3427 = vpow2.f32 %v1643_v17  ;;  %v1645_v7 = vmul.f32 1.442695, %v1614_v3  ;;  %1672 = vadd.xlane.f32.xlu0 %v1671_v32 }
 0x920   :  { %3429 = vrcp.f32 %v1131_v21  ;;  %v1134_v54 = vpop.xlane.xlu1 %1133  ;;  %v1674_v5 = vsel %vm145_vm0, %v4372_v48, 0.0 }
 0x921   :  { %v4376_v11 = vpop.eup %3419  ;;  %3431 = vpow2.f32 %v1645_v7  ;;  %1675 = vadd.xlane.f32.xlu1 %v1674_v5 }
 0x922   :  { %3433 = vrcp.f32 %v1134_v54  ;;  %v1137_v45 = vpop.xlane.xlu0 %1136  ;;  %v1677_v4 = vsel %vm145_vm0, %v4376_v11, 0.0 }
 0x923   :  { %v4380_v30 = vpop.eup %3421  ;;  %3435 = vrcp.f32 %v1137_v45  ;;  %1678 = vadd.xlane.f32.xlu0 %v1677_v4 }
 0x924   :  { %v1140_v22 = vpop.xlane.xlu1 %1139  ;;  %v1680_v25 = vsel %vm145_vm0, %v4380_v30, 0.0 }
 0x925   :  { %v4384_v57 = vpop.eup %3423  ;;  %3437 = vrcp.f32 %v1140_v22  ;;  %1681 = vadd.xlane.f32.xlu1 %v1680_v25 }
 0x926   :  { %v1143_v37 = vpop.xlane.xlu0 %1142  ;;  %v1683_v47 = vsel %vm145_vm0, %v4384_v57, 0.0 }
 0x927   :  { %v4388_v56 = vpop.eup %3425  ;;  %3439 = vrcp.f32 %v1143_v37  ;;  %1684 = vadd.xlane.f32.xlu0 %v1683_v47 }
 0x928   :  { %v1146_v13 = vpop.xlane.xlu1 %1145  ;;  %v1686_v39 = vsel %vm145_vm0, %v4388_v56, 0.0 }
 0x929   :  { %v4392_v35 = vpop.eup %3427  ;;  %3441 = vrcp.f32 %v1146_v13  ;;  %1687 = vadd.xlane.f32.xlu1 %v1686_v39 }
 0x92a   :  { %v3430_v26 = vpop.eup %3429  ;;  %v1149_v8 = vpop.xlane.xlu0 %1148  ;;  %v1689_v53 = vsel %vm145_vm0, %v4392_v35, 0.0 }
 0x92b   :  { %v4396_v36 = vpop.eup %3431  ;;  %3443 = vrcp.f32 %v1149_v8  ;;  %1690 = vadd.xlane.f32.xlu0 %v1689_v53  ;;  %v1193_v32 = vmul.f32 %v3430_v26, %v4286_v24 }
 0x92c   :  { %v3434_v6 = vpop.eup %3433  ;;  %v1152_v17 = vpop.xlane.xlu1 %1151  ;;  %v1692_v3 = vsel %vm145_vm0, %v4396_v36, 0.0 }
 0x92d   :  { %v3436_v21 = vpop.eup %3435  ;;  %3445 = vrcp.f32 %v1152_v17  ;;  %1693 = vadd.xlane.f32.xlu1 %v1692_v3  ;;  %v1194_v7 = vmul.f32 %v3434_v6, %v4290_v44 }
 0x92e   :  { %v1195_v45 = vmul.f32 %v3436_v21, %v4294_v34 }
 0x92f   :  { %v3438_v54 = vpop.eup %3437  ;;  %v1209_v5 = vpack.c.bf16 %v1194_v7, %v1193_v32 }
 0x930   :  { %v1196_v4 = vmul.f32 %v3438_v54, %v4298_v55 }
 0x931   :  { %v3440_v22 = vpop.eup %3439  ;;  %3110 = vmatprep.mubr.msk.bf16.mxu0 %vm145_vm0, %v1209_v5 }
 0x932   :  { %v1210_v25 = vpack.c.bf16 %v1196_v4, %v1195_v45  ;;  %v1197_v47 = vmul.f32 %v3440_v22, %v4302_v38 }
 0x933   :  { %v3442_v37 = vpop.eup %3441 }
 0x934   :  { %3111 = vmatmul.mubr.msk.bf16.vlgmr.msra.gmra.mrb[4].mxu0 %vm145_vm0, %v1210_v25  ;;  %v1198_v13 = vmul.f32 %v3442_v37, %v4306_v16 }
 0x935   :  { %v3444_v24 = vpop.eup %3443  ;;  %3145 = vmatpush3.bf16.msra.mxu0 %v4096_v9 }
 0x936   :  { %v1211_v44 = vpack.c.bf16 %v1198_v13, %v1197_v47  ;;  %v1199_v34 = vmul.f32 %v3444_v24, %v4310_v61 }
 0x937   :  { %v3446_v39 = vpop.eup %3445 }
 0x938   :  { %3114 = vmatprep.mubr.msk.bf16.mxu0 %vm145_vm0, %v1211_v44  ;;  %v1200_v55 = vmul.f32 %v3446_v39, %v4314_v52 }
 0x93a   :  { %v1212_v26 = vpack.c.bf16 %v1200_v55, %v1199_v34 }
 0x93c   :  { %3115 = vmatmul.mubr.msk.bf16.gmra.mrb[8].mxu0 %vm145_vm0, %v1212_v26 }
 0x99c   :  { %v1649_v8 = vpop.xlane.xlu0 %1648 }
 0x99d   :  { %3447 = vrcp.f32 %v1649_v8 }
 0x99e   :  { %v1652_v53 = vpop.xlane.xlu1 %1651 }
 0x99f   :  { %3449 = vrcp.f32 %v1652_v53 }
 0x9a0   :  { %v1655_v38 = vpop.xlane.xlu0 %1654 }
 0x9a1   :  { %3451 = vrcp.f32 %v1655_v38 }
 0x9a2   :  { %v1658_v16 = vpop.xlane.xlu1 %1657 }
 0x9a3   :  { %3453 = vrcp.f32 %v1658_v16 }
 0x9a4   :  { %v1661_v9 = vpop.xlane.xlu0 %1660 }
 0x9a5   :  { %3455 = vrcp.f32 %v1661_v9 }
 0x9a6   :  { %v1664_v6 = vpop.xlane.xlu1 %1663 }
 0x9a7   :  { %v3448_v17 = vpop.eup %3447  ;;  %3457 = vrcp.f32 %v1664_v6 }
 0x9a8   :  { %v1667_v3 = vpop.xlane.xlu0 %1666  ;;  %v1711_v21 = vmul.f32 %v3448_v17, %v4327_v2 }
 0x9a9   :  { %v3450_v61 = vpop.eup %3449  ;;  %3459 = vrcp.f32 %v1667_v3 }
 0x9aa   :  { %v1670_v52 = vpop.xlane.xlu1 %1669  ;;  %v1712_v32 = vmul.f32 %v3450_v61, %v4332_v14 }
 0x9ab   :  { %v3452_v7 = vpop.eup %3451  ;;  %3461 = vrcp.f32 %v1670_v52 }
 0x9ac   :  { %v1673_v54 = vpop.xlane.xlu0 %1672  ;;  %v1727_v5 = vpack.c.bf16 %v1712_v32, %v1711_v21  ;;  %v1713_v4 = vmul.f32 %v3452_v7, %v4337_v18 }
 0x9ad   :  { %v3454_v45 = vpop.eup %3453  ;;  %3463 = vrcp.f32 %v1673_v54 }
 0x9ae   :  { %v1714_v22 = vmul.f32 %v3454_v45, %v4342_v63  ;;  %3146 = vmatprep.mubr.msk.bf16.mxu0 %vm145_vm0, %v1727_v5  ;;  %v1676_v25 = vpop.xlane.xlu1 %1675 }
 0x9af   :  { %v3456_v37 = vpop.eup %3455  ;;  %3465 = vrcp.f32 %v1676_v25 }
 0x9b0   :  { %v1728_v47 = vpack.c.bf16 %v1714_v22, %v1713_v4  ;;  %v1679_v13 = vpop.xlane.xlu0 %1678  ;;  %v1715_v24 = vmul.f32 %v3456_v37, %v4347_v12 }
 0x9b1   :  { %v3458_v2 = vpop.eup %3457  ;;  %3467 = vrcp.f32 %v1679_v13 }
 0x9b2   :  { %3147 = vmatmul.mubr.msk.bf16.vlgmr.msra.gmra.mrb[12].mxu0 %vm145_vm0, %v1728_v47  ;;  %v1682_v14 = vpop.xlane.xlu1 %1681  ;;  %v1716_v44 = vmul.f32 %v3458_v2, %v4352_v60 }
 0x9b3   :  { %v3460_v39 = vpop.eup %3459  ;;  %3469 = vrcp.f32 %v1682_v14 }
 0x9b4   :  { %v1685_v18 = vpop.xlane.xlu0 %1684  ;;  %v1729_v63 = vpack.c.bf16 %v1716_v44, %v1715_v24  ;;  %v1717_v26 = vmul.f32 %v3460_v39, %v4357_v1 }
 0x9b5   :  { %v3462_v34 = vpop.eup %3461  ;;  %3471 = vrcp.f32 %v1685_v18 }
 0x9b6   :  { %3150 = vmatprep.mubr.msk.bf16.mxu0 %vm145_vm0, %v1729_v63  ;;  %v1688_v55 = vpop.xlane.xlu1 %1687  ;;  %v1718_v8 = vmul.f32 %v3462_v34, %v4362_v62 }
 0x9b7   :  { %v3464_v53 = vpop.eup %3463  ;;  %3473 = vrcp.f32 %v1688_v55 }
 0x9b8   :  { %v1691_v38 = vpop.xlane.xlu0 %1690  ;;  %v1730_v16 = vpack.c.bf16 %v1718_v8, %v1717_v26  ;;  %v1719_v9 = vmul.f32 %v3464_v53, %v4367_v19 }
 0x9b9   :  { %v3466_v12 = vpop.eup %3465  ;;  %3475 = vrcp.f32 %v1691_v38 }
 0x9ba   :  { %3151 = vmatmul.mubr.msk.bf16.gmra.mrb[16].mxu0 %vm145_vm0, %v1730_v16  ;;  %v1694_v60 = vpop.xlane.xlu1 %1693  ;;  %v1720_v6 = vmul.f32 %v3466_v12, %v4372_v48 }
 0x9bb   :  { %v3468_v17 = vpop.eup %3467  ;;  %3477 = vrcp.f32 %v1694_v60 }
 0x9bc   :  { %v1731_v3 = vpack.c.bf16 %v1720_v6, %v1719_v9  ;;  %v1721_v1 = vmul.f32 %v3468_v17, %v4376_v11 }
 0x9bd   :  { %v3470_v61 = vpop.eup %3469 }
 0x9be   :  { %3154 = vmatprep.mubr.msk.bf16.mxu0 %vm145_vm0, %v1731_v3  ;;  %v1722_v62 = vmul.f32 %v3470_v61, %v4380_v30  ;;  %v54_v30 = vld [vmem:[%s4745_s7 + $0x8] sm:$0xff] }
 0x9bf   :  { %v3472_v52 = vpop.eup %3471  ;;  %v4451_v44 = vrot.slane %v54_v30, %v3879_v27  ;;  %v4454_v18 = vrot.slane %v54_v30, %v3956_v51  ;;  %v4457_v34 = vrot.slane %v54_v30, %v3959_v29  ;;  %v4461_v53 = vrot.slane %v54_v30, %v4031_v0 }
 0x9c0   :  { %v1732_v21 = vpack.c.bf16 %v1722_v62, %v1721_v1  ;;  %v1723_v7 = vmul.f32 %v3472_v52, %v4384_v57  ;;  %v4441_v57 = vrot.slane %v54_v30, %v3812_v31  ;;  %v4466_v60 = vrot.slane %v54_v30, %v4034_v49 }
 0x9c1   :  { %v3474_v32 = vpop.eup %3473  ;;  %v1374_v9 = vmul.f32 %v4457_v34, %v4202_v40  ;;  %v4472_v61 = vrot.slane %v54_v30, %v4037_v20  ;;  %v1382_v1 = vmul.f32 %v4200_v33, %v4461_v53  ;;  %v1375_v62 = vmul.f32 %v4457_v34, %v4206_v42  ;;  %v3255_v42 = vld [vmem:[%s4749_s11] sm:$0xff]  }
 0x9c2   :  { %3155 = vmatmul.mubr.msk.bf16.gmra.mrb[20].mxu0 %vm145_vm0, %v1732_v21  ;;  %v1724_v19 = vmul.f32 %v3474_v32, %v4388_v56  ;;  %v4444_v56 = vrot.slane %v54_v30, %v3804_v15  ;;  %v1383_v32 = vmul.f32 %v4204_v41, %v4461_v53  ;;  %v1390_v40 = vmul.f32 %v4466_v60, %v4210_v43 }
 0x9c3   :  { %v3476_v48 = vpop.eup %3475  ;;  %v1399_v41 = vmul.f32 %v4212_v46, %v4472_v61  ;;  %3162 = vmatprep.subr.bf16.mxu1 %v3255_v42  ;;  %v3258_v46 = vld [vmem:[%s4749_s11 + $0x18] sm:$0xff]  }
 0x9c4   :  { %v1733_v54 = vpack.c.bf16 %v1724_v19, %v1723_v7  ;;  %v1725_v45 = vmul.f32 %v3476_v48, %v4392_v35  ;;  %v1398_v48 = vmul.f32 %v4208_v28, %v4472_v61  ;;  %3163 = vmatpush3.bf16.msra.mxu1 %v3255_v42  ;;  %v3256_v28 = vld [vmem:[%s4749_s11 + $0x8] sm:$0xff]  }
 0x9c5   :  { %v3478_v5 = vpop.eup %3477  ;;  %3164 = vmatprep.subr.bf16.mxu1 %v3256_v28 }
 0x9c6   :  { %3158 = vmatprep.mubr.msk.bf16.mxu0 %vm145_vm0, %v1733_v54  ;;  %v1726_v11 = vmul.f32 %v3478_v5, %v4396_v36  ;;  %v1391_v54 = vmul.f32 %v4466_v60, %v4214_v23 }
 0x9c8   :  { %v1734_v4 = vpack.c.bf16 %v1726_v11, %v1725_v45  ;;  %3165 = vmatpush3.bf16.msra.mxu1 %v3256_v28 }
 0x9ca   :  { %3159 = vmatmul.mubr.msk.bf16.gmra.mrb[24].mxu0 %vm145_vm0, %v1734_v4  ;;  %v3257_v4 = vld [vmem:[%s4749_s11 + $0x10] sm:$0xff]  }
 0x9cb   :  { %3166 = vmatprep.subr.bf16.mxu1 %v3257_v4 }
 0x9cc   :  { %3167 = vmatpush3.bf16.msra.mxu1 %v3257_v4 }
 0x9cd   :  { %3168 = vmatprep.subr.bf16.mxu1 %v3258_v46 }
 0x9d0   :  { %3169 = vmatpush3.bf16.msra.mxu1 %v3258_v46 }
 0xa07   :  { %v3112_v22 = vpop.f32.mrb[4].mxu0 }
 0xa08   :  { %v1350_v25 = vmul.f32 %v3112_v22, %v4441_v57  ;;  %v1275_v37 = vpop.f32.mrb[5].mxu0 }
 0xa09   :  { %v1342_v35 = vmul.f32 %v4444_v56, %v1275_v37  ;;  %v3113_v36 = vpop.f32.mrb[6].mxu0 }
 0xa0a   :  { %v1351_v47 = vmul.f32 %v3113_v36, %v4441_v57  ;;  %v1278_v13 = vpop.f32.mrb[7].mxu0 }
 0xa0b   :  { %v1352_v2 = vadd.f32 %v1350_v25, %v1342_v35  ;;  %v1343_v14 = vmul.f32 %v4444_v56, %v1278_v13 }
 0xa0d   :  { %v1353_v24 = vadd.f32 %v1351_v47, %v1343_v14 }
 0xa0f   :  { %v3116_v39 = vpop.f32.mrb[8].mxu0 }
 0xa10   :  { %v1291_v63 = vpop.f32.mrb[9].mxu0  ;;  %v1366_v38 = vmul.f32 %v3116_v39, %v4454_v18 }
 0xa11   :  { %v1358_v55 = vmul.f32 %v4451_v44, %v1291_v63  ;;  %v3117_v26 = vpop.f32.mrb[10].mxu0 }
 0xa12   :  { %v1294_v8 = vpop.f32.mrb[11].mxu0  ;;  %v1367_v17 = vmul.f32 %v3117_v26, %v4454_v18 }
 0xa13   :  { %v1360_v16 = vadd.f32 %v1358_v55, %v1352_v2  ;;  %v1359_v12 = vmul.f32 %v4451_v44, %v1294_v8 }
 0xa15   :  { %v1368_v6 = vadd.f32 %v1366_v38, %v1360_v16  ;;  %v1361_v3 = vadd.f32 %v1359_v12, %v1353_v24 }
 0xa17   :  { %v1376_v52 = vadd.f32 %v1374_v9, %v1368_v6  ;;  %v1369_v21 = vadd.f32 %v1367_v17, %v1361_v3 }
 0xa19   :  { %v1384_v7 = vadd.f32 %v1382_v1, %v1376_v52  ;;  %v1377_v19 = vadd.f32 %v1375_v62, %v1369_v21 }
 0xa1b   :  { %v1392_v33 = vadd.f32 %v1390_v40, %v1384_v7  ;;  %v1385_v5 = vadd.f32 %v1383_v32, %v1377_v19 }
 0xa1d   :  { %v1393_v45 = vadd.f32 %v1391_v54, %v1385_v5  ;;  %v1400_v11 = vadd.f32 %v1398_v48, %v1392_v33 }
 0xa1f   :  { %v1401_v43 = vadd.f32 %v1399_v41, %v1393_v45 }
 0xa21   :  { %v1888_v23 = vpack.c.bf16 %v1401_v43, %v1400_v11 }
 0xa23   :  { %3170 = vmatprep.mubr.msk.bf16.mxu1 %vm908_vm6, %v1888_v23  ;;  %v4521_v23 = vld [vmem:[%s4742_s4] sm:$0x3f] }
 0xa24   :  { %v1901_v4 = vrot.slane %v4521_v23, %v3879_v27 }
 0xa85   :  { %v3148_v30 = vpop.f32.mrb[12].mxu0 }
 0xa86   :  { %v1860_v22 = vmul.f32 %v3148_v30, %v4441_v57  ;;  %v1793_v25 = vpop.f32.mrb[13].mxu0 }
 0xa87   :  { %v1856_v37 = vmul.f32 %v1793_v25, %v4444_v56  ;;  %v3149_v35 = vpop.f32.mrb[14].mxu0 }
 0xa88   :  { %v1861_v36 = vmul.f32 %v3149_v35, %v4441_v57  ;;  %v1796_v47 = vpop.f32.mrb[15].mxu0 }
 0xa89   :  { %v1862_v13 = vadd.f32 %v1860_v22, %v1856_v37  ;;  %v1857_v2 = vmul.f32 %v1796_v47, %v4444_v56 }
 0xa8b   :  { %v1863_v14 = vadd.f32 %v1861_v36, %v1857_v2 }
 0xa8d   :  { %v3152_v24 = vpop.f32.mrb[16].mxu0 }
 0xa8e   :  { %v1809_v39 = vpop.f32.mrb[17].mxu0  ;;  %v1868_v8 = vmul.f32 %v3152_v24, %v4454_v18 }
 0xa8f   :  { %v1864_v63 = vmul.f32 %v1809_v39, %v4451_v44  ;;  %v3153_v55 = vpop.f32.mrb[18].mxu0 }
 0xa90   :  { %v1812_v26 = vpop.f32.mrb[19].mxu0  ;;  %v1869_v12 = vmul.f32 %v3153_v55, %v4454_v18 }
 0xa91   :  { %v1866_v38 = vadd.f32 %v1864_v63, %v1862_v13  ;;  %v1865_v16 = vmul.f32 %v1812_v26, %v4451_v44 }
 0xa93   :  { %v1867_v9 = vadd.f32 %v1865_v16, %v1863_v14  ;;  %v1870_v57 = vadd.f32 %v1868_v8, %v1866_v38 }
 0xa95   :  { %v3156_v6 = vpop.f32.mrb[20].mxu0  ;;  %v1871_v17 = vadd.f32 %v1869_v12, %v1867_v9 }
 0xa96   :  { %v1825_v3 = vpop.f32.mrb[21].mxu0  ;;  %v1876_v52 = vmul.f32 %v3156_v6, %v4461_v53 }
 0xa97   :  { %v1872_v56 = vmul.f32 %v1825_v3, %v4457_v34  ;;  %v3157_v1 = vpop.f32.mrb[22].mxu0 }
 0xa98   :  { %v1828_v62 = vpop.f32.mrb[23].mxu0  ;;  %v1877_v40 = vmul.f32 %v3157_v1, %v4461_v53 }
 0xa99   :  { %v1874_v21 = vadd.f32 %v1872_v56, %v1870_v57  ;;  %v1873_v32 = vmul.f32 %v1828_v62, %v4457_v34 }
 0xa9b   :  { %v1875_v7 = vadd.f32 %v1873_v32, %v1871_v17  ;;  %v1878_v44 = vadd.f32 %v1876_v52, %v1874_v21  ;;  %v3259_v32 = vld [vmem:[%s4750_s12] sm:$0xff]  }
 0xa9c   :  { %3174 = vmatprep.subr.bf16.mxu1 %v3259_v32 }
 0xa9d   :  { %v3160_v19 = vpop.f32.mrb[24].mxu0  ;;  %v1879_v18 = vadd.f32 %v1877_v40, %v1875_v7  ;;  %v3260_v40 = vld [vmem:[%s4750_s12 + $0x8] sm:$0xff]  }
 0xa9e   :  { %v1841_v48 = vpop.f32.mrb[25].mxu0  ;;  %v1884_v42 = vmul.f32 %v3160_v19, %v4472_v61 }
 0xa9f   :  { %v1880_v54 = vmul.f32 %v1841_v48, %v4466_v60  ;;  %v3161_v33 = vpop.f32.mrb[26].mxu0 }
 0xaa0   :  { %v1844_v5 = vpop.f32.mrb[27].mxu0  ;;  %v1885_v28 = vmul.f32 %v3161_v33, %v4472_v61 }
 0xaa1   :  { %v1882_v41 = vadd.f32 %v1880_v54, %v1878_v44  ;;  %v1881_v45 = vmul.f32 %v1844_v5, %v4466_v60 }
 0xaa3   :  { %v1886_v11 = vadd.f32 %v1884_v42, %v1882_v41  ;;  %v1883_v34 = vadd.f32 %v1881_v45, %v1879_v18 }
 0xaa5   :  { %v1887_v43 = vadd.f32 %v1885_v28, %v1883_v34  ;;  %v2040_v28 = vrot.slane %v4521_v23, %v3956_v51 }
 0xaa7   :  { %v1889_v53 = vpack.c.bf16 %v1887_v43, %v1886_v11 }
 0xaa9   :  { %3171 = vmatmul.mubr.msk.bf16.vlgmr.msra.gmra.mrb[52].mxu1 %vm908_vm6, %v1889_v53 }
 0xaaa   :  { %3175 = vmatpush3.bf16.msra.mxu1 %v3259_v32  ;;  %v3270_v32 = vld [vmem:[%s4741_s3 + $0x48] sm:$0xff]  }
 0xaab   :  { %3176 = vmatprep.subr.bf16.mxu1 %v3260_v40 }
 0xaae   :  { %3177 = vmatpush3.bf16.msra.mxu1 %v3260_v40  ;;  %v3271_v40 = vld [vmem:[%s4741_s3 + $0x50] sm:$0xff]  }
 0xb7c   :  { %v3172_v46 = vpop.f32.mrb[52].mxu1 }
 0xb7d   :  { %v1966_v30 = vpop.f32.mrb[53].mxu1  ;;  %v1975_v22 = vadd.f32 %v3172_v46, %v1901_v4 }
 0xb7e   :  { %v1967_v60 = vadd.f32 %v1966_v30, %v1901_v4  ;;  %v3173_v25 = vpop.f32.mrb[54].mxu1  ;;  %v2048_v30 = vrot.slane %v4521_v23, %v3959_v29 }
 0xb7f   :  { %v1969_v37 = vpop.f32.mrb[55].mxu1  ;;  %v1978_v35 = vadd.f32 %v3173_v25, %v1901_v4  ;;  %v1983_v47 = vadd.f32 %v1975_v22, %v4009_v58 }
 0xb80   :  { %v1981_v61 = vadd.f32 %v1967_v60, %v4001_v50  ;;  %v1970_v36 = vadd.f32 %v1969_v37, %v1901_v4 }
 0xb81   :  { %v1984_v14 = vadd.f32 %v1978_v35, %v4011_v59  ;;  %v1991_v39 = vsel %vm59_vm1, %v1983_v47, 0.0 }
 0xb82   :  { %v1982_v13 = vadd.f32 %v1970_v36, %v4004_v10  ;;  %v1985_v2 = vsel %vm59_vm1, %v1981_v61, 0.0 }
 0xb83   :  { %1986 = vadd.xlane.f32.xlu0 %v1985_v2  ;;  %v1994_v63 = vsel %vm59_vm1, %v1984_v14, 0.0 }
 0xb84   :  { %v1988_v24 = vsel %vm59_vm1, %v1982_v13, 0.0 }
 0xb85   :  { %1989 = vadd.xlane.f32.xlu1 %v1988_v24 }
 0xb87   :  { %1992 = vadd.xlane.f32.xlu0 %v1991_v39 }
 0xb89   :  { %1995 = vadd.xlane.f32.xlu1 %v1994_v63  ;;  %v3261_v63 = vld [vmem:[%s4741_s3] sm:$0xff]  }
 0xb8a   :  { %3186 = vmatprep.mubr.msk.bf16.mxu0 %vm59_vm1, %v3261_v63 }
 0xc10   :  { %v1987_v50 = vpop.xlane.xlu0 %1986 }
 0xc11   :  { %v1997_v55 = vmul.f32 0.03125, %v1987_v50  ;;  %v4568_v50 = vld [vmem:[%s4744_s6] sm:$0xff] }
 0xc12   :  { %v1990_v26 = vpop.xlane.xlu1 %1989 }
 0xc13   :  { %v2001_v58 = vsub.f32 %v1981_v61, %v1997_v55  ;;  %v1998_v8 = vmul.f32 0.03125, %v1990_v26  ;;  %v2062_v55 = vrot.slane %v4568_v50, %v3804_v15 }
 0xc14   :  { %v1993_v10 = vpop.xlane.xlu0 %1992 }
 0xc15   :  { %v2002_v38 = vsub.f32 %v1982_v13, %v1998_v8  ;;  %v1999_v16 = vmul.f32 0.03125, %v1993_v10  ;;  %v2005_v12 = vmul.f32 %v2001_v58, %v2001_v58 }
 0xc16   :  { %v1996_v9 = vpop.xlane.xlu1 %1995 }
 0xc17   :  { %v2003_v59 = vsub.f32 %v1983_v47, %v1999_v16  ;;  %v2000_v57 = vmul.f32 0.03125, %v1996_v9  ;;  %v2009_v6 = vsel %vm59_vm1, %v2005_v12, 0.0  ;;  %v2006_v17 = vmul.f32 %v2002_v38, %v2002_v38 }
 0xc18   :  { %2010 = vadd.xlane.f32.xlu0 %v2009_v6  ;;  %v3262_v6 = vld [vmem:[%s4741_s3 + $0x8] sm:$0xff]  }
 0xc19   :  { %v2004_v3 = vsub.f32 %v1984_v14, %v2000_v57  ;;  %v2012_v56 = vsel %vm59_vm1, %v2006_v17, 0.0  ;;  %v2007_v1 = vmul.f32 %v2003_v59, %v2003_v59  ;;  %v3263_v17 = vld [vmem:[%s4741_s3 + $0x10] sm:$0xff]  }
 0xc1a   :  { %2013 = vadd.xlane.f32.xlu1 %v2012_v56  ;;  %v3265_v56 = vld [vmem:[%s4741_s3 + $0x20] sm:$0xff]  }
 0xc1b   :  { %v2015_v62 = vsel %vm59_vm1, %v2007_v1, 0.0  ;;  %v2008_v52 = vmul.f32 %v2004_v3, %v2004_v3  ;;  %v3266_v1 = vld [vmem:[%s4741_s3 + $0x28] sm:$0xff]  }
 0xc1c   :  { %2016 = vadd.xlane.f32.xlu0 %v2015_v62  ;;  %v3267_v62 = vld [vmem:[%s4741_s3 + $0x30] sm:$0xff]  }
 0xc1d   :  { %v2018_v21 = vsel %vm59_vm1, %v2008_v52, 0.0  ;;  %v3268_v52 = vld [vmem:[%s4741_s3 + $0x38] sm:$0xff]  }
 0xc1e   :  { %2019 = vadd.xlane.f32.xlu1 %v2018_v21  ;;  %v3269_v21 = vld [vmem:[%s4741_s3 + $0x40] sm:$0xff]  }
 0xca5   :  { %v2011_v7 = vpop.xlane.xlu0 %2010 }
 0xca6   :  { %v2021_v44 = vmul.f32 0.03125, %v2011_v7  ;;  %v3272_v7 = vld [vmem:[%s4741_s3 + $0x58] sm:$0xff]  }
 0xca7   :  { %v2014_v19 = vpop.xlane.xlu1 %2013 }
 0xca8   :  { %v2025_v18 = vadd.f32 1e-05, %v2021_v44  ;;  %v2022_v48 = vmul.f32 0.03125, %v2014_v19  ;;  %v3273_v44 = vld [vmem:[%s4741_s3 + $0x60] sm:$0xff]   ;;  %v3274_v19 = vld [vmem:[%s4741_s3 + $0x68] sm:$0xff]  }
 0xca9   :  { %v2017_v54 = vpop.xlane.xlu0 %2016 }
 0xcaa   :  { %3479 = vrsqrt.f32 %v2025_v18  ;;  %v2026_v33 = vadd.f32 1e-05, %v2022_v48  ;;  %v2023_v5 = vmul.f32 0.03125, %v2017_v54  ;;  %v3275_v18 = vld [vmem:[%s4741_s3 + $0x70] sm:$0xff]   ;;  %v3276_v48 = vld [vmem:[%s4741_s3 + $0x78] sm:$0xff]   ;;  %v3277_v54 = vld [vmem:[%s4741_s3 + $0x80] sm:$0xff]  }
 0xcab   :  { %v2020_v42 = vpop.xlane.xlu1 %2019 }
 0xcac   :  { %3481 = vrsqrt.f32 %v2026_v33  ;;  %v2027_v41 = vadd.f32 1e-05, %v2023_v5  ;;  %v2024_v45 = vmul.f32 0.03125, %v2020_v42  ;;  %v3278_v33 = vld [vmem:[%s4741_s3 + $0x88] sm:$0xff]   ;;  %v3279_v5 = vld [vmem:[%s4751_s13] sm:$0xff]  }
 0xcad   :  { %3222 = vmatprep.subr.bf16.mxu1 %v3279_v5  ;;  %v3280_v42 = vld [vmem:[%s4751_s13 + $0x8] sm:$0xff]  }
 0xcae   :  { %3483 = vrsqrt.f32 %v2027_v41  ;;  %v2028_v11 = vadd.f32 1e-05, %v2024_v45  ;;  %v3281_v41 = vld [vmem:[%s4751_s13 + $0x10] sm:$0xff]   ;;  %v3282_v45 = vld [vmem:[%s4751_s13 + $0x18] sm:$0xff]  }
 0xcb0   :  { %3485 = vrsqrt.f32 %v2028_v11  ;;  %v3283_v11 = vld [vmem:[%s4751_s13 + $0x20] sm:$0xff]  }
 0xcb4   :  { %v3480_v34 = vpop.eup %3479 }
 0xcb5   :  { %v2033_v43 = vmul.f32 %v3480_v34, %v2001_v58  ;;  %v3285_v34 = vld [vmem:[%s4751_s13 + $0x30] sm:$0xff]  }
 0xcb6   :  { %v3482_v53 = vpop.eup %3481 }
 0xcb7   :  { %v2034_v4 = vmul.f32 %v3482_v53, %v2002_v38  ;;  %v2041_v46 = vmul.f32 %v2040_v28, %v2033_v43  ;;  %v3286_v43 = vld [vmem:[%s4751_s13 + $0x38] sm:$0xff]  }
 0xcb8   :  { %v3484_v22 = vpop.eup %3483 }
 0xcb9   :  { %v2035_v60 = vmul.f32 %v3484_v22, %v2003_v59  ;;  %v2042_v25 = vmul.f32 %v2040_v28, %v2034_v4  ;;  %v4547_v36 = vadd.f32 %v2048_v30, %v2041_v46  ;;  %v2492_v22 = vrot.slane %v4568_v50, %v3879_v27 }
 0xcba   :  { %v3486_v37 = vpop.eup %3485 }
 0xcbb   :  { %v2043_v61 = vmul.f32 %v2040_v28, %v2035_v60  ;;  %v2036_v35 = vmul.f32 %v3486_v37, %v2004_v3  ;;  %v4549_v47 = vadd.f32 %v2048_v30, %v2042_v25  ;;  %v3264_v3 = vld [vmem:[%s4741_s3 + $0x18] sm:$0xff]   ;;  %v2504_v60 = vrot.slane %v4568_v50, %v3956_v51 }
 0xcbd   :  { %v2044_v13 = vmul.f32 %v2040_v28, %v2036_v35  ;;  %v2053_v2 = vpack.c.bf16 %v4549_v47, %v4547_v36  ;;  %v4554_v14 = vadd.f32 %v2048_v30, %v2043_v61  ;;  %v3284_v28 = vld [vmem:[%s4751_s13 + $0x28] sm:$0xff]  }
 0xcbf   :  { %3178 = vmatprep.mubr.msk.bf16.mxu1 %vm59_vm1, %v2053_v2  ;;  %v4556_v24 = vadd.f32 %v2048_v30, %v2044_v13 }
 0xcc1   :  { %v2054_v39 = vpack.c.bf16 %v4556_v24, %v4554_v14 }
 0xcc3   :  { %3179 = vmatmul.mubr.msk.bf16.vlgmr.msra.gmra.mrb[56].mxu1 %vm59_vm1, %v2054_v39 }
 0xcc4   :  { %3223 = vmatpush3.bf16.msra.mxu1 %v3279_v5 }
 0xcc5   :  { %3224 = vmatprep.subr.bf16.mxu1 %v3280_v42 }
 0xcc8   :  { %3225 = vmatpush3.bf16.msra.mxu1 %v3280_v42 }
 0xcc9   :  { %3226 = vmatprep.subr.bf16.mxu1 %v3281_v41 }
 0xccc   :  { %3227 = vmatpush3.bf16.msra.mxu1 %v3281_v41 }
 0xccd   :  { %3228 = vmatprep.subr.bf16.mxu1 %v3282_v45 }
 0xcd0   :  { %3229 = vmatpush3.bf16.msra.mxu1 %v3282_v45  ;;  %v2540_v45 = vrot.slane %v4568_v50, %v4034_v49 }
 0xcd1   :  { %3230 = vmatprep.subr.bf16.mxu1 %v3283_v11 }
 0xcd4   :  { %3231 = vmatpush3.bf16.msra.mxu1 %v3283_v11 }
 0xcd5   :  { %3232 = vmatprep.subr.bf16.mxu1 %v3284_v28 }
 0xcd8   :  { %3233 = vmatpush3.bf16.msra.mxu1 %v3284_v28 }
 0xcd9   :  { %3234 = vmatprep.subr.bf16.mxu1 %v3285_v34 }
 0xcdc   :  { %3235 = vmatpush3.bf16.msra.mxu1 %v3285_v34 }
 0xcdd   :  { %3236 = vmatprep.subr.bf16.mxu1 %v3286_v43 }
 0xce0   :  { %3237 = vmatpush3.bf16.msra.mxu1 %v3286_v43 }
 0xd96   :  { %v3180_v26 = vpop.f32.mrb[56].mxu1 }
 0xd97   :  { %v2115_v58 = vpop.f32.mrb[57].mxu1  ;;  %v2124_v10 = vadd.f32 %v3180_v26, %v2062_v55 }
 0xd98   :  { %v3181_v8 = vpop.f32.mrb[58].mxu1  ;;  %v2116_v12 = vadd.f32 %v2115_v58, %v2062_v55 }
 0xd99   :  { %v2127_v38 = vadd.f32 %v3181_v8, %v2062_v55  ;;  %v2118_v16 = vpop.f32.mrb[59].mxu1 }
 0xd9a   :  { %v2119_v9 = vadd.f32 %v2118_v16, %v2062_v55 }
 0xd9b   :  { %v2167_v59 = vpack.c.bf16 %v2127_v38, %v2124_v10 }
 0xd9c   :  { %v2166_v57 = vpack.c.bf16 %v2119_v9, %v2116_v12  ;;  %v2516_v12 = vrot.slane %v4568_v50, %v3959_v29 }
 0xd9e   :  { %3182 = vmatprep.subr.bf16.mxu0 %v2166_v57 }
 0xd9f   :  { %3183 = vmatpush3.bf16.msra.mxu0 %v2166_v57 }
 0xda0   :  { %3184 = vmatprep.subr.bf16.mxu0 %v2167_v59 }
 0xda3   :  { %3185 = vmatpush3.bf16.msra.mxu0 %v2167_v59 }
 0xda6   :  { %3187 = vmatmul.mubr.msk.bf16.vlgmr.msra.gmra.mrb[28].mxu0 %vm59_vm1, %v3262_v6 }
 0xda7   :  { %3190 = vmatprep.mubr.msk.bf16.mxu0 %vm59_vm1, %v3263_v17 }
 0xdae   :  { %3191 = vmatmul.mubr.msk.bf16.gmra.mrb[32].mxu0 %vm59_vm1, %v3264_v3 }
 0xdaf   :  { %3194 = vmatprep.mubr.msk.bf16.mxu0 %vm59_vm1, %v3265_v56 }
 0xdb6   :  { %3195 = vmatmul.mubr.msk.bf16.gmra.mrb[36].mxu0 %vm59_vm1, %v3266_v1 }
 0xdb7   :  { %3198 = vmatprep.mubr.msk.bf16.mxu0 %vm59_vm1, %v3267_v62 }
 0xdbe   :  { %3199 = vmatmul.mubr.msk.bf16.gmra.mrb[40].mxu0 %vm59_vm1, %v3268_v52 }
 0xdbf   :  { %3202 = vmatprep.mubr.msk.bf16.mxu0 %vm59_vm1, %v3269_v21 }
 0xdc6   :  { %3203 = vmatmul.mubr.msk.bf16.gmra.mrb[44].mxu0 %vm59_vm1, %v3270_v32  ;;  %v2528_v32 = vrot.slane %v4568_v50, %v4031_v0 }
 0xdc7   :  { %3206 = vmatprep.mubr.msk.bf16.mxu0 %vm59_vm1, %v3271_v40 }
 0xdce   :  { %3207 = vmatmul.mubr.msk.bf16.gmra.mrb[48].mxu0 %vm59_vm1, %v3272_v7 }
 0xdcf   :  { %3210 = vmatprep.mubr.msk.bf16.mxu0 %vm59_vm1, %v3273_v44 }
 0xdd6   :  { %3211 = vmatmul.mubr.msk.bf16.gmra.mrb[52].mxu0 %vm59_vm1, %v3274_v19 }
 0xdd7   :  { %3214 = vmatprep.mubr.msk.bf16.mxu0 %vm59_vm1, %v3275_v18 }
 0xdde   :  { %3215 = vmatmul.mubr.msk.bf16.gmra.mrb[56].mxu0 %vm59_vm1, %v3276_v48 }
 0xddf   :  { %3218 = vmatprep.mubr.msk.bf16.mxu0 %vm59_vm1, %v3277_v54 }
 0xde6   :  { %3219 = vmatmul.mubr.msk.bf16.gmra.mrb[60].mxu0 %vm59_vm1, %v3278_v33 }
 0xe79   :  { %v3188_v53 = vpop.f32.mrb[28].mxu0 }
 0xe7a   :  { %v2346_v4 = vpop.f32.mrb[29].mxu0  ;;  %v2495_v37 = vmul.f32 %v3188_v53, %v2492_v22 }
 0xe7b   :  { %v3189_v46 = vpop.f32.mrb[30].mxu0  ;;  %v2493_v13 = vmul.f32 %v2492_v22, %v2346_v4 }
 0xe7c   :  { %v2349_v30 = vpop.f32.mrb[31].mxu0  ;;  %v2496_v63 = vmul.f32 %v3189_v46, %v2492_v22 }
 0xe7d   :  { %v2494_v8 = vmul.f32 %v2492_v22, %v2349_v30 }
 0xe81   :  { %v3192_v25 = vpop.f32.mrb[32].mxu0 }
 0xe82   :  { %v2507_v61 = vmul.f32 %v3192_v25, %v2504_v60  ;;  %v2362_v35 = vpop.f32.mrb[33].mxu0 }
 0xe83   :  { %v2505_v2 = vmul.f32 %v2504_v60, %v2362_v35  ;;  %v3193_v39 = vpop.f32.mrb[34].mxu0 }
 0xe84   :  { %v2511_v55 = vadd.f32 %v2507_v61, %v2495_v37  ;;  %v2508_v26 = vmul.f32 %v3193_v39, %v2504_v60  ;;  %v2365_v58 = vpop.f32.mrb[35].mxu0  ;;  %v2552_v61 = vrot.slane %v4568_v50, %v4037_v20 }
 0xe85   :  { %v2509_v10 = vadd.f32 %v2505_v2, %v2493_v13  ;;  %v2506_v38 = vmul.f32 %v2504_v60, %v2365_v58 }
 0xe86   :  { %v2512_v16 = vadd.f32 %v2508_v26, %v2496_v63 }
 0xe87   :  { %v2510_v51 = vadd.f32 %v2506_v38, %v2494_v8 }
 0xe89   :  { %v3196_v9 = vpop.f32.mrb[36].mxu0 }
 0xe8a   :  { %v2519_v59 = vmul.f32 %v3196_v9, %v2516_v12  ;;  %v2378_v57 = vpop.f32.mrb[37].mxu0 }
 0xe8b   :  { %v2517_v6 = vmul.f32 %v2516_v12, %v2378_v57  ;;  %v3197_v17 = vpop.f32.mrb[38].mxu0 }
 0xe8c   :  { %v2523_v3 = vadd.f32 %v2519_v59, %v2511_v55  ;;  %v2520_v56 = vmul.f32 %v3197_v17, %v2516_v12  ;;  %v2381_v1 = vpop.f32.mrb[39].mxu0  ;;  %v52_v55 = vld [vmem:[%s4744_s6 + $0x8] sm:$0x7]  ;;  %s3528_s6 = smov [#allocation2]  }
 0xe8d   :  { %v2521_v62 = vadd.f32 %v2517_v6, %v2509_v10  ;;  %v2518_v52 = vmul.f32 %v2516_v12, %v2381_v1  ;;  %v2564_v12 = vrot.slane %v52_v55, %v3804_v15  ;;  %s2845_s12 = sshll.u32 %s3528_s6, 4  ;;  %s2846_s12 = int_to_ptr.vmem [resolvable:$true] %s2845_s12 }
 0xe8e   :  { %v2524_v21 = vadd.f32 %v2520_v56, %v2512_v16  ;;  %s3504_s0 = scalar_lea.vmem %s2846_s12, 512  ;;  %p3509_p1 = scmp.lt.s32.totalorder %s2846_s12, %s2846_s12 }
 0xe8f   :  { %v2522_v40 = vadd.f32 %v2518_v52, %v2510_v51  ;;  %p3505_p0 = scmp.ne.s32.totalorder %s2846_s12, %s3504_s0  ;;  %p3510_p2 = scmp.lt.s32.totalorder %s3504_s0, %s3504_s0 }
 0xe91   :  { %v3200_v7 = vpop.f32.mrb[40].mxu0  ;;  %p3511_p3 = por %p3510_p2, %p3509_p1 }
 0xe92   :  { %v2531_v44 = vmul.f32 %v3200_v7, %v2528_v32  ;;  %v2394_v19 = vpop.f32.mrb[41].mxu0 }
 0xe93   :  { %v2529_v29 = vmul.f32 %v2528_v32, %v2394_v19  ;;  %v3201_v18 = vpop.f32.mrb[42].mxu0  ;;  %p3512_p4 = pnand %p3511_p3, %p3505_p0 }
 0xe94   :  { %v2535_v48 = vadd.f32 %v2531_v44, %v2523_v3  ;;  %v2532_v54 = vmul.f32 %v3201_v18, %v2528_v32  ;;  %v2397_v33 = vpop.f32.mrb[43].mxu0 }
 0xe95   :  { %v2533_v5 = vadd.f32 %v2529_v29, %v2521_v62  ;;  %v2530_v42 = vmul.f32 %v2528_v32, %v2397_v33 }
 0xe96   :  { %v2536_v41 = vadd.f32 %v2532_v54, %v2524_v21  ;;  %v2576_v21 = vrot.slane %v52_v55, %v3812_v31 }
 0xe97   :  { %v2534_v11 = vadd.f32 %v2530_v42, %v2522_v40  ;;  %v2588_v42 = vrot.slane %v52_v55, %v3879_v27 }
 0xe99   :  { %v3204_v28 = vpop.f32.mrb[44].mxu0 }
 0xe9a   :  { %v2543_v34 = vmul.f32 %v3204_v28, %v2540_v45  ;;  %v2410_v43 = vpop.f32.mrb[45].mxu0  ;;  %v2600_v28 = vrot.slane %v4568_v50, %v3812_v31 }
 0xe9b   :  { %v2541_v53 = vmul.f32 %v2540_v45, %v2410_v43  ;;  %v3205_v4 = vpop.f32.mrb[46].mxu0 }
 0xe9c   :  { %v2547_v46 = vadd.f32 %v2543_v34, %v2535_v48  ;;  %v2544_v30 = vmul.f32 %v3205_v4, %v2540_v45  ;;  %v2413_v22 = vpop.f32.mrb[47].mxu0 }
 0xe9d   :  { %v2545_v60 = vadd.f32 %v2541_v53, %v2533_v5  ;;  %v2542_v25 = vmul.f32 %v2540_v45, %v2413_v22 }
 0xe9e   :  { %v2548_v37 = vadd.f32 %v2544_v30, %v2536_v41 }
 0xe9f   :  { %v2546_v35 = vadd.f32 %v2542_v25, %v2534_v11 }
 0xea1   :  { %v3208_v13 = vpop.f32.mrb[48].mxu0 }
 0xea2   :  { %v2555_v2 = vmul.f32 %v3208_v13, %v2552_v61  ;;  %v2426_v39 = vpop.f32.mrb[49].mxu0 }
 0xea3   :  { %v2553_v49 = vmul.f32 %v2552_v61, %v2426_v39  ;;  %v3209_v63 = vpop.f32.mrb[50].mxu0 }
 0xea4   :  { %v2559_v26 = vadd.f32 %v2555_v2, %v2547_v46  ;;  %v2556_v58 = vmul.f32 %v3209_v63, %v2552_v61  ;;  %v2429_v8 = vpop.f32.mrb[51].mxu0 }
 0xea5   :  { %v2557_v10 = vadd.f32 %v2553_v49, %v2545_v60  ;;  %v2554_v38 = vmul.f32 %v2552_v61, %v2429_v8 }
 0xea6   :  { %v2560_v16 = vadd.f32 %v2556_v58, %v2548_v37 }
 0xea7   :  { %v2558_v51 = vadd.f32 %v2554_v38, %v2546_v35 }
 0xea9   :  { %v3212_v20 = vpop.f32.mrb[52].mxu0 }
 0xeaa   :  { %v2567_v9 = vmul.f32 %v3212_v20, %v2564_v12  ;;  %v2442_v59 = vpop.f32.mrb[53].mxu0 }
 0xeab   :  { %v2565_v57 = vmul.f32 %v2564_v12, %v2442_v59  ;;  %v3213_v6 = vpop.f32.mrb[54].mxu0 }
 0xeac   :  { %v2571_v17 = vadd.f32 %v2567_v9, %v2559_v26  ;;  %v2568_v3 = vmul.f32 %v3213_v6, %v2564_v12  ;;  %v2445_v56 = vpop.f32.mrb[55].mxu0 }
 0xead   :  { %v2569_v1 = vadd.f32 %v2565_v57, %v2557_v10  ;;  %v2566_v62 = vmul.f32 %v2564_v12, %v2445_v56 }
 0xeae   :  { %v2572_v52 = vadd.f32 %v2568_v3, %v2560_v16 }
 0xeaf   :  { %v2570_v32 = vadd.f32 %v2566_v62, %v2558_v51 }
 0xeb1   :  { %v3216_v40 = vpop.f32.mrb[56].mxu0 }
 0xeb2   :  { %v2579_v7 = vmul.f32 %v3216_v40, %v2576_v21  ;;  %v2458_v44 = vpop.f32.mrb[57].mxu0 }
 0xeb3   :  { %v2577_v19 = vmul.f32 %v2576_v21, %v2458_v44  ;;  %v3217_v15 = vpop.f32.mrb[58].mxu0 }
 0xeb4   :  { %v2583_v29 = vadd.f32 %v2579_v7, %v2571_v17  ;;  %v2580_v18 = vmul.f32 %v3217_v15, %v2576_v21  ;;  %v2461_v48 = vpop.f32.mrb[59].mxu0 }
 0xeb5   :  { %v2581_v54 = vadd.f32 %v2577_v19, %v2569_v1  ;;  %v2578_v33 = vmul.f32 %v2576_v21, %v2461_v48 }
 0xeb6   :  { %v2584_v5 = vadd.f32 %v2580_v18, %v2572_v52 }
 0xeb7   :  { %v2582_v41 = vadd.f32 %v2578_v33, %v2570_v32 }
 0xeb9   :  { %v3220_v45 = vpop.f32.mrb[60].mxu0 }
 0xeba   :  { %v2591_v11 = vmul.f32 %v3220_v45, %v2588_v42  ;;  %v2474_v34 = vpop.f32.mrb[61].mxu0 }
 0xebb   :  { %v2589_v43 = vmul.f32 %v2588_v42, %v2474_v34  ;;  %v3221_v53 = vpop.f32.mrb[62].mxu0 }
 0xebc   :  { %v2595_v4 = vadd.f32 %v2591_v11, %v2583_v29  ;;  %v2592_v46 = vmul.f32 %v3221_v53, %v2588_v42  ;;  %v2477_v30 = vpop.f32.mrb[63].mxu0 }
 0xebd   :  { %v2593_v22 = vadd.f32 %v2589_v43, %v2581_v54  ;;  %v2590_v60 = vmul.f32 %v2588_v42, %v2477_v30 }
 0xebe   :  { %v4684_v25 = vadd.f32 %v2600_v28, %v2595_v4  ;;  %v2596_v37 = vadd.f32 %v2592_v46, %v2584_v5 }
 0xebf   :  { %v4686_v61 = vadd.f32 %v2600_v28, %v2593_v22  ;;  %v2594_v27 = vadd.f32 %v2590_v60, %v2582_v41 }
 0xec0   :  { %v4689_v35 = vmul.f32 0.70710677, %v4684_v25  ;;  %v4691_v13 = vadd.f32 %v2600_v28, %v2596_v37 }
 0xec1   :  { %v4694_v31 = vmul.f32 0.70710677, %v4686_v61  ;;  %v4696_v50 = vadd.f32 %v2600_v28, %v2594_v27 }
 0xec2   :  { %v2615_v2 = vand.u32 2147483647, %v4689_v35  ;;  %v4700_v39 = vmul.f32 0.70710677, %v4691_v13  ;;  %vm2695_vm7 = vcmp.ge.f32.partialorder %v4689_v35, 0.0 }
 0xec3   :  { %v2613_v49 = vand.u32 2147483647, %v4694_v31  ;;  %v4704_v63 = vmul.f32 0.70710677, %v4696_v50  ;;  %vm2693_vm8 = vcmp.ge.f32.partialorder %v4694_v31, 0.0 }
 0xec4   :  { %v2619_v55 = vmul.f32 0.3275911, %v2615_v2  ;;  %v2616_v26 = vand.u32 2147483647, %v4700_v39  ;;  %v2671_v9 = vsub.f32 0.0, %v2615_v2  ;;  %vm2696_vm9 = vcmp.ge.f32.partialorder %v4700_v39, 0.0 }
 0xec5   :  { %v2617_v58 = vmul.f32 0.3275911, %v2613_v49  ;;  %v2614_v8 = vand.u32 2147483647, %v4704_v63  ;;  %v2669_v59 = vsub.f32 0.0, %v2613_v49  ;;  %vm2694_vm10 = vcmp.ge.f32.partialorder %v4704_v63, 0.0 }
 0xec6   :  { %v2623_v10 = vadd.f32 1.0, %v2619_v55  ;;  %v2620_v38 = vmul.f32 0.3275911, %v2616_v26  ;;  %v2675_v6 = vmul.f32 %v2671_v9, %v2615_v2  ;;  %v2672_v17 = vsub.f32 0.0, %v2616_v26 }
 0xec7   :  { %v2621_v16 = vadd.f32 1.0, %v2617_v58  ;;  %v2618_v12 = vmul.f32 0.3275911, %v2614_v8  ;;  %v2673_v1 = vmul.f32 %v2669_v59, %v2613_v49  ;;  %v2670_v62 = vsub.f32 0.0, %v2614_v8 }
 0xec8   :  { %3487 = vrcp.f32 %v2623_v10  ;;  %v2624_v51 = vadd.f32 1.0, %v2620_v38  ;;  %v2681_v40 = vmul.f32 1.442695, %v2675_v6  ;;  %v2676_v7 = vmul.f32 %v2672_v17, %v2616_v26 }
 0xec9   :  { %3489 = vrcp.f32 %v2621_v16  ;;  %v2622_v20 = vadd.f32 1.0, %v2618_v12  ;;  %v2677_v15 = vmul.f32 1.442695, %v2673_v1  ;;  %v2674_v48 = vmul.f32 %v2670_v62, %v2614_v8 }
 0xeca   :  { %3491 = vrcp.f32 %v2624_v51  ;;  %v2683_v41 = vmul.f32 1.442695, %v2676_v7 }
 0xecb   :  { %3493 = vrcp.f32 %v2622_v20  ;;  %v2679_v43 = vmul.f32 1.442695, %v2674_v48 }
 0xecc   :  { %3495 = vpow2.f32 %v2681_v40 }
 0xecd   :  { %3497 = vpow2.f32 %v2677_v15 }
 0xece   :  { %3499 = vpow2.f32 %v2683_v41 }
 0xecf   :  { %3501 = vpow2.f32 %v2679_v43 }
 0xed2   :  { %v3488_v57 = vpop.eup %3487 }
 0xed3   :  { %v3490_v3 = vpop.eup %3489  ;;  %v2635_v56 = vmul.f32 1.0614054, %v3488_v57 }
 0xed4   :  { %v2633_v52 = vmul.f32 1.0614054, %v3490_v3  ;;  %v3492_v32 = vpop.eup %3491 }
 0xed5   :  { %v2639_v21 = vadd.f32 -1.4531521, %v2635_v56  ;;  %v2636_v29 = vmul.f32 1.0614054, %v3492_v32  ;;  %v3494_v18 = vpop.eup %3493 }
 0xed6   :  { %v2637_v44 = vadd.f32 -1.4531521, %v2633_v52  ;;  %v2634_v42 = vmul.f32 1.0614054, %v3494_v18  ;;  %v3496_v16 = vpop.eup %3495 }
 0xed7   :  { %v2643_v19 = vmul.f32 %v3488_v57, %v2639_v21  ;;  %v2640_v5 = vadd.f32 -1.4531521, %v2636_v29  ;;  %v3498_v51 = vpop.eup %3497 }
 0xed8   :  { %v2641_v54 = vmul.f32 %v3490_v3, %v2637_v44  ;;  %v2638_v34 = vadd.f32 -1.4531521, %v2634_v42  ;;  %v3500_v62 = vpop.eup %3499 }
 0xed9   :  { %v2647_v33 = vadd.f32 1.4214138, %v2643_v19  ;;  %v2644_v28 = vmul.f32 %v3492_v32, %v2640_v5  ;;  %v3502_v44 = vpop.eup %3501 }
 0xeda   :  { %v2645_v45 = vadd.f32 1.4214138, %v2641_v54  ;;  %v2642_v30 = vmul.f32 %v3494_v18, %v2638_v34  ;;  %v2606_v34 = vmul.f32 0.5, %v4696_v50 }
 0xedb   :  { %v2651_v11 = vmul.f32 %v3488_v57, %v2647_v33  ;;  %v2648_v46 = vadd.f32 1.4214138, %v2644_v28 }
 0xedc   :  { %v2649_v53 = vmul.f32 %v3490_v3, %v2645_v45  ;;  %v2646_v27 = vadd.f32 1.4214138, %v2642_v30  ;;  %v2605_v45 = vmul.f32 0.5, %v4686_v61 }
 0xedd   :  { %v2655_v4 = vadd.f32 -0.28449672, %v2651_v11  ;;  %v2652_v37 = vmul.f32 %v3492_v32, %v2648_v46 }
 0xede   :  { %v2653_v22 = vadd.f32 -0.28449672, %v2649_v53  ;;  %v2650_v26 = vmul.f32 %v3494_v18, %v2646_v27 }
 0xedf   :  { %v2659_v60 = vmul.f32 %v3488_v57, %v2655_v4  ;;  %v2656_v55 = vadd.f32 -0.28449672, %v2652_v37 }
 0xee0   :  { %v2657_v2 = vmul.f32 %v3490_v3, %v2653_v22  ;;  %v2654_v38 = vadd.f32 -0.28449672, %v2650_v26 }
 0xee1   :  { %v2663_v49 = vadd.f32 0.2548296, %v2659_v60  ;;  %v2660_v10 = vmul.f32 %v3492_v32, %v2656_v55 }
 0xee2   :  { %v2661_v58 = vadd.f32 0.2548296, %v2657_v2  ;;  %v2658_v59 = vmul.f32 %v3494_v18, %v2654_v38 }
 0xee3   :  { %v2667_v8 = vmul.f32 %v3488_v57, %v2663_v49  ;;  %v2664_v9 = vadd.f32 0.2548296, %v2660_v10 }
 0xee4   :  { %v2665_v12 = vmul.f32 %v3490_v3, %v2661_v58  ;;  %v2662_v1 = vadd.f32 0.2548296, %v2658_v59 }
 0xee5   :  { %v2687_v20 = vmul.f32 %v3496_v16, %v2667_v8  ;;  %v2668_v56 = vmul.f32 %v3492_v32, %v2664_v9  ;;  %v2607_v32 = vmul.f32 0.5, %v4684_v25 }
 0xee6   :  { %v2685_v6 = vmul.f32 %v3498_v51, %v2665_v12  ;;  %v2666_v7 = vmul.f32 %v3494_v18, %v2662_v1  ;;  %v2608_v18 = vmul.f32 0.5, %v4691_v13  ;;  %v2734_v13 = vrot.slane %v4521_v23, %v4031_v0 }
 0xee7   :  { %v2691_v17 = vsub.f32 1.0, %v2687_v20  ;;  %v2688_v40 = vmul.f32 %v3500_v62, %v2668_v56 }
 0xee8   :  { %v2689_v52 = vsub.f32 1.0, %v2685_v6  ;;  %v2686_v3 = vmul.f32 %v3502_v44, %v2666_v7 }
 0xee9   :  { %v2699_v21 = vsub.f32 0.0, %v2691_v17  ;;  %v2692_v15 = vsub.f32 1.0, %v2688_v40 }
 0xeea   :  { %v2697_v57 = vsub.f32 0.0, %v2689_v52  ;;  %v2690_v48 = vsub.f32 1.0, %v2686_v3 }
 0xeeb   :  { %v2703_v19 = vsel %vm2695_vm7, %v2691_v17, %v2699_v21  ;;  %v2700_v29 = vsub.f32 0.0, %v2692_v15 }
 0xeec   :  { %v2701_v54 = vsel %vm2693_vm8, %v2689_v52, %v2697_v57  ;;  %v2707_v33 = vadd.f32 1.0, %v2703_v19  ;;  %v2698_v42 = vsub.f32 0.0, %v2690_v48 }
 0xeed   :  { %v2704_v5 = vsel %vm2696_vm9, %v2692_v15, %v2700_v29  ;;  %v2705_v35 = vadd.f32 1.0, %v2701_v54 }
 0xeee   :  { %v2708_v41 = vadd.f32 1.0, %v2704_v5  ;;  %v2702_v11 = vsel %vm2694_vm10, %v2690_v48, %v2698_v42  ;;  %v2711_v31 = vmul.f32 %v2707_v33, %v2607_v32 }
 0xeef   :  { %v2706_v43 = vadd.f32 1.0, %v2702_v11  ;;  %v2709_v53 = vmul.f32 %v2705_v35, %v2605_v45 }
 0xef0   :  { %v2712_v28 = vmul.f32 %v2708_v41, %v2608_v18 }
 0xef1   :  { %v2710_v39 = vmul.f32 %v2706_v43, %v2606_v34 }
 0xef2   :  { %v2714_v4 = vpack.c.bf16 %v2712_v28, %v2711_v31 }
 0xef3   :  { %v2713_v25 = vpack.c.bf16 %v2710_v39, %v2709_v53 }
 0xef5   :  { %3238 = vmatprep.mubr.bf16.mxu1 %v2713_v25 }
 0xef6   :  { %3239 = vmatmul.mubr.bf16.vlgmr.msra.gmra.mrb[60].mxu1 %v2714_v4 }
 0xfc9   :  { %v3240_v46 = vpop.f32.mrb[60].mxu1 }
 0xfca   :  { %v2826_v63 = vadd.f32 %v3240_v46, %v2734_v13  ;;  %v2817_v30 = vpop.f32.mrb[61].mxu1 }
 0xfcb   :  { %v2818_v22 = vadd.f32 %v2817_v30, %v2734_v13  ;;  %v3241_v61 = vpop.f32.mrb[62].mxu1 }
 0xfcc   :  { %v2834_v60 = vadd.f32 %v2826_v63, %v4554_v14  ;;  %v2829_v37 = vadd.f32 %v3241_v61, %v2734_v13  ;;  %v2820_v27 = vpop.f32.mrb[63].mxu1 }
 0xfcd   :  { %v2832_v50 = vadd.f32 %v2818_v22, %v4547_v36  ;;  %v2821_v2 = vadd.f32 %v2820_v27, %v2734_v13 }
 0xfce   :  { %2838 = vst.msk [vmem:[#allocation2 + $0x10] sm:$0xff] %vm59_vm1, %v2834_v60  ;;  %v2835_v49 = vadd.f32 %v2829_v37, %v4556_v24 }
 0xfcf   :  { %2836 = vst.msk [vmem:[#allocation2] sm:$0xff] %vm59_vm1, %v2832_v50  ;;  %v2833_v0 = vadd.f32 %v2821_v2, %v4549_v47 }
 0xfd0   :  { %2839 = vst.msk [vmem:[#allocation2 + $0x18] sm:$0xff] %vm59_vm1, %v2835_v49 }
 0xfd1   :  { %2837 = vst.msk [vmem:[#allocation2 + $0x8] sm:$0xff] %vm59_vm1, %v2833_v0 }
 0xfd2   :  { %3515 = shalt.err (!%p3512_p4)
}
 0xfd3   :  { %s3516_s27 = scalar_lea.hbm %s4752_s14, 512 }
 0xfd4   :  { %p3517_p5 = scmp.ne.s32.totalorder %s4752_s14, %s3516_s27  ;;  %p3520_p6 = scmp.lt.u32.totalorder %s3516_s27, %s4752_s14 }
 0xfd6   :  { %p3522_p7 = pnand %p3520_p6, %p3517_p5 }
 0xfd8   :  { %3525 = shalt.err (!%p3522_p7)
}
 0xfd9   :  { %s3529_s29 = smov 128   ;;  %s3530_s30 = smov 8  }
 0xfda   :  { %2851 = dma.vmem_to_hbm [thread:$0]  %s2846_s12, 512, %s4752_s14, [#allocation3], %s3529_s29, %s3529_s29, %s3530_s30  }
 0xfdb   :  { %3526 = dma.done.wait [#allocation3], 512  }
 0xfdc   :  { %3527 = vsyncadd [#allocation3], 4294966784 }
 0xfdd   :  { %2855 = vsyncpa [#allocation3], 1 }

</bundles_post_ra>
